<compile_context>
chip_gen: v6e
topology: v6e:2x2x1
jax: 0.10.0
libtpu: 0.0.40
codegen_flags: <defaults>
</compile_context>

<pallas_src>
import functools

import jax
import jax.numpy as jnp
import numpy as np
from jax.experimental import pallas as pl
from jax.experimental.pallas import tpu as pltpu

EPS = 1e-5                       # torch.nn.LayerNorm default eps
_HIGH = jax.lax.Precision.HIGHEST


def _gelu(x):
    # exact (erf-based) GELU, matching torch.nn.GELU default
    # TODO(synk): switch to tanh-approx GELU (EUP slot, frees VALU) if exact torch parity is not required.
    return 0.5 * x * (1.0 + jax.lax.erf(x * 0.7071067811865475))


# --------------- single fused Block kernel (Bblk lane-packed batch elements / step) ---------------
def block_kernel(x_ref, avg_ref, g1_ref, b1_ref, g2_ref, b2_ref,
                 fst_ref, wr_ref, wi_ref, gst_ref,
                 w1_ref, bb1_ref, w2_ref, bb2_ref, o_ref, *, nf):
    x = x_ref[0]                       # (N, BC) f32, lane-dense (BC = Bblk*C = 128)
    A = avg_ref[...]                   # (BC, BC) block-diagonal per-group averaging matrix

    # ---- LayerNorm1: per-(token, batch-element) stats over its C-lane group, one MXU pass each ----
    mu = jnp.dot(x, A, preferred_element_type=jnp.float32, precision=_HIGH)
    ex2 = jnp.dot(x * x, A, preferred_element_type=jnp.float32, precision=_HIGH)
    var = ex2 - mu * mu
    xn = (x - mu) * jax.lax.rsqrt(var + EPS) * g1_ref[0] + b1_ref[0]

    # ---- Global_Filter: stacked rDFT -> per-channel complex weight -> stacked irDFT ----
    s = jnp.dot(fst_ref[...], xn, preferred_element_type=jnp.float32, precision=_HIGH)  # (2Nf, BC)
    xr = s[:nf]                        # real part of rfftn(xn)   (Nf, BC); 8-aligned free slice
    xi = s[nf:]                        # imag part
    wr = wr_ref[...]                   # (Nf, BC) f32, batch-tiled per lane group
    wi = wi_ref[...]
    zr = xr * wr - xi * wi             # complex multiply on the VPU (f32)
    zi = xr * wi + xi * wr
    z = jnp.concatenate([zr, zi], axis=0)                                              # (2Nf, BC)
    y = jnp.dot(gst_ref[...], z, preferred_element_type=jnp.float32, precision=_HIGH)  # (N, BC)

    # ---- LayerNorm2 ----
    mu2 = jnp.dot(y, A, preferred_element_type=jnp.float32, precision=_HIGH)
    ey2 = jnp.dot(y * y, A, preferred_element_type=jnp.float32, precision=_HIGH)
    var2 = ey2 - mu2 * mu2
    yn = (y - mu2) * jax.lax.rsqrt(var2 + EPS) * g2_ref[0] + b2_ref[0]

    # ---- MLP (lane-packed, block-diagonal weights): fc1 -> GELU -> fc2 -> GELU ----
    h = jnp.dot(yn.astype(jnp.bfloat16), w1_ref[...],
                preferred_element_type=jnp.float32) + bb1_ref[0]                        # (N, BH)
    h = _gelu(h)
    m = jnp.dot(h.astype(jnp.bfloat16), w2_ref[...],
                preferred_element_type=jnp.float32) + bb2_ref[0]                        # (N, BC)
    m = _gelu(m)

    # ---- residual: lane-dense (N, 128) store ----
    o_ref[0] = x + m


def block_forward(x, pk, bblk):
    B, N, C = x.shape
    assert B % bblk == 0, "batch must be divisible by the batch block"
    Bg = B // bblk
    BC = bblk * C
    Nf = pk["fst"].shape[0] // 2
    BH = pk["w1bd"].shape[1]

    # Layout plumbing (wrapper-side, XLA): fold bblk batch elements onto the lane axis.
    xp = x.reshape(Bg, bblk, N, C).transpose(0, 2, 1, 3).reshape(Bg, N, BC)

    out_p = pl.pallas_call(
        functools.partial(block_kernel, nf=Nf),
        out_shape=jax.ShapeDtypeStruct((Bg, N, BC), jnp.float32),
        grid=(Bg,),
        in_specs=[
            pl.BlockSpec((1, N, BC), lambda b: (b, 0, 0)),   # x (lane-packed)
            pl.BlockSpec((BC, BC), lambda b: (0, 0)),        # block-diag averaging matrix (f32)
            pl.BlockSpec((1, BC), lambda b: (0, 0)),         # gamma1 (batch-tiled)
            pl.BlockSpec((1, BC), lambda b: (0, 0)),         # beta1
            pl.BlockSpec((1, BC), lambda b: (0, 0)),         # gamma2
            pl.BlockSpec((1, BC), lambda b: (0, 0)),         # beta2
            pl.BlockSpec((2 * Nf, N), lambda b: (0, 0)),     # stacked rDFT  [real;imag]^T (f32)
            pl.BlockSpec((Nf, BC), lambda b: (0, 0)),        # filter weight real (tiled)
            pl.BlockSpec((Nf, BC), lambda b: (0, 0)),        # filter weight imag (tiled)
            pl.BlockSpec((N, 2 * Nf), lambda b: (0, 0)),     # stacked irDFT [real,imag]^T (f32)
            pl.BlockSpec((BC, BH), lambda b: (0, 0)),        # fc1 (block-diagonal, bf16)
            pl.BlockSpec((1, BH), lambda b: (0, 0)),         # bias1 (tiled)
            pl.BlockSpec((BH, BC), lambda b: (0, 0)),        # fc2 (block-diagonal, bf16)
            pl.BlockSpec((1, BC), lambda b: (0, 0)),         # bias2 (tiled)
        ],
        out_specs=pl.BlockSpec((1, N, BC), lambda b: (b, 0, 0)),
        compiler_params=pltpu.CompilerParams(
            dimension_semantics=("parallel",),
            # Explicit VMEM budget (well under v5e/v6e 128 MiB and v7x 64 MiB physical).
            vmem_limit_bytes=32 * 1024 * 1024,
        ),
    )(xp, pk["avg"], pk["g1t"], pk["b1t"], pk["g2t"], pk["b2t"],
      pk["fst"], pk["wrt"], pk["wit"], pk["gst"],
      pk["w1bd"], pk["bias1t"], pk["w2bd"], pk["bias2t"])

    # Unpack lanes back to (B, N, C).
    return out_p.reshape(Bg, N, bblk, C).transpose(0, 2, 1, 3).reshape(B, N, C)


def make_params(key, p, dim, mlp_ratio=2.0):
    """Deterministic synthetic parameters (shapes follow Block.__init__ with h=w=d=p)."""
    N = p ** 3
    dh = p // 2 + 1
    Nf = p * p * dh
    H = int(dim * mlp_ratio)
    ks = jax.random.split(key, 5)

    # Global_Filter.complex_weight: randn(h, w, d//2+1, dim, 2) * 1.5
    cw = jax.random.normal(ks[0], (p, p, dh, dim, 2), jnp.float32) * 1.5
    Wc = cw[..., 0] + 1j * cw[..., 1]                       # (p, p, dh, dim) complex

    # TODO(synk): no FFT primitive inside Pallas; the 3-D rFFT/irFFT are materialized once
    # (exactly, by evaluating jnp.fft on spatial / frequency basis vectors) as shared real
    # DFT matrices that the kernel applies on the MXU.
    E = jnp.eye(N, dtype=jnp.float32).reshape(N, p, p, p)
    F = jnp.fft.rfftn(E, axes=(1, 2, 3), norm="ortho").reshape(N, Nf)          # complex (N, Nf)
    Ef = jnp.eye(Nf, dtype=jnp.complex64).reshape(Nf, p, p, dh)
    Gr = jnp.fft.irfftn(Ef, s=(p, p, p), axes=(1, 2, 3), norm="ortho").reshape(Nf, N)
    Gi = jnp.fft.irfftn(1j * Ef, s=(p, p, p), axes=(1, 2, 3), norm="ortho").reshape(Nf, N)

    return dict(
        g1=jnp.ones((1, dim), jnp.float32), b1=jnp.zeros((1, dim), jnp.float32),
        g2=jnp.ones((1, dim), jnp.float32), b2=jnp.zeros((1, dim), jnp.float32),
        # stacked shared rDFT / irDFT matrices, kept f32 (bf16 DFT costs ~1e-2 rel error)
        fst=jnp.concatenate([jnp.real(F).T, jnp.imag(F).T], axis=0).astype(jnp.float32),  # (2Nf, N)
        gst=jnp.concatenate([Gr.T, Gi.T], axis=1).astype(jnp.float32),                    # (N, 2Nf)
        # per-channel complex filter weights (elementwise, f32)
        wr=jnp.real(Wc).reshape(Nf, dim).astype(jnp.float32),
        wi=jnp.imag(Wc).reshape(Nf, dim).astype(jnp.float32),
        # MLP weights (MXU operands -> bf16), biases f32
        w1=(jax.random.normal(ks[1], (dim, H), jnp.float32) * 0.05).astype(jnp.bfloat16),
        bias1=jax.random.normal(ks[2], (1, H), jnp.float32) * 0.02,
        w2=(jax.random.normal(ks[3], (H, dim), jnp.float32) * 0.05).astype(jnp.bfloat16),
        bias2=jax.random.normal(ks[4], (1, dim), jnp.float32) * 0.02,
        cw=Wc,  # kept only for the pure-JAX FFT reference check
    )


def pack_params(params, bblk):
    """One-time lane-packing of the weights for a given batch block (amortized across calls)."""
    C = params["g1"].shape[1]
    eye = jnp.eye(bblk, dtype=jnp.float32)
    tile = lambda v: jnp.tile(v, (1, bblk))
    return dict(
        avg=jnp.kron(eye, jnp.full((C, C), 1.0 / C, jnp.float32)),     # (Bblk*C, Bblk*C)
        g1t=tile(params["g1"]), b1t=tile(params["b1"]),
        g2t=tile(params["g2"]), b2t=tile(params["b2"]),
        fst=params["fst"], gst=params["gst"],
        wrt=tile(params["wr"]), wit=tile(params["wi"]),                 # (Nf, Bblk*C)
        w1bd=jnp.kron(eye, params["w1"].astype(jnp.float32)).astype(jnp.bfloat16),  # (Bblk*C, Bblk*H)
        bias1t=tile(params["bias1"]),                                   # (1, Bblk*H)
        w2bd=jnp.kron(eye, params["w2"].astype(jnp.float32)).astype(jnp.bfloat16),  # (Bblk*H, Bblk*C)
        bias2t=tile(params["bias2"]),                                   # (1, Bblk*C)
    )


def reference(x, params, p):
    """Pure-JAX forward (real FFT path) for validation."""
    B, N, C = x.shape

    def ln(v, g, b):
        mu = v.mean(-1, keepdims=True)
        var = ((v - mu) ** 2).mean(-1, keepdims=True)
        return (v - mu) / jnp.sqrt(var + EPS) * g[0] + b[0]

    x1 = ln(x, params["g1"], params["b1"])
    x5 = x1.reshape(B, p, p, p, C)
    Xf = jnp.fft.rfftn(x5, axes=(1, 2, 3), norm="ortho") * params["cw"][None]
    xf = jnp.fft.irfftn(Xf, s=(p, p, p), axes=(1, 2, 3), norm="ortho").reshape(B, N, C)
    y = ln(xf, params["g2"], params["b2"])
    w1 = params["w1"].astype(jnp.float32)
    w2 = params["w2"].astype(jnp.float32)
    h = _gelu(y @ w1 + params["bias1"][0])
    z = _gelu(h @ w2 + params["bias2"][0])
    return x + z


if __name__ == "__main__":
    P = 4            # spatial grid (p, p, p) -> N = 64 tokens
    DIM = 32         # channels
    B = 8            # batch; Bblk = 4 -> lane width Bblk*DIM = 128 (full vreg / MXU lanes)
    N = P ** 3

    key = jax.random.PRNGKey(0)
    kx, kp = jax.random.split(key)
    x = jax.random.normal(kx, (B, N, DIM), jnp.float32)
    params = make_params(kp, P, DIM, mlp_ratio=2.0)

    BBLK = 4 if B % 4 == 0 else (2 if B % 2 == 0 else 1)
    packed = pack_params(params, BBLK)

    out = jax.block_until_ready(block_forward(x, packed, BBLK))
    assert out.shape == (B, N, DIM)

    ref = np.asarray(reference(x, params, P))
    got = np.asarray(out)
    assert np.allclose(got, ref, atol=5e-2, rtol=5e-2), float(np.max(np.abs(got - ref)))

    print("KERNEL_OK")
</pallas_src>

<mosaic_0001>
module attributes {stable_mosaic.version = 11 : i64} {
  func.func @block_kernel(%arg0: i32, %arg1: memref<1x64x128xf32, #tpu.memory_space<vmem>>, %arg2: memref<128x128xf32, #tpu.memory_space<vmem>>, %arg3: memref<1x128xf32, #tpu.memory_space<vmem>>, %arg4: memref<1x128xf32, #tpu.memory_space<vmem>>, %arg5: memref<1x128xf32, #tpu.memory_space<vmem>>, %arg6: memref<1x128xf32, #tpu.memory_space<vmem>>, %arg7: memref<96x64xf32, #tpu.memory_space<vmem>>, %arg8: memref<48x128xf32, #tpu.memory_space<vmem>>, %arg9: memref<48x128xf32, #tpu.memory_space<vmem>>, %arg10: memref<64x96xf32, #tpu.memory_space<vmem>>, %arg11: memref<128x256xbf16, #tpu.memory_space<vmem>>, %arg12: memref<1x256xf32, #tpu.memory_space<vmem>>, %arg13: memref<256x128xbf16, #tpu.memory_space<vmem>>, %arg14: memref<1x128xf32, #tpu.memory_space<vmem>>, %arg15: memref<1x64x128xf32, #tpu.memory_space<vmem>>) attributes {dimension_semantics = [#tpu.dimension_semantics<parallel>], iteration_bounds = array<i64: 2>, scalar_prefetch = 0 : i64, scratch_operands = 0 : i64, tpu.core_type = #tpu.core_type<tc>, window_params = [{transform_indices = @transform_0, window_bounds = array<i64: 1, 64, 128>}, {pipeline_mode = #tpu.pipeline_mode<synchronous>, transform_indices = @transform_1, window_bounds = array<i64: 128, 128>}, {pipeline_mode = #tpu.pipeline_mode<synchronous>, transform_indices = @transform_2, window_bounds = array<i64: 1, 128>}, {pipeline_mode = #tpu.pipeline_mode<synchronous>, transform_indices = @transform_3, window_bounds = array<i64: 1, 128>}, {pipeline_mode = #tpu.pipeline_mode<synchronous>, transform_indices = @transform_4, window_bounds = array<i64: 1, 128>}, {pipeline_mode = #tpu.pipeline_mode<synchronous>, transform_indices = @transform_5, window_bounds = array<i64: 1, 128>}, {pipeline_mode = #tpu.pipeline_mode<synchronous>, transform_indices = @transform_6, window_bounds = array<i64: 96, 64>}, {pipeline_mode = #tpu.pipeline_mode<synchronous>, transform_indices = @transform_7, window_bounds = array<i64: 48, 128>}, {pipeline_mode = #tpu.pipeline_mode<synchronous>, transform_indices = @transform_8, window_bounds = array<i64: 48, 128>}, {pipeline_mode = #tpu.pipeline_mode<synchronous>, transform_indices = @transform_9, window_bounds = array<i64: 64, 96>}, {pipeline_mode = #tpu.pipeline_mode<synchronous>, transform_indices = @transform_10, window_bounds = array<i64: 128, 256>}, {pipeline_mode = #tpu.pipeline_mode<synchronous>, transform_indices = @transform_11, window_bounds = array<i64: 1, 256>}, {pipeline_mode = #tpu.pipeline_mode<synchronous>, transform_indices = @transform_12, window_bounds = array<i64: 256, 128>}, {pipeline_mode = #tpu.pipeline_mode<synchronous>, transform_indices = @transform_13, window_bounds = array<i64: 1, 128>}, {transform_indices = @transform_14, window_bounds = array<i64: 1, 64, 128>}]} {
    %c0 = arith.constant 0 : index
    %c0_0 = arith.constant 0 : index
    %c0_1 = arith.constant 0 : index
    %0 = vector.load %arg1[%c0, %c0_0, %c0_1] : memref<1x64x128xf32, #tpu.memory_space<vmem>>, vector<1x64x128xf32>
    %1 = vector.shape_cast %0 : vector<1x64x128xf32> to vector<64x128xf32>
    %c0_2 = arith.constant 0 : index
    %c0_3 = arith.constant 0 : index
    %2 = vector.load %arg2[%c0_2, %c0_3] : memref<128x128xf32, #tpu.memory_space<vmem>>, vector<128x128xf32>
    %cst = arith.constant dense<0.000000e+00> : vector<64x128xf32>
    %3 = tpu.matmul %1, %2, %cst {dimension_numbers = #tpu.dot_dimension_numbers<[1], [0], [0], [1], [0, 0, 1, 1], [], []>, precision = #tpu.contract_precision<fp32>} : vector<64x128xf32>, vector<128x128xf32>, vector<64x128xf32> -> vector<64x128xf32>
    %4 = arith.mulf %1, %1 : vector<64x128xf32>
    %cst_4 = arith.constant dense<0.000000e+00> : vector<64x128xf32>
    %5 = tpu.matmul %4, %2, %cst_4 {dimension_numbers = #tpu.dot_dimension_numbers<[1], [0], [0], [1], [0, 0, 1, 1], [], []>, precision = #tpu.contract_precision<fp32>} : vector<64x128xf32>, vector<128x128xf32>, vector<64x128xf32> -> vector<64x128xf32>
    %6 = arith.mulf %3, %3 : vector<64x128xf32>
    %7 = arith.subf %5, %6 : vector<64x128xf32>
    %8 = arith.subf %1, %3 : vector<64x128xf32>
    %cst_5 = arith.constant 9.99999974E-6 : f32
    %9 = vector.broadcast %cst_5 : f32 to vector<64x128xf32>
    %10 = arith.addf %7, %9 : vector<64x128xf32>
    %11 = math.rsqrt %10 : vector<64x128xf32>
    %12 = arith.mulf %8, %11 : vector<64x128xf32>
    %c0_6 = arith.constant 0 : index
    %c0_7 = arith.constant 0 : index
    %13 = vector.load %arg3[%c0_6, %c0_7] : memref<1x128xf32, #tpu.memory_space<vmem>>, vector<1x128xf32>
    %14 = vector.shape_cast %13 : vector<1x128xf32> to vector<128xf32>
    %15 = vector.shape_cast %14 : vector<128xf32> to vector<1x128xf32>
    %16 = vector.broadcast %15 : vector<1x128xf32> to vector<64x128xf32>
    %17 = arith.mulf %12, %16 : vector<64x128xf32>
    %c0_8 = arith.constant 0 : index
    %c0_9 = arith.constant 0 : index
    %18 = vector.load %arg4[%c0_8, %c0_9] : memref<1x128xf32, #tpu.memory_space<vmem>>, vector<1x128xf32>
    %19 = vector.shape_cast %18 : vector<1x128xf32> to vector<128xf32>
    %20 = vector.shape_cast %19 : vector<128xf32> to vector<1x128xf32>
    %21 = vector.broadcast %20 : vector<1x128xf32> to vector<64x128xf32>
    %22 = arith.addf %17, %21 : vector<64x128xf32>
    %c0_10 = arith.constant 0 : index
    %c0_11 = arith.constant 0 : index
    %23 = vector.load %arg7[%c0_10, %c0_11] : memref<96x64xf32, #tpu.memory_space<vmem>>, vector<96x64xf32>
    %cst_12 = arith.constant dense<0.000000e+00> : vector<96x128xf32>
    %24 = tpu.matmul %23, %22, %cst_12 {dimension_numbers = #tpu.dot_dimension_numbers<[1], [0], [0], [1], [0, 0, 1, 1], [], []>, precision = #tpu.contract_precision<fp32>} : vector<96x64xf32>, vector<64x128xf32>, vector<96x128xf32> -> vector<96x128xf32>
    %25 = vector.extract_strided_slice %24 {offsets = [0, 0], sizes = [48, 128], strides = [1, 1]} : vector<96x128xf32> to vector<48x128xf32>
    %26 = vector.extract_strided_slice %24 {offsets = [48, 0], sizes = [48, 128], strides = [1, 1]} : vector<96x128xf32> to vector<48x128xf32>
    %c0_13 = arith.constant 0 : index
    %c0_14 = arith.constant 0 : index
    %27 = vector.load %arg8[%c0_13, %c0_14] : memref<48x128xf32, #tpu.memory_space<vmem>>, vector<48x128xf32>
    %c0_15 = arith.constant 0 : index
    %c0_16 = arith.constant 0 : index
    %28 = vector.load %arg9[%c0_15, %c0_16] : memref<48x128xf32, #tpu.memory_space<vmem>>, vector<48x128xf32>
    %29 = arith.mulf %25, %27 : vector<48x128xf32>
    %30 = arith.mulf %26, %28 : vector<48x128xf32>
    %31 = arith.subf %29, %30 : vector<48x128xf32>
    %32 = arith.mulf %25, %28 : vector<48x128xf32>
    %33 = arith.mulf %26, %27 : vector<48x128xf32>
    %34 = arith.addf %32, %33 : vector<48x128xf32>
    %35 = tpu.concatenate %31, %34 in 0 : vector<48x128xf32>, vector<48x128xf32> -> vector<96x128xf32>
    %c0_17 = arith.constant 0 : index
    %c0_18 = arith.constant 0 : index
    %36 = vector.load %arg10[%c0_17, %c0_18] : memref<64x96xf32, #tpu.memory_space<vmem>>, vector<64x96xf32>
    %cst_19 = arith.constant dense<0.000000e+00> : vector<64x128xf32>
    %37 = tpu.matmul %36, %35, %cst_19 {dimension_numbers = #tpu.dot_dimension_numbers<[1], [0], [0], [1], [0, 0, 1, 1], [], []>, precision = #tpu.contract_precision<fp32>} : vector<64x96xf32>, vector<96x128xf32>, vector<64x128xf32> -> vector<64x128xf32>
    %cst_20 = arith.constant dense<0.000000e+00> : vector<64x128xf32>
    %38 = tpu.matmul %37, %2, %cst_20 {dimension_numbers = #tpu.dot_dimension_numbers<[1], [0], [0], [1], [0, 0, 1, 1], [], []>, precision = #tpu.contract_precision<fp32>} : vector<64x128xf32>, vector<128x128xf32>, vector<64x128xf32> -> vector<64x128xf32>
    %39 = arith.mulf %37, %37 : vector<64x128xf32>
    %cst_21 = arith.constant dense<0.000000e+00> : vector<64x128xf32>
    %40 = tpu.matmul %39, %2, %cst_21 {dimension_numbers = #tpu.dot_dimension_numbers<[1], [0], [0], [1], [0, 0, 1, 1], [], []>, precision = #tpu.contract_precision<fp32>} : vector<64x128xf32>, vector<128x128xf32>, vector<64x128xf32> -> vector<64x128xf32>
    %41 = arith.mulf %38, %38 : vector<64x128xf32>
    %42 = arith.subf %40, %41 : vector<64x128xf32>
    %43 = arith.subf %37, %38 : vector<64x128xf32>
    %cst_22 = arith.constant 9.99999974E-6 : f32
    %44 = vector.broadcast %cst_22 : f32 to vector<64x128xf32>
    %45 = arith.addf %42, %44 : vector<64x128xf32>
    %46 = math.rsqrt %45 : vector<64x128xf32>
    %47 = arith.mulf %43, %46 : vector<64x128xf32>
    %c0_23 = arith.constant 0 : index
    %c0_24 = arith.constant 0 : index
    %48 = vector.load %arg5[%c0_23, %c0_24] : memref<1x128xf32, #tpu.memory_space<vmem>>, vector<1x128xf32>
    %49 = vector.shape_cast %48 : vector<1x128xf32> to vector<128xf32>
    %50 = vector.shape_cast %49 : vector<128xf32> to vector<1x128xf32>
    %51 = vector.broadcast %50 : vector<1x128xf32> to vector<64x128xf32>
    %52 = arith.mulf %47, %51 : vector<64x128xf32>
    %c0_25 = arith.constant 0 : index
    %c0_26 = arith.constant 0 : index
    %53 = vector.load %arg6[%c0_25, %c0_26] : memref<1x128xf32, #tpu.memory_space<vmem>>, vector<1x128xf32>
    %54 = vector.shape_cast %53 : vector<1x128xf32> to vector<128xf32>
    %55 = vector.shape_cast %54 : vector<128xf32> to vector<1x128xf32>
    %56 = vector.broadcast %55 : vector<1x128xf32> to vector<64x128xf32>
    %57 = arith.addf %52, %56 : vector<64x128xf32>
    %58 = arith.truncf %57 : vector<64x128xf32> to vector<64x128xbf16>
    %c0_27 = arith.constant 0 : index
    %c0_28 = arith.constant 0 : index
    %59 = vector.load %arg11[%c0_27, %c0_28] : memref<128x256xbf16, #tpu.memory_space<vmem>>, vector<128x256xbf16>
    %cst_29 = arith.constant dense<0.000000e+00> : vector<64x256xf32>
    %60 = tpu.matmul %58, %59, %cst_29 {dimension_numbers = #tpu.dot_dimension_numbers<[1], [0], [0], [1], [0, 0, 1, 1], [], []>} : vector<64x128xbf16>, vector<128x256xbf16>, vector<64x256xf32> -> vector<64x256xf32>
    %c0_30 = arith.constant 0 : index
    %c0_31 = arith.constant 0 : index
    %61 = vector.load %arg12[%c0_30, %c0_31] : memref<1x256xf32, #tpu.memory_space<vmem>>, vector<1x256xf32>
    %62 = vector.shape_cast %61 : vector<1x256xf32> to vector<256xf32>
    %63 = vector.shape_cast %62 : vector<256xf32> to vector<1x256xf32>
    %64 = vector.broadcast %63 : vector<1x256xf32> to vector<64x256xf32>
    %65 = arith.addf %60, %64 : vector<64x256xf32>
    %cst_32 = arith.constant 5.000000e-01 : f32
    %66 = vector.broadcast %cst_32 : f32 to vector<64x256xf32>
    %67 = arith.mulf %66, %65 : vector<64x256xf32>
    %cst_33 = arith.constant 0.707106769 : f32
    %68 = vector.broadcast %cst_33 : f32 to vector<64x256xf32>
    %69 = arith.mulf %65, %68 : vector<64x256xf32>
    %70 = math.erf %69 : vector<64x256xf32>
    %cst_34 = arith.constant 1.000000e+00 : f32
    %71 = vector.broadcast %cst_34 : f32 to vector<64x256xf32>
    %72 = arith.addf %71, %70 : vector<64x256xf32>
    %73 = arith.mulf %67, %72 : vector<64x256xf32>
    %74 = arith.truncf %73 : vector<64x256xf32> to vector<64x256xbf16>
    %c0_35 = arith.constant 0 : index
    %c0_36 = arith.constant 0 : index
    %75 = vector.load %arg13[%c0_35, %c0_36] : memref<256x128xbf16, #tpu.memory_space<vmem>>, vector<256x128xbf16>
    %cst_37 = arith.constant dense<0.000000e+00> : vector<64x128xf32>
    %76 = tpu.matmul %74, %75, %cst_37 {dimension_numbers = #tpu.dot_dimension_numbers<[1], [0], [0], [1], [0, 0, 1, 1], [], []>} : vector<64x256xbf16>, vector<256x128xbf16>, vector<64x128xf32> -> vector<64x128xf32>
    %c0_38 = arith.constant 0 : index
    %c0_39 = arith.constant 0 : index
    %77 = vector.load %arg14[%c0_38, %c0_39] : memref<1x128xf32, #tpu.memory_space<vmem>>, vector<1x128xf32>
    %78 = vector.shape_cast %77 : vector<1x128xf32> to vector<128xf32>
    %79 = vector.shape_cast %78 : vector<128xf32> to vector<1x128xf32>
    %80 = vector.broadcast %79 : vector<1x128xf32> to vector<64x128xf32>
    %81 = arith.addf %76, %80 : vector<64x128xf32>
    %cst_40 = arith.constant 5.000000e-01 : f32
    %82 = vector.broadcast %cst_40 : f32 to vector<64x128xf32>
    %83 = arith.mulf %82, %81 : vector<64x128xf32>
    %cst_41 = arith.constant 0.707106769 : f32
    %84 = vector.broadcast %cst_41 : f32 to vector<64x128xf32>
    %85 = arith.mulf %81, %84 : vector<64x128xf32>
    %86 = math.erf %85 : vector<64x128xf32>
    %cst_42 = arith.constant 1.000000e+00 : f32
    %87 = vector.broadcast %cst_42 : f32 to vector<64x128xf32>
    %88 = arith.addf %87, %86 : vector<64x128xf32>
    %89 = arith.mulf %83, %88 : vector<64x128xf32>
    %90 = arith.addf %1, %89 : vector<64x128xf32>
    %c0_43 = arith.constant 0 : index
    %c0_44 = arith.constant 0 : index
    %c0_45 = arith.constant 0 : index
    %91 = vector.load %arg15[%c0_43, %c0_44, %c0_45] : memref<1x64x128xf32, #tpu.memory_space<vmem>>, vector<1x64x128xf32>
    %92 = vector.shape_cast %91 : vector<1x64x128xf32> to vector<64x128xf32>
    %93 = vector.shape_cast %90 : vector<64x128xf32> to vector<1x64x128xf32>
    tpu.vector_store %arg15[%c0_43, %c0_44, %c0_45], %93 {strides = array<i32>} : memref<1x64x128xf32, #tpu.memory_space<vmem>>, vector<1x64x128xf32>,
    return
  }
  func.func @transform_0(%arg0: i32) -> (i32, i32, i32) {
    %c0_i32 = arith.constant 0 : i32
    %c0_i32_0 = arith.constant 0 : i32
    %c0_i32_1 = arith.constant 0 : i32
    return %arg0, %c0_i32, %c0_i32_0 : i32, i32, i32
  }
  func.func @transform_1(%arg0: i32) -> (i32, i32) {
    %c0_i32 = arith.constant 0 : i32
    %c0_i32_0 = arith.constant 0 : i32
    %c0_i32_1 = arith.constant 0 : i32
    return %c0_i32, %c0_i32_0 : i32, i32
  }
  func.func @transform_2(%arg0: i32) -> (i32, i32) {
    %c0_i32 = arith.constant 0 : i32
    %c0_i32_0 = arith.constant 0 : i32
    %c0_i32_1 = arith.constant 0 : i32
    return %c0_i32, %c0_i32_0 : i32, i32
  }
  func.func @transform_3(%arg0: i32) -> (i32, i32) {
    %c0_i32 = arith.constant 0 : i32
    %c0_i32_0 = arith.constant 0 : i32
    %c0_i32_1 = arith.constant 0 : i32
    return %c0_i32, %c0_i32_0 : i32, i32
  }
  func.func @transform_4(%arg0: i32) -> (i32, i32) {
    %c0_i32 = arith.constant 0 : i32
    %c0_i32_0 = arith.constant 0 : i32
    %c0_i32_1 = arith.constant 0 : i32
    return %c0_i32, %c0_i32_0 : i32, i32
  }
  func.func @transform_5(%arg0: i32) -> (i32, i32) {
    %c0_i32 = arith.constant 0 : i32
    %c0_i32_0 = arith.constant 0 : i32
    %c0_i32_1 = arith.constant 0 : i32
    return %c0_i32, %c0_i32_0 : i32, i32
  }
  func.func @transform_6(%arg0: i32) -> (i32, i32) {
    %c0_i32 = arith.constant 0 : i32
    %c0_i32_0 = arith.constant 0 : i32
    %c0_i32_1 = arith.constant 0 : i32
    return %c0_i32, %c0_i32_0 : i32, i32
  }
  func.func @transform_7(%arg0: i32) -> (i32, i32) {
    %c0_i32 = arith.constant 0 : i32
    %c0_i32_0 = arith.constant 0 : i32
    %c0_i32_1 = arith.constant 0 : i32
    return %c0_i32, %c0_i32_0 : i32, i32
  }
  func.func @transform_8(%arg0: i32) -> (i32, i32) {
    %c0_i32 = arith.constant 0 : i32
    %c0_i32_0 = arith.constant 0 : i32
    %c0_i32_1 = arith.constant 0 : i32
    return %c0_i32, %c0_i32_0 : i32, i32
  }
  func.func @transform_9(%arg0: i32) -> (i32, i32) {
    %c0_i32 = arith.constant 0 : i32
    %c0_i32_0 = arith.constant 0 : i32
    %c0_i32_1 = arith.constant 0 : i32
    return %c0_i32, %c0_i32_0 : i32, i32
  }
  func.func @transform_10(%arg0: i32) -> (i32, i32) {
    %c0_i32 = arith.constant 0 : i32
    %c0_i32_0 = arith.constant 0 : i32
    %c0_i32_1 = arith.constant 0 : i32
    return %c0_i32, %c0_i32_0 : i32, i32
  }
  func.func @transform_11(%arg0: i32) -> (i32, i32) {
    %c0_i32 = arith.constant 0 : i32
    %c0_i32_0 = arith.constant 0 : i32
    %c0_i32_1 = arith.constant 0 : i32
    return %c0_i32, %c0_i32_0 : i32, i32
  }
  func.func @transform_12(%arg0: i32) -> (i32, i32) {
    %c0_i32 = arith.constant 0 : i32
    %c0_i32_0 = arith.constant 0 : i32
    %c0_i32_1 = arith.constant 0 : i32
    return %c0_i32, %c0_i32_0 : i32, i32
  }
  func.func @transform_13(%arg0: i32) -> (i32, i32) {
    %c0_i32 = arith.constant 0 : i32
    %c0_i32_0 = arith.constant 0 : i32
    %c0_i32_1 = arith.constant 0 : i32
    return %c0_i32, %c0_i32_0 : i32, i32
  }
  func.func @transform_14(%arg0: i32) -> (i32, i32, i32) {
    %c0_i32 = arith.constant 0 : i32
    %c0_i32_0 = arith.constant 0 : i32
    %c0_i32_1 = arith.constant 0 : i32
    return %arg0, %c0_i32, %c0_i32_0 : i32, i32, i32
  }
}

</mosaic_0001>

<bundles_post_ra>
// kernel: tpu_custom_call.1
= control target key start
LH: loop header
LB: loop body
LE: loop exit
PB: predicated region body
PF: predicated region fallthrough
CT: control target
= control target key end

     0   :  { %s13177_s0 = inlined_call_operand.vmem [shape: f32[2,64,128], index: 0, kind: input, shape index: {}]   ;;  %s13178_s1 = inlined_call_operand.hbm [shape: f32[128,128], index: 1, kind: input, shape index: {}]   ;;  %s13179_s2 = inlined_call_operand.vmem [shape: f32[1,128], index: 2, kind: input, shape index: {}]   ;;  %s13180_s3 = inlined_call_operand.vmem [shape: f32[1,128], index: 3, kind: input, shape index: {}]   ;;  %s13181_s4 = inlined_call_operand.vmem [shape: f32[1,128], index: 4, kind: input, shape index: {}]   ;;  %s13182_s5 = inlined_call_operand.vmem [shape: f32[1,128], index: 5, kind: input, shape index: {}]   ;;  %s13183_s6 = inlined_call_operand.vmem [shape: f32[96,64], index: 6, kind: input, shape index: {}]   ;;  %s13184_s7 = inlined_call_operand.hbm [shape: f32[48,128], index: 7, kind: input, shape index: {}]   ;;  %s13185_s8 = inlined_call_operand.hbm [shape: f32[48,128], index: 8, kind: input, shape index: {}]   ;;  %s13186_s9 = inlined_call_operand.hbm [shape: f32[64,96], index: 9, kind: input, shape index: {}]   ;;  %s13187_s10 = inlined_call_operand.hbm [shape: bf16[128,256], index: 10, kind: input, shape index: {}]   ;;  %s13188_s11 = inlined_call_operand.vmem [shape: f32[1,256], index: 11, kind: input, shape index: {}]   ;;  %s13189_s12 = inlined_call_operand.hbm [shape: bf16[256,128], index: 12, kind: input, shape index: {}]   ;;  %s13190_s13 = inlined_call_operand.vmem [shape: f32[1,128], index: 13, kind: input, shape index: {}]   ;;  %s13191_s14 = inlined_call_operand.hbm [shape: f32[2,64,128], index: 14, kind: output, shape index: {}]  }
   0x1   :  { %13417 = sst [smem:[#allocation100_spill]] %s13184_s7 }
   0x2   :  { %19 = vsyncpa [#allocation3], 0 }
   0x3   :  { %20 = vsyncpa [#allocation6], 0 }
   0x4   :  { %21 = vsyncpa [#allocation9], 0 }
   0x5   :  { %22 = vsyncpa [#allocation12], 0 }
   0x6   :  { %23 = vsyncpa [#allocation4], 0 }
   0x7   :  { %25 = vsyncpa [#allocation4 + $0x1], 0  ;;  %s10175_s29 = smov 0   ;;  %s10177_s30 = smov 0  }
   0x8   :  { %s10179_s15 = smov 0   ;;  %s10181_s16 = smov 0  }
   0x9 LB: > { %13418 = sst [smem:[#allocation19_spill]] %s10072_s29  ;;  %s10196_s17 = sadd.s32 4294967295, %s10084_s16   ;;  %s10084_s16 = sphi %s10181_s16, %s13735_s16   ;;  %s10080_s15 = sphi %s10179_s15, %s13740_s15   ;;  %s10076_s30 = sphi %s10177_s30, %s13739_s30   ;;  %s10072_s29 = sphi %s10175_s29, %s13738_s29  }
   0xa   : > { %13419 = sst [smem:[#allocation20_spill]] %s10080_s15  ;;  %s7214_s18 = sadd.s32 4294967294, %s10084_s16  }
   0xb   : > { %13420 = sst [smem:[#allocation21_spill]] %s10084_s16  ;;  %s10200_s19 = sadd.s32 1, %s10084_s16  }
   0xc   : > { %13421 = sst [smem:[#allocation22_spill]] %s10200_s19  ;;  %s337_s20 = sadd.s32 1, %s10080_s15 }
   0xd   : > { %s334_s21 = ssub.s32 %s10084_s16, %s10200_s19  ;;  %p347_p0 = scmp.ne.s32.totalorder %s10080_s15, %s10076_s30 }
   0xe   : > { %p335_p1 = scmp.eq.s32.totalorder %s334_s21, 0  ;;  %p348_p2 = scmp.eq.s32.totalorder %s10196_s17, 1 }
   0xf   : > { %p353_p3 = scmp.ne.s32.totalorder %s10076_s30, %s10072_s29  ;;  %p354_p4 = scmp.eq.s32.totalorder %s7214_s18, 1 }
  0x10   : > { %s10211_s22 = scalar_select %p335_p1, %s10080_s15, %s337_s20  }
  0x11   : > { %p10213_p5 = por %p348_p2, %p347_p0  ;;  %p10217_p6 = por %p354_p4, %p353_p3 }
  0x12   : > { %13422 = sst [smem:[#allocation23_spill]] %s10211_s22  ;;  %p7215_p7 = scmp.ge.s32.totalorder %s10084_s16, 1 }
  0x13   : > { %s13424_s24 = scalar_select %p10217_p6, 1, 0 }
  0x14   : > { %p361_p8 = scmp.lt.s32.totalorder %s10084_s16, 3  ;;  %p13198_p9 = scmp.eq.s32.totalorder %s10196_s17, 0 }
  0x15   : > { %13425 = sst [smem:[#allocation24_spill]] %s13424_s24  ;;  %s10086_s26 = smov [#allocation5]  }
  0x16   : > { %p10224_p10 = pnand %p7215_p7, %p361_p8  ;;  %s401_s27 = sshll.u32 %s10086_s26, 4  ;;  %s402_s27 = int_to_ptr.vmem [resolvable:$true] %s401_s27 }
  0x17   : > { %s10087_s18 = smov [#allocation8]   ;;  %s10088_s21 = smov [#allocation2]  }
  0x18   : > { %p9635_p11 = pneg %p10224_p10  ;;  %s427_s20 = sshll.u32 %s10087_s18, 4  ;;  %s428_s20 = int_to_ptr.vmem [resolvable:$true] %s427_s20 }
  0x19   : > { %s373_s22 = sshll.u32 %s10088_s21, 4  ;;  %s9863_s19 = scalar_lea.vmem %s402_s27, 768  ;;  %s374_s22 = int_to_ptr.vmem [resolvable:$true] %s373_s22 }
  0x1a   : > { %p10232_p12 = pnand %p13198_p9, %p9635_p11  ;;  %p9864_p0 = scmp.ne.s32.totalorder %s402_s27, %s9863_s19 }
  0x1b   : > { %p9871_p3 = scmp.lt.s32.totalorder %s402_s27, %s402_s27  ;;  %p9872_p4 = scmp.lt.s32.totalorder %s9863_s19, %s9863_s19 }
  0x1c   : > { %p10238_p13 = pneg %p10232_p12 }
  0x1d   : > { %p9873_p7 = por %p9872_p4, %p9871_p3 }
  0x1e   : > { %p9866_p1 = pnand %p9864_p0, %p10238_p13 }
  0x20   : > { %p9867_p2 = pneg %p9866_p1 }
  0x22   : > { %p9874_p8 = pnand %p9873_p7, %p9867_p2 }
  0x24   : > { %9877 = shalt.err (!%p9874_p8)
}
  0x25   : > { %s10089_s26 = smov 128   ;;  %s10090_s18 = smov 8  }
  0x26   : > { %s13429_s7 = sld [smem:[#allocation100_spill]]  ;;  %s9889_s29 = scalar_lea.vmem %s428_s20, 1024 }
  0x27   : > { %p9890_p11 = scmp.ne.s32.totalorder %s428_s20, %s9889_s29  ;;  %p9897_p3 = scmp.lt.s32.totalorder %s428_s20, %s428_s20 }
  0x28   : > { %p9898_p2 = scmp.lt.s32.totalorder %s9889_s29, %s9889_s29 }
  0x29   : > { %p9892_p0 = pnand %p9890_p11, %p10238_p13 }
  0x2a   : > { %p9899_p4 = por %p9898_p2, %p9897_p3 }
  0x2b   : > { %p9893_p1 = pneg %p9892_p0 }
  0x2c   : > { %9641 = dma.hbm_to_vmem [thread:$0]  (!%p10232_p12), %s13429_s7, 768, %s402_s27, [#allocation6], %s10089_s26, %s10089_s26, %s10090_s18  }
  0x2d   : > { %p9900_p7 = pnand %p9899_p4, %p9893_p1 }
  0x2f   : > { %9903 = shalt.err (!%p9900_p7)
}
  0x30   : > { %9647 = dma.hbm_to_vmem [thread:$0]  (!%p10232_p12), %s13186_s9, 1024, %s428_s20, [#allocation9], %s10089_s26, %s10089_s26, %s10090_s18  }
  0x31   : > { %s9915_s24 = scalar_lea.vmem %s374_s22, 2048  ;;  %p9923_p9 = scmp.lt.s32.totalorder %s374_s22, %s374_s22 }
  0x32   : > { %p9916_p8 = scmp.ne.s32.totalorder %s374_s22, %s9915_s24  ;;  %p9924_p3 = scmp.lt.s32.totalorder %s9915_s24, %s9915_s24 }
  0x34   : > { %p9918_p11 = pnand %p9916_p8, %p10238_p13  ;;  %p9925_p1 = por %p9924_p3, %p9923_p9 }
  0x36   : > { %p9919_p0 = pneg %p9918_p11 }
  0x38   : > { %p9926_p2 = pnand %p9925_p1, %p9919_p0 }
  0x3a   : > { %9929 = shalt.err (!%p9926_p2)
}
  0x3b   : > { %9638 = dma.hbm_to_vmem [thread:$0]  (!%p10232_p12), %s13178_s1, 2048, %s374_s22, [#allocation3], %s10089_s26, %s10089_s26, %s10090_s18  }
  0x3c   : > { %s10091_s27 = smov [#allocation7]   ;;  %s10092_s21 = smov [#allocation10]  }
  0x3d   : > { %s414_s20 = sshll.u32 %s10091_s27, 4  ;;  %s440_s19 = sshll.u32 %s10092_s21, 4  ;;  %s415_s20 = int_to_ptr.vmem [resolvable:$true] %s414_s20  ;;  %s441_s19 = int_to_ptr.vmem [resolvable:$true] %s440_s19 }
  0x3e   : > { %s9941_s7 = scalar_lea.vmem %s415_s20, 768  ;;  %p9949_p8 = scmp.lt.s32.totalorder %s415_s20, %s415_s20 }
  0x3f   : > { %p9942_p4 = scmp.ne.s32.totalorder %s415_s20, %s9941_s7  ;;  %p9950_p11 = scmp.lt.s32.totalorder %s9941_s7, %s9941_s7 }
  0x41   : > { %p9944_p9 = pnand %p9942_p4, %p10238_p13  ;;  %p9951_p0 = por %p9950_p11, %p9949_p8 }
  0x43   : > { %p9945_p7 = pneg %p9944_p9 }
  0x45   : > { %p9952_p3 = pnand %p9951_p0, %p9945_p7 }
  0x47   : > { %9955 = shalt.err (!%p9952_p3)
}
  0x48   : > { %9644 = dma.hbm_to_vmem [thread:$0]  (!%p10232_p12), %s13185_s8, 768, %s415_s20, [#allocation6], %s10089_s26, %s10089_s26, %s10090_s18  }
  0x49   : > { %s9967_s29 = scalar_lea.vmem %s441_s19, 2048  ;;  %p9975_p9 = scmp.lt.s32.totalorder %s441_s19, %s441_s19 }
  0x4a   : > { %p9968_p1 = scmp.ne.s32.totalorder %s441_s19, %s9967_s29  ;;  %p9976_p8 = scmp.lt.s32.totalorder %s9967_s29, %s9967_s29 }
  0x4c   : > { %p9970_p2 = pnand %p9968_p1, %p10238_p13  ;;  %p9977_p7 = por %p9976_p8, %p9975_p9 }
  0x4e   : > { %p9971_p4 = pneg %p9970_p2 }
  0x50   : > { %p9978_p11 = pnand %p9977_p7, %p9971_p4 }
  0x52   : > { %9981 = shalt.err (!%p9978_p11)
}
  0x53   : > { %9650 = dma.hbm_to_vmem [thread:$0]  (!%p10232_p12), %s13187_s10, 2048, %s441_s19, [#allocation9], %s10089_s26, %s10089_s26, %s10090_s18  }
  0x54   : > { %s10093_s27 = smov [#allocation11]  }
  0x55   : > { %s456_s20 = sshll.u32 %s10093_s27, 4  ;;  %s457_s20 = int_to_ptr.vmem [resolvable:$true] %s456_s20 }
  0x56   : > { %s9993_s21 = scalar_lea.vmem %s457_s20, 2048  ;;  %p10001_p2 = scmp.lt.s32.totalorder %s457_s20, %s457_s20 }
  0x57   : > { %p9994_p0 = scmp.ne.s32.totalorder %s457_s20, %s9993_s21  ;;  %p10002_p4 = scmp.lt.s32.totalorder %s9993_s21, %s9993_s21 }
  0x59   : > { %p9996_p3 = pnand %p9994_p0, %p10238_p13  ;;  %p10003_p9 = por %p10002_p4, %p10001_p2 }
  0x5b   : > { %p9997_p1 = pneg %p9996_p3 }
  0x5d   : > { %p10004_p8 = pnand %p10003_p9, %p9997_p1 }
  0x5f   : > { %10007 = shalt.err (!%p10004_p8)
}
  0x60   : > { %s10094_s22 = smov 64   ;;  %s10095_s24 = smov 4  }
  0x61   : > { %9653 = dma.hbm_to_vmem [thread:$0]  (!%p10232_p12), %s13189_s12, 2048, %s457_s20, [#allocation12], %s10094_s22, %s10094_s22, %s10095_s24  }
  0x62   : > { %483 = sbr.rel (%p10224_p10) target bundleno = 2114 (0x842), region = 76 }
  0x67   : > { %p13430_p7 = scmp.eq.s32.totalorder %s10196_s17, 0 }
  0x69   : > { %10051 = dma.done.wait (%p13430_p7), [#allocation3], 2048   ;;  %p13431_p13 = pmov %p13430_p7 }
  0x6a   : > { %p13432_p11 = pmov %p13430_p7 }
  0x6b   : > { %10053 = vsyncadd (%p13431_p13), [#allocation3], 4294965248 }
  0x6c   : > { %10055 = dma.done.wait (%p13432_p11), [#allocation6], 1536   ;;  %p13433_p0 = pmov %p13430_p7 }
  0x6e   : > { %10057 = vsyncadd (%p13433_p0), [#allocation6], 4294965760  ;;  %p13434_p3 = pmov %p13433_p0 }
  0x6f   : > { %p13435_p12 = pmov %p13433_p0 }
  0x70   : > { %10059 = dma.done.wait (%p13434_p3), [#allocation9], 3072  }
  0x71   : > { %10061 = vsyncadd (%p13435_p12), [#allocation9], 4294964224  ;;  %p13436_p10 = pmov %p13433_p0 }
  0x72   : > { %p13437_p1 = pmov %p13433_p0 }
  0x73   : > { %10063 = dma.done.wait (%p13436_p10), [#allocation12], 2048  }
  0x74   : > { %10065 = vsyncadd (%p13437_p1), [#allocation12], 4294965248  ;;  %p549_p2 = scmp.lt.s32.totalorder %s10196_s17, 1  ;;  %v578_v0 = vld [vmem:[#allocation2 + $0x78] sm:$0xff]  ;;  %v577_v1 = vld [vmem:[#allocation2 + $0x70] sm:$0xff]  ;;  %vm2561_vm0 = vcmask 523264  }
  0x75   : > { %v576_v2 = vld [vmem:[#allocation2 + $0x68] sm:$0xff]  ;;  %v10321_v3 = vand.u32 4294901760, %v578_v0  ;;  %v10323_v4 = vand.u32 4294901760, %v577_v1  ;;  %v575_v6 = vld [vmem:[#allocation2 + $0x60] sm:$0xff]  ;;  %v574_v7 = vld [vmem:[#allocation2 + $0x58] sm:$0xff]  ;;  %vm3664_vm1 = vcmask 785408  }
  0x76   : > { %s10319_s15 = scalar_select %p549_p2, %s10196_s17, 1  ;;  %v10325_v5 = vand.u32 4294901760, %v576_v2  ;;  %v573_v8 = vld [vmem:[#allocation2 + $0x50] sm:$0xff]  ;;  %v10327_v9 = vand.u32 4294901760, %v575_v6  ;;  %v10329_v10 = vand.u32 4294901760, %v574_v7  ;;  %v572_v12 = vld [vmem:[#allocation2 + $0x48] sm:$0xff] }
  0x77   : > { %13438 = vst [vmem:[#allocation25_spill] sm:$0xff] %v10321_v3  ;;  %13439 = vst [vmem:[#allocation26_spill] sm:$0xff] %v10323_v4  ;;  %v10331_v11 = vand.u32 4294901760, %v573_v8  ;;  %v571_v13 = vld [vmem:[#allocation2 + $0x40] sm:$0xff]  ;;  %8133 = vmatprep.subr.mxu0 %v10321_v3  ;;  %v10335_v14 = vsub.f32 %v578_v0, %v10321_v3  ;;  %v10338_v15 = vsub.f32 %v577_v1, %v10323_v4  ;;  %v10340_v16 = vand.u32 4294901760, %v572_v12  ;;  %v570_v18 = vld [vmem:[#allocation2 + $0x38] sm:$0xff] }
  0x78   : > { %13440 = vst [vmem:[#allocation27_spill] sm:$0xff] %v10325_v5  ;;  %13441 = vst [vmem:[#allocation28_spill] sm:$0xff] %v10327_v9  ;;  %v10343_v17 = vsub.f32 %v576_v2, %v10325_v5  ;;  %8134 = vmatpush3.msra.mxu0 %v10321_v3  ;;  %v10347_v19 = vsub.f32 %v575_v6, %v10327_v9  ;;  %v10350_v20 = vsub.f32 %v574_v7, %v10329_v10  ;;  %s7275_s25 = sshll.u32 %s10319_s15, 6  ;;  %v569_v25 = vld [vmem:[#allocation2 + $0x30] sm:$0xff]  ;;  %v568_v35 = vld [vmem:[#allocation2 + $0x28] sm:$0xff]  ;;  %s7276_s19 = sshll.u32 %s10196_s17, 10 }
  0x79   : > { %13442 = vst [vmem:[#allocation29_spill] sm:$0xff] %v10329_v10  ;;  %13443 = vst [vmem:[#allocation30_spill] sm:$0xff] %v10331_v11  ;;  %8135 = vmatprep.subr.mxu0 %v10323_v4  ;;  %v10355_v21 = vand.u32 4294901760, %v10335_v14  ;;  %v10358_v22 = vand.u32 4294901760, %v10338_v15  ;;  %v10363_v24 = vand.u32 4294901760, %v571_v13  ;;  %v10369_v27 = vand.u32 4294901760, %v570_v18  ;;  %s10390_s18 = scalar_lea.vmem %s13177_s0, %s7275_s25  ;;  %s13129_s21 = scalar_lea.hbm %s13191_s14, %s7276_s19 }
  0x7a   : > { %13444 = vst [vmem:[#allocation31_spill] sm:$0xff] %v10335_v14  ;;  %13445 = vst [vmem:[#allocation32_spill] sm:$0xff] %v10338_v15  ;;  %v10361_v23 = vand.u32 4294901760, %v10343_v17  ;;  %8136 = vmatpush3.msra.mxu0 %v10323_v4  ;;  %v10367_v26 = vand.u32 4294901760, %v10347_v19  ;;  %v10372_v28 = vand.u32 4294901760, %v10350_v20  ;;  %v10375_v29 = vsub.f32 %v573_v8, %v10331_v11  ;;  %v567_v40 = vld [vmem:[#allocation2 + $0x20] sm:$0xff] }
  0x7b   : > { %13446 = vst [vmem:[#allocation33_spill] sm:$0xff] %v10340_v16  ;;  %13447 = vst [vmem:[#allocation34_spill] sm:$0xff] %v10343_v17  ;;  %8137 = vmatprep.subr.mxu0 %v10325_v5  ;;  %v744_v30 = vsub.f32 %v10335_v14, %v10355_v21  ;;  %v751_v31 = vsub.f32 %v10338_v15, %v10358_v22  ;;  %v10385_v33 = vsub.f32 %v572_v12, %v10340_v16  ;;  %v566_v43 = vld [vmem:[#allocation2 + $0x18] sm:$0xff]  ;;  %v10412_v44 = vld [vmem:[%s10390_s18] sm:$0xff]  ;;  %s546_s25 = sand.u32 1, %s10076_s30   ;;  %s10097_s24 = smov [#allocation13]  }
  0x7c   : > { %13448 = vst [vmem:[#allocation35_spill] sm:$0xff] %v10347_v19  ;;  %13449 = vst [vmem:[#allocation36_spill] sm:$0xff] %v10350_v20  ;;  %v758_v32 = vsub.f32 %v10343_v17, %v10361_v23  ;;  %8138 = vmatpush3.msra.mxu0 %v10325_v5  ;;  %v10393_v34 = vand.u32 4294901760, %v569_v25  ;;  %v765_v38 = vsub.f32 %v10347_v19, %v10367_v26  ;;  %v10403_v39 = vand.u32 4294901760, %v10375_v29  ;;  %v10427_v49 = vld [vmem:[%s10390_s18 + $0x8] sm:$0xff]  ;;  %v565_v54 = vld [vmem:[#allocation2 + $0x10] sm:$0xff] }
  0x7d   : > { %13450 = vst [vmem:[#allocation37_spill] sm:$0xff] %v10355_v21  ;;  %13451 = vst [vmem:[#allocation38_spill] sm:$0xff] %v10358_v22  ;;  %8139 = vmatprep.subr.mxu0 %v10327_v9  ;;  %v10396_v36 = vand.u32 4294901760, %v744_v30  ;;  %v10398_v37 = vand.u32 4294901760, %v751_v31  ;;  %v772_v41 = vsub.f32 %v10350_v20, %v10372_v28  ;;  %v10409_v42 = vsub.f32 %v571_v13, %v10363_v24  ;;  %v564_v62 = vld [vmem:[#allocation2 + $0x8] sm:$0xff]  ;;  %v563_v12 = vld [vmem:[#allocation2] sm:$0xff] }
  0x7e   : > { %13452 = vst [vmem:[#allocation39_spill] sm:$0xff] %v10361_v23  ;;  %13453 = vst [vmem:[#allocation40_spill] sm:$0xff] %v10363_v24  ;;  %8140 = vmatpush3.msra.mxu0 %v10327_v9  ;;  %v10416_v45 = vand.u32 4294901760, %v758_v32  ;;  %v10418_v46 = vand.u32 4294901760, %v568_v35  ;;  %v10421_v47 = vand.u32 4294901760, %v10385_v33  ;;  %v10424_v48 = vsub.f32 %v570_v18, %v10369_v27  ;;  %s7230_s28 = sshll.u32 %s546_s25, 6 }
  0x7f   : > { %13454 = vst [vmem:[#allocation41_spill] sm:$0xff] %v10367_v26  ;;  %13455 = vst [vmem:[#allocation42_spill] sm:$0xff] %v10369_v27  ;;  %8141 = vmatprep.subr.mxu0 %v10329_v10  ;;  %8177 = vmatprep.subr.mxu1 %v10396_v36  ;;  %v10431_v50 = vand.u32 4294901760, %v567_v40  ;;  %v10435_v51 = vand.u32 4294901760, %v765_v38  ;;  %v779_v52 = vsub.f32 %v10375_v29, %v10403_v39  ;;  %v10440_v53 = vand.u32 4294901760, %v10409_v42  ;;  %s13107_s26 = scalar_lea.vmem [#allocation13], %s7230_s28 }
  0x80   : > { %13456 = vst [vmem:[#allocation43_spill] sm:$0xff] %v10372_v28  ;;  %13457 = vst [vmem:[#allocation44_spill] sm:$0xff] %v10375_v29  ;;  %8142 = vmatpush3.msra.mxu0 %v10329_v10  ;;  %8178 = vmatpush3.msra.mxu1 %v10396_v36  ;;  %v10443_v55 = vsub.f32 %v569_v25, %v10393_v34  ;;  %v10447_v56 = vand.u32 4294901760, %v772_v41  ;;  %v10450_v57 = vand.u32 4294901760, %v10424_v48  ;;  %v10456_v59 = vand.u32 4294901760, %v566_v43  ;;  %s7092_s16 = sshll.u32 %s13107_s26, 4  ;;  %s13131_s16 = int_to_ptr.vmem [resolvable:$true] %s7092_s16 }
  0x81   : > { %13458 = vst [vmem:[#allocation45_spill] sm:$0xff] %v10385_v33  ;;  %13459 = vst [vmem:[#allocation46_spill] sm:$0xff] %v10393_v34  ;;  %8143 = vmatprep.subr.mxu0 %v10331_v11  ;;  %8179 = vmatprep.subr.mxu1 %v10398_v37  ;;  %v786_v58 = vsub.f32 %v10385_v33, %v10421_v47  ;;  %v10459_v60 = vsub.f32 %v568_v35, %v10418_v46  ;;  %v10462_v61 = vand.u32 4294901760, %v10412_v44  ;;  %s13137_s22 = scalar_lea.sflag [#allocation4], %s546_s25  ;;  %s10008_s17 = scalar_lea.vmem %s13131_s16, 1024 }
  0x82   : > { %13460 = vst [vmem:[#allocation47_spill] sm:$0xff] %v10396_v36  ;;  %13461 = vst [vmem:[#allocation48_spill] sm:$0xff] %v10398_v37  ;;  %8144 = vmatpush3.msra.mxu0 %v10331_v11  ;;  %8180 = vmatpush3.msra.mxu1 %v10398_v37  ;;  %v10467_v63 = vand.u32 4294901760, %v10427_v49  ;;  %v10471_v0 = vand.u32 4294901760, %v779_v52  ;;  %v793_v1 = vsub.f32 %v10409_v42, %v10440_v53  ;;  %v10476_v2 = vand.u32 4294901760, %v10443_v55  ;;  %v10594_v37 = vld [vmem:[%s10390_s18 + $0x10] sm:$0xff]  ;;  %p10009_p4 = scmp.ne.s32.totalorder %s13131_s16, %s10008_s17 }
  0x83   : > { %13462 = vst [vmem:[#allocation49_spill] sm:$0xff] %v10403_v39  ;;  %13463 = vst [vmem:[#allocation50_spill] sm:$0xff] %v10409_v42  ;;  %8145 = vmatprep.subr.mxu0 %v10340_v16  ;;  %8181 = vmatprep.subr.mxu1 %v10416_v45  ;;  %v10479_v6 = vsub.f32 %v567_v40, %v10431_v50  ;;  %v800_v7 = vsub.f32 %v10424_v48, %v10450_v57  ;;  %v10485_v8 = vand.u32 4294901760, %v565_v54  ;;  %s10012_s29 = sshll.u32 %s10097_s24, 4  ;;  %s10013_s29 = int_to_ptr.vmem [resolvable:$false] %s10012_s29 }
  0x84   : > { %13464 = vst [vmem:[#allocation51_spill] sm:$0xff] %v10412_v44  ;;  %13465 = vst [vmem:[#allocation52_spill] sm:$0xff] %v10416_v45  ;;  %8146 = vmatpush3.msra.mxu0 %v10340_v16  ;;  %8182 = vmatpush3.msra.mxu1 %v10416_v45  ;;  %v10489_v13 = vand.u32 4294901760, %v786_v58  ;;  %v10492_v18 = vand.u32 4294901760, %v10459_v60  ;;  %v10496_v25 = vsub.f32 %v10412_v44, %v10462_v61  ;;  %v10503_v31 = vand.u32 4294901760, %v564_v62  ;;  %p10010_p9 = pnand %p10009_p4, %p10213_p5  ;;  %s10014_s7 = scalar_lea.vmem %s10013_s29, 2048 }
  0x85   : > { %13466 = vst [vmem:[#allocation53_spill] sm:$0xff] %v10418_v46  ;;  %13467 = vst [vmem:[#allocation54_spill] sm:$0xff] %v10421_v47  ;;  %8147 = vmatprep.subr.mxu0 %v10363_v24  ;;  %8183 = vmatprep.subr.mxu1 %v10435_v51  ;;  %v10499_v30 = vsub.f32 %v566_v43, %v10456_v59  ;;  %v10507_v32 = vsub.f32 %v10427_v49, %v10467_v63  ;;  %v10511_v35 = vand.u32 4294901760, %v793_v1  ;;  %p10015_p7 = scmp.lt.s32.totalorder %s13131_s16, %s10013_s29  ;;  %p10016_p13 = scmp.lt.s32.totalorder %s10014_s7, %s10008_s17 }
  0x86   : > { %13468 = vst [vmem:[#allocation55_spill] sm:$0xff] %v10424_v48  ;;  %13469 = vst [vmem:[#allocation56_spill] sm:$0xff] %v10427_v49  ;;  %8148 = vmatpush3.msra.mxu0 %v10363_v24  ;;  %8184 = vmatpush3.msra.mxu1 %v10435_v51  ;;  %v807_v38 = vsub.f32 %v10443_v55, %v10476_v2  ;;  %v10516_v40 = vand.u32 4294901760, %v10479_v6  ;;  %v10520_v41 = vand.u32 4294901760, %v800_v7  ;;  %v10522_v43 = vand.u32 4294901760, %v563_v12  ;;  %p10011_p8 = pneg %p10010_p9 }
  0x87   : > { %13470 = vst [vmem:[#allocation57_spill] sm:$0xff] %v10431_v50  ;;  %13471 = vst [vmem:[#allocation58_spill] sm:$0xff] %v10435_v51  ;;  %8149 = vmatprep.subr.mxu0 %v10369_v27  ;;  %8185 = vmatprep.subr.mxu1 %v10447_v56  ;;  %v10525_v52 = vsub.f32 %v565_v54, %v10485_v8  ;;  %v814_v58 = vsub.f32 %v10459_v60, %v10492_v18  ;;  %v10610_v36 = vand.u32 4294901760, %v10594_v37  ;;  %p10017_p11 = por %p10016_p13, %p10015_p7 }
  0x88   : > { %13472 = vst [vmem:[#allocation59_spill] sm:$0xff] %v10440_v53  ;;  %13473 = vst [vmem:[#allocation60_spill] sm:$0xff] %v10443_v55  ;;  %8150 = vmatpush3.msra.mxu0 %v10369_v27  ;;  %8186 = vmatpush3.msra.mxu1 %v10447_v56  ;;  %v10539_v54 = vsub.f32 %v564_v62, %v10503_v31  ;;  %v821_v1 = vsub.f32 %v10479_v6, %v10516_v40 }
  0x89   : > { %13474 = vst [vmem:[#allocation61_spill] sm:$0xff] %v10447_v56  ;;  %13475 = vst [vmem:[#allocation62_spill] sm:$0xff] %v10450_v57  ;;  %8151 = vmatprep.subr.mxu0 %v10393_v34  ;;  %8187 = vmatprep.subr.mxu1 %v10471_v0  ;;  %v10533_v56 = vand.u32 4294901760, %v10499_v30  ;;  %v10553_v7 = vsub.f32 %v563_v12, %v10522_v43  ;;  %v10557_v62 = vand.u32 4294901760, %v814_v58  ;;  %v13499_v12 = vand.u32 4294901760, %v10507_v32  ;;  %p10018_p0 = pnand %p10017_p11, %p10011_p8 }
  0x8a   : > { %13476 = vst [vmem:[#allocation63_spill] sm:$0xff] %v10456_v59  ;;  %13477 = vst [vmem:[#allocation64_spill] sm:$0xff] %v10459_v60  ;;  %8152 = vmatpush3.msra.mxu0 %v10393_v34  ;;  %8188 = vmatpush3.msra.mxu1 %v10471_v0  ;;  %v10570_v49 = vand.u32 4294901760, %v10539_v54  ;;  %v10574_v58 = vand.u32 4294901760, %v821_v1 }
  0x8b   : > { %13478 = vst [vmem:[#allocation65_spill] sm:$0xff] %v10467_v63  ;;  %13479 = vst [vmem:[#allocation66_spill] sm:$0xff] %v10471_v0  ;;  %8153 = vmatprep.subr.mxu0 %v10418_v46  ;;  %8189 = vmatprep.subr.mxu1 %v10489_v13  ;;  %v10543_v0 = vand.u32 4294901760, %v807_v38  ;;  %v13498_v38 = vand.u32 4294901760, %v10496_v25  ;;  %v828_v45 = vsub.f32 %v10499_v30, %v10533_v56 }
  0x8c   : > { %13480 = vst [vmem:[#allocation67_spill] sm:$0xff] %v10476_v2  ;;  %13481 = vst [vmem:[#allocation68_spill] sm:$0xff] %v10479_v6  ;;  %8154 = vmatpush3.msra.mxu0 %v10418_v46  ;;  %8190 = vmatpush3.msra.mxu1 %v10489_v13 }
  0x8d   : > { %13482 = vst [vmem:[#allocation69_spill] sm:$0xff] %v10485_v8  ;;  %13483 = vst [vmem:[#allocation70_spill] sm:$0xff] %v10489_v13  ;;  %8155 = vmatprep.subr.mxu0 %v10431_v50  ;;  %8191 = vmatprep.subr.mxu1 %v10511_v35  ;;  %v10550_v13 = vand.u32 4294901760, %v10525_v52  ;;  %v663_v51 = vsub.f32 %v10496_v25, %v13498_v38  ;;  %v10585_v44 = vand.u32 4294901760, %v828_v45 }
  0x8e   : > { %13484 = vst [vmem:[#allocation71_spill] sm:$0xff] %v10492_v18  ;;  %13485 = vst [vmem:[#allocation72_spill] sm:$0xff] %v10499_v30  ;;  %8156 = vmatpush3.msra.mxu0 %v10431_v50  ;;  %8192 = vmatpush3.msra.mxu1 %v10511_v35 }
  0x8f   : > { %13486 = vst [vmem:[#allocation73_spill] sm:$0xff] %v10503_v31  ;;  %13487 = vst [vmem:[#allocation74_spill] sm:$0xff] %v10511_v35  ;;  %8157 = vmatprep.subr.mxu0 %v10456_v59  ;;  %8193 = vmatprep.subr.mxu1 %v10520_v41  ;;  %v673_v35 = vsub.f32 %v10507_v32, %v13499_v12  ;;  %v835_v38 = vsub.f32 %v10525_v52, %v10550_v13  ;;  %v664_v12 = vand.u32 4294901760, %v663_v51 }
  0x90   : > { %13488 = vst [vmem:[#allocation75_spill] sm:$0xff] %v10516_v40  ;;  %13489 = vst [vmem:[#allocation76_spill] sm:$0xff] %v10520_v41  ;;  %8158 = vmatpush3.msra.mxu0 %v10456_v59  ;;  %8194 = vmatpush3.msra.mxu1 %v10520_v41  ;;  %v10581_v41 = vand.u32 4294901760, %v10553_v7 }
  0x91   : > { %13490 = vst [vmem:[#allocation77_spill] sm:$0xff] %v10522_v43  ;;  %13491 = vst [vmem:[#allocation78_spill] sm:$0xff] %v10525_v52  ;;  %8159 = vmatprep.subr.mxu0 %v10485_v8  ;;  %8195 = vmatprep.subr.mxu1 %v10543_v0  ;;  %v674_v1 = vand.u32 4294901760, %v673_v35  ;;  %v10598_v45 = vand.u32 4294901760, %v835_v38  ;;  %v10603_v35 = vld [vmem:[%s10390_s18 + $0x18] sm:$0xff] }
  0x92   : > { %13492 = vst [vmem:[#allocation79_spill] sm:$0xff] %v10533_v56  ;;  %13493 = vst [vmem:[#allocation80_spill] sm:$0xff] %v10539_v54  ;;  %8160 = vmatpush3.msra.mxu0 %v10485_v8  ;;  %8196 = vmatpush3.msra.mxu1 %v10543_v0  ;;  %v849_v51 = vsub.f32 %v10553_v7, %v10581_v41  ;;  %v10615_v38 = vand.u32 4294901760, %v10603_v35 }
  0x93   : > { %13494 = vst [vmem:[#allocation81_spill] sm:$0xff] %v10543_v0  ;;  %13495 = vst [vmem:[#allocation82_spill] sm:$0xff] %v10550_v13  ;;  %8161 = vmatprep.subr.mxu0 %v10503_v31  ;;  %8197 = vmatprep.subr.mxu1 %v10557_v62  ;;  %v842_v0 = vsub.f32 %v10539_v54, %v10570_v49 }
  0x94   : > { %13496 = vst [vmem:[#allocation83_spill] sm:$0xff] %v10553_v7  ;;  %13497 = vst [vmem:[#allocation84_spill] sm:$0xff] %v10557_v62  ;;  %8162 = vmatpush3.msra.mxu0 %v10503_v31  ;;  %8198 = vmatpush3.msra.mxu1 %v10557_v62 }
  0x95   : > { %13500 = vst [vmem:[#allocation85_spill] sm:$0xff] %v10570_v49  ;;  %13501 = vst [vmem:[#allocation86_spill] sm:$0xff] %v10574_v58  ;;  %8163 = vmatprep.subr.mxu0 %v10522_v43  ;;  %8199 = vmatprep.subr.mxu1 %v10574_v58  ;;  %v10607_v62 = vand.u32 4294901760, %v842_v0  ;;  %v10627_v0 = vld [vmem:[%s10390_s18 + $0x28] sm:$0xff] }
  0x96   : > { %13502 = vst [vmem:[#allocation87_spill] sm:$0xff] %v10581_v41  ;;  %13503 = vst [vmem:[#allocation88_spill] sm:$0xff] %v10585_v44  ;;  %8164 = vmatpush3.msra.mxu0 %v10522_v43  ;;  %8200 = vmatpush3.msra.mxu1 %v10574_v58  ;;  %v10622_v58 = vld [vmem:[%s10390_s18 + $0x20] sm:$0xff] }
  0x97   : > { %13504 = vst [vmem:[#allocation89_spill] sm:$0xff] %v10594_v37  ;;  %13505 = vst [vmem:[#allocation90_spill] sm:$0xff] %v10598_v45  ;;  %8165 = vmatprep.mubr.f32.mxu0 %v664_v12  ;;  %8201 = vmatprep.subr.mxu1 %v10585_v44  ;;  %v10619_v12 = vand.u32 4294901760, %v849_v51  ;;  %v10639_v51 = vsub.f32 %v10603_v35, %v10615_v38 }
  0x98   : > { %13506 = vst [vmem:[#allocation91_spill] sm:$0xff] %v10603_v35  ;;  %8221 = vmatprep.subr.mxu0 %v10335_v14  ;;  %8166 = vmatmul.mubr.f32.vlgmr.msra.gmra.mxu0 %v674_v1  ;;  %13507 = vst [vmem:[#allocation92_spill] sm:$0xff] %v10607_v62  ;;  %v10633_v1 = vsub.f32 %v10594_v37, %v10610_v36 }
  0x99   : > { %8202 = vmatpush3.msra.mxu1 %v10585_v44  ;;  %8222 = vmatpush3.msra.mxu0 %v10335_v14  ;;  %13508 = vst [vmem:[#allocation93_spill] sm:$0xff] %v10619_v12  ;;  %13509 = vst [vmem:[#allocation94_spill] sm:$0xff] %v10622_v58 }
  0x9a   : > { %8203 = vmatprep.subr.mxu1 %v10598_v45  ;;  %8223 = vmatprep.subr.mxu0 %v10338_v15  ;;  %13510 = vst [vmem:[#allocation95_spill] sm:$0xff] %v10627_v0 }
  0x9b   : > { %8204 = vmatpush3.msra.mxu1 %v10598_v45  ;;  %8224 = vmatpush3.msra.mxu0 %v10338_v15  ;;  %v10642_v15 = vand.u32 4294901760, %v10622_v58  ;;  %v10647_v45 = vand.u32 4294901760, %v10627_v0 }
  0x9c   : > { %8205 = vmatprep.subr.mxu1 %v10607_v62  ;;  %8225 = vmatprep.subr.mxu0 %v10343_v17 }
  0x9d   : > { %8206 = vmatpush3.msra.mxu1 %v10607_v62  ;;  %8226 = vmatpush3.msra.mxu0 %v10343_v17  ;;  %v10655_v62 = vld [vmem:[%s10390_s18 + $0x30] sm:$0xff]  ;;  %v10662_v44 = vsub.f32 %v10622_v58, %v10642_v15  ;;  %v10671_v17 = vsub.f32 %v10627_v0, %v10647_v45  ;;  %v13513_v0 = vand.u32 4294901760, %v10639_v51 }
  0x9e   : > { %8207 = vmatprep.subr.mxu1 %v10619_v12  ;;  %8227 = vmatprep.subr.mxu0 %v10347_v19  ;;  %v10676_v14 = vand.u32 4294901760, %v10655_v62 }
  0x9f   : > { %8208 = vmatpush3.msra.mxu1 %v10619_v12  ;;  %8209 = vmatprep.mubr.f32.mxu1 %v10462_v61  ;;  %v10665_v12 = vld [vmem:[%s10390_s18 + $0x38] sm:$0xff]  ;;  %v693_v35 = vsub.f32 %v10639_v51, %v13513_v0 }
  0xa0   : > { %8228 = vmatpush3.msra.mxu0 %v10347_v19  ;;  %8210 = vmatmul.mubr.f32.vlgmr.msra.gmra.mxu1 %v10467_v63  ;;  %13511 = vst [vmem:[#allocation96_spill] sm:$0xff] %v10665_v12  ;;  %v13512_v19 = vand.u32 4294901760, %v10633_v1  ;;  %v10684_v58 = vand.u32 4294901760, %v10665_v12 }
  0xa1   : > { %8229 = vmatprep.subr.mxu0 %v10350_v20  ;;  %8265 = vmatprep.subr.mxu1 %v10321_v3 }
  0xa2   : > { %8230 = vmatpush3.msra.mxu0 %v10350_v20  ;;  %8266 = vmatpush3.msra.mxu1 %v10321_v3  ;;  %v683_v20 = vsub.f32 %v10633_v1, %v13512_v19  ;;  %v10699_v19 = vsub.f32 %v10655_v62, %v10676_v14  ;;  %v10705_v37 = vsub.f32 %v10665_v12, %v10684_v58 }
  0xa3   : > { %8231 = vmatprep.subr.mxu0 %v10375_v29  ;;  %8267 = vmatprep.subr.mxu1 %v10323_v4 }
  0xa4   : > { %8232 = vmatpush3.msra.mxu0 %v10375_v29  ;;  %8268 = vmatpush3.msra.mxu1 %v10323_v4  ;;  %v684_v0 = vand.u32 4294901760, %v683_v20  ;;  %v694_v29 = vand.u32 4294901760, %v693_v35  ;;  %v722_v12 = vand.u32 4294901760, %v10699_v19  ;;  %v732_v35 = vand.u32 4294901760, %v10705_v37 }
  0xa5   : > { %8233 = vmatprep.subr.mxu0 %v10385_v33  ;;  %8269 = vmatprep.subr.mxu1 %v10325_v5 }
  0xa6   : > { %8234 = vmatpush3.msra.mxu0 %v10385_v33  ;;  %8270 = vmatpush3.msra.mxu1 %v10325_v5  ;;  %v13514_v33 = vand.u32 4294901760, %v10662_v44 }
  0xa7   : > { %8235 = vmatprep.subr.mxu0 %v10409_v42  ;;  %8271 = vmatprep.subr.mxu1 %v10327_v9 }
  0xa8   : > { %8236 = vmatpush3.msra.mxu0 %v10409_v42  ;;  %8272 = vmatpush3.msra.mxu1 %v10327_v9  ;;  %v703_v63 = vsub.f32 %v10662_v44, %v13514_v33  ;;  %v13515_v42 = vand.u32 4294901760, %v10671_v17 }
  0xa9   : > { %8237 = vmatprep.subr.mxu0 %v10424_v48  ;;  %8273 = vmatprep.subr.mxu1 %v10329_v10 }
  0xaa   : > { %8238 = vmatpush3.msra.mxu0 %v10424_v48  ;;  %8274 = vmatpush3.msra.mxu1 %v10329_v10  ;;  %v713_v20 = vsub.f32 %v10671_v17, %v13515_v42  ;;  %v704_v33 = vand.u32 4294901760, %v703_v63 }
  0xab   : > { %8239 = vmatprep.subr.mxu0 %v10443_v55  ;;  %8275 = vmatprep.subr.mxu1 %v10331_v11 }
  0xac   : > { %8168 = vmatprep.mubr.f32.mxu0 %v684_v0  ;;  %8240 = vmatpush3.msra.mxu0 %v10443_v55  ;;  %v714_v42 = vand.u32 4294901760, %v713_v20  ;;  %v723_v0 = vsub.f32 %v10699_v19, %v722_v12 }
  0xad   : > { %8276 = vmatpush3.msra.mxu1 %v10331_v11  ;;  %8169 = vmatmul.mubr.f32.gmra.mxu0 %v694_v29  ;;  %v733_v29 = vsub.f32 %v10705_v37, %v732_v35 }
  0xae   : > { %8241 = vmatprep.subr.mxu0 %v10459_v60  ;;  %8277 = vmatprep.subr.mxu1 %v10340_v16  ;;  %v724_v63 = vand.u32 4294901760, %v723_v0  ;;  %v13527_v0 = vld [vmem:[#allocation52_spill] sm:$0xff] }
  0xaf   : > { %8242 = vmatpush3.msra.mxu0 %v10459_v60  ;;  %8278 = vmatpush3.msra.mxu1 %v10340_v16  ;;  %v734_v20 = vand.u32 4294901760, %v733_v29 }
  0xb0   : > { %8243 = vmatprep.subr.mxu0 %v10479_v6  ;;  %8279 = vmatprep.subr.mxu1 %v10363_v24 }
  0xb1   : > { %8171 = vmatprep.mubr.f32.mxu0 %v704_v33  ;;  %8244 = vmatpush3.msra.mxu0 %v10479_v6  ;;  %v13516_v33 = vand.u32 4294901760, %v10496_v25 }
  0xb2   : > { %8280 = vmatpush3.msra.mxu1 %v10363_v24  ;;  %8172 = vmatmul.mubr.f32.gmra.mxu0 %v714_v42  ;;  %v13517_v42 = vand.u32 4294901760, %v10507_v32 }
  0xb3   : > { %8212 = vmatprep.mubr.f32.mxu1 %v10610_v36  ;;  %8245 = vmatprep.subr.mxu0 %v10499_v30 }
  0xb4   : > { %8281 = vmatprep.subr.mxu1 %v10369_v27  ;;  %8213 = vmatmul.mubr.f32.gmra.mxu1 %v10615_v38 }
  0xb5   : > { %8246 = vmatpush3.msra.mxu0 %v10499_v30  ;;  %8282 = vmatpush3.msra.mxu1 %v10369_v27 }
  0xb6   : > { %8247 = vmatprep.subr.mxu0 %v10525_v52  ;;  %8283 = vmatprep.subr.mxu1 %v10393_v34 }
  0xb7   : > { %8174 = vmatprep.mubr.f32.mxu0 %v724_v63  ;;  %8248 = vmatpush3.msra.mxu0 %v10525_v52  ;;  %v13530_v63 = vld [vmem:[#allocation61_spill] sm:$0xff] }
  0xb8   : > { %8284 = vmatpush3.msra.mxu1 %v10393_v34  ;;  %8175 = vmatmul.mubr.f32.gmra.mxu0 %v734_v20 }
  0xb9   : > { %8215 = vmatprep.mubr.f32.mxu1 %v10642_v15  ;;  %8249 = vmatprep.subr.mxu0 %v10539_v54 }
  0xba   : > { %8285 = vmatprep.subr.mxu1 %v10418_v46  ;;  %8216 = vmatmul.mubr.f32.gmra.mxu1 %v10647_v45 }
  0xbb   : > { %8250 = vmatpush3.msra.mxu0 %v10539_v54  ;;  %8286 = vmatpush3.msra.mxu1 %v10418_v46 }
  0xbc   : > { %8251 = vmatprep.subr.mxu0 %v10553_v7  ;;  %8287 = vmatprep.subr.mxu1 %v10431_v50 }
  0xbd   : > { %8252 = vmatpush3.msra.mxu0 %v10553_v7  ;;  %8253 = vmatprep.mubr.f32.mxu0 %v10496_v25  ;;  %v13518_v25 = vand.u32 4294901760, %v10633_v1 }
  0xbe   : > { %8288 = vmatpush3.msra.mxu1 %v10431_v50  ;;  %8218 = vmatprep.mubr.f32.mxu1 %v10676_v14 }
  0xbf   : > { %8254 = vmatmul.mubr.f32.vlgmr.msra.gmra.mxu0 %v10507_v32  ;;  %8289 = vmatprep.subr.mxu1 %v10456_v59  ;;  %v13519_v32 = vand.u32 4294901760, %v10639_v51 }
  0xc0   : > { %8309 = vmatprep.subr.mxu0 %v10355_v21  ;;  %8219 = vmatmul.mubr.f32.gmra.mxu1 %v10684_v58 }
  0xc1   : > { %8290 = vmatpush3.msra.mxu1 %v10456_v59  ;;  %8310 = vmatpush3.msra.mxu0 %v10355_v21 }
  0xc2   : > { %8291 = vmatprep.subr.mxu1 %v10485_v8  ;;  %8311 = vmatprep.subr.mxu0 %v10358_v22 }
  0xc3   : > { %8256 = vmatprep.mubr.f32.mxu0 %v10633_v1  ;;  %8292 = vmatpush3.msra.mxu1 %v10485_v8  ;;  %v13520_v1 = vand.u32 4294901760, %v10662_v44 }
  0xc4   : > { %8312 = vmatpush3.msra.mxu0 %v10358_v22  ;;  %8293 = vmatprep.subr.mxu1 %v10503_v31 }
  0xc5   : > { %8257 = vmatmul.mubr.f32.gmra.mxu0 %v10639_v51  ;;  %8313 = vmatprep.subr.mxu0 %v10361_v23  ;;  %v13521_v51 = vand.u32 4294901760, %v10671_v17 }
  0xc6   : > { %8294 = vmatpush3.msra.mxu1 %v10503_v31  ;;  %8314 = vmatpush3.msra.mxu0 %v10361_v23 }
  0xc7   : > { %8295 = vmatprep.subr.mxu1 %v10522_v43  ;;  %8315 = vmatprep.subr.mxu0 %v10367_v26 }
  0xc8   : > { %8259 = vmatprep.mubr.f32.mxu0 %v10662_v44  ;;  %8296 = vmatpush3.msra.mxu1 %v10522_v43  ;;  %v13524_v44 = vld [vmem:[#allocation48_spill] sm:$0xff] }
  0xc9   : > { %8297 = vmatprep.mubr.f32.mxu1 %v13516_v33  ;;  %8316 = vmatpush3.msra.mxu0 %v10367_v26 }
  0xca   : > { %8260 = vmatmul.mubr.f32.gmra.mxu0 %v10671_v17  ;;  %8298 = vmatmul.mubr.f32.vlgmr.msra.gmra.mxu1 %v13517_v42  ;;  %v13522_v17 = vld [vmem:[#allocation65_spill] sm:$0xff] }
  0xcb   : > { %8317 = vmatprep.subr.mxu0 %v10372_v28  ;;  %8353 = vmatprep.subr.mxu1 %v10321_v3 }
  0xcc   : > { %8318 = vmatpush3.msra.mxu0 %v10372_v28  ;;  %8354 = vmatpush3.msra.mxu1 %v10321_v3 }
  0xcd   : > { %8319 = vmatprep.subr.mxu0 %v10403_v39  ;;  %8355 = vmatprep.subr.mxu1 %v10323_v4 }
  0xce   : > { %8262 = vmatprep.mubr.f32.mxu0 %v10699_v19  ;;  %8300 = vmatprep.mubr.f32.mxu1 %v13518_v25  ;;  %v13526_v19 = vld [vmem:[#allocation56_spill] sm:$0xff] }
  0xcf   : > { %8320 = vmatpush3.msra.mxu0 %v10403_v39  ;;  %8356 = vmatpush3.msra.mxu1 %v10323_v4 }
  0xd0   : > { %8263 = vmatmul.mubr.f32.gmra.mxu0 %v10705_v37  ;;  %8301 = vmatmul.mubr.f32.gmra.mxu1 %v13519_v32  ;;  %v13523_v37 = vld [vmem:[#allocation47_spill] sm:$0xff] }
  0xd1   : > { %8321 = vmatprep.subr.mxu0 %v10421_v47  ;;  %8357 = vmatprep.subr.mxu1 %v10325_v5 }
  0xd2   : > { %8322 = vmatpush3.msra.mxu0 %v10421_v47  ;;  %8358 = vmatpush3.msra.mxu1 %v10325_v5 }
  0xd3   : > { %8323 = vmatprep.subr.mxu0 %v10440_v53  ;;  %8359 = vmatprep.subr.mxu1 %v10327_v9 }
  0xd4   : > { %8303 = vmatprep.mubr.f32.mxu1 %v13520_v1  ;;  %8324 = vmatpush3.msra.mxu0 %v10440_v53 }
  0xd5   : > { %8360 = vmatpush3.msra.mxu1 %v10327_v9  ;;  %8325 = vmatprep.subr.mxu0 %v10450_v57 }
  0xd6   : > { %8304 = vmatmul.mubr.f32.gmra.mxu1 %v13521_v51  ;;  %8361 = vmatprep.subr.mxu1 %v10329_v10  ;;  %v13535_v51 = vld [vmem:[#allocation81_spill] sm:$0xff] }
  0xd7   : > { %8326 = vmatpush3.msra.mxu0 %v10450_v57  ;;  %8362 = vmatpush3.msra.mxu1 %v10329_v10 }
  0xd8   : > { %8327 = vmatprep.subr.mxu0 %v10476_v2  ;;  %8363 = vmatprep.subr.mxu1 %v10331_v11 }
  0xd9   : > { %8306 = vmatprep.mubr.f32.mxu1 %v722_v12  ;;  %8328 = vmatpush3.msra.mxu0 %v10476_v2 }
  0xda   : > { %8364 = vmatpush3.msra.mxu1 %v10331_v11  ;;  %8329 = vmatprep.subr.mxu0 %v10492_v18 }
  0xdb   : > { %8307 = vmatmul.mubr.f32.gmra.mxu1 %v732_v35  ;;  %8365 = vmatprep.subr.mxu1 %v10340_v16  ;;  %v1522_v35 = vmul.f32 %v13526_v19, %v13526_v19  ;;  %v13537_v19 = vld [vmem:[#allocation89_spill] sm:$0xff] }
  0xdc   : > { %8330 = vmatpush3.msra.mxu0 %v10492_v18  ;;  %8366 = vmatpush3.msra.mxu1 %v10340_v16 }
  0xdd   : > { %8331 = vmatprep.subr.mxu0 %v10516_v40  ;;  %8367 = vmatprep.subr.mxu1 %v10363_v24 }
  0xde   : > { %8332 = vmatpush3.msra.mxu0 %v10516_v40  ;;  %8368 = vmatpush3.msra.mxu1 %v10363_v24 }
  0xdf   : > { %8333 = vmatprep.subr.mxu0 %v10533_v56  ;;  %8369 = vmatprep.subr.mxu1 %v10369_v27 }
  0xe0   : > { %8334 = vmatpush3.msra.mxu0 %v10533_v56  ;;  %8370 = vmatpush3.msra.mxu1 %v10369_v27 }
  0xe1   : > { %8335 = vmatprep.subr.mxu0 %v10550_v13  ;;  %8371 = vmatprep.subr.mxu1 %v10393_v34 }
  0xe2   : > { %8336 = vmatpush3.msra.mxu0 %v10550_v13  ;;  %8372 = vmatpush3.msra.mxu1 %v10393_v34 }
  0xe3   : > { %8337 = vmatprep.subr.mxu0 %v10570_v49  ;;  %8373 = vmatprep.subr.mxu1 %v10418_v46 }
  0xe4   : > { %8338 = vmatpush3.msra.mxu0 %v10570_v49  ;;  %8374 = vmatpush3.msra.mxu1 %v10418_v46 }
  0xe5   : > { %8339 = vmatprep.subr.mxu0 %v10581_v41  ;;  %8375 = vmatprep.subr.mxu1 %v10431_v50 }
  0xe6   : > { %8340 = vmatpush3.msra.mxu0 %v10581_v41  ;;  %8341 = vmatprep.mubr.f32.mxu0 %v10462_v61 }
  0xe7   : > { %8376 = vmatpush3.msra.mxu1 %v10431_v50  ;;  %8342 = vmatmul.mubr.f32.vlgmr.msra.gmra.mxu0 %v13522_v17 }
  0xe8   : > { %8377 = vmatprep.subr.mxu1 %v10456_v59  ;;  %8397 = vmatprep.subr.mxu0 %v10321_v3 }
  0xe9   : > { %8378 = vmatpush3.msra.mxu1 %v10456_v59  ;;  %8398 = vmatpush3.msra.mxu0 %v10321_v3 }
  0xea   : > { %8379 = vmatprep.subr.mxu1 %v10485_v8  ;;  %8399 = vmatprep.subr.mxu0 %v10323_v4 }
  0xeb   : > { %8344 = vmatprep.mubr.f32.mxu0 %v10610_v36  ;;  %8380 = vmatpush3.msra.mxu1 %v10485_v8 }
  0xec   : > { %8400 = vmatpush3.msra.mxu0 %v10323_v4  ;;  %8381 = vmatprep.subr.mxu1 %v10503_v31 }
  0xed   : > { %8345 = vmatmul.mubr.f32.gmra.mxu0 %v10615_v38  ;;  %8401 = vmatprep.subr.mxu0 %v10325_v5 }
  0xee   : > { %8382 = vmatpush3.msra.mxu1 %v10503_v31  ;;  %8402 = vmatpush3.msra.mxu0 %v10325_v5 }
  0xef   : > { %8383 = vmatprep.subr.mxu1 %v10522_v43  ;;  %8403 = vmatprep.subr.mxu0 %v10327_v9 }
  0xf0   : > { %8347 = vmatprep.mubr.f32.mxu0 %v10642_v15  ;;  %8384 = vmatpush3.msra.mxu1 %v10522_v43 }
  0xf1   : > { %8385 = vmatprep.mubr.f32.mxu1 %v10462_v61  ;;  %8404 = vmatpush3.msra.mxu0 %v10327_v9  ;;  %v13525_v61 = vld [vmem:[#allocation51_spill] sm:$0xff] }
  0xf2   : > { %8348 = vmatmul.mubr.f32.gmra.mxu0 %v10647_v45  ;;  %8386 = vmatmul.mubr.f32.vlgmr.msra.gmra.mxu1 %v13522_v17  ;;  %v1521_v12 = vmul.f32 %v13525_v61, %v13525_v61  ;;  %v13536_v17 = vld [vmem:[#allocation84_spill] sm:$0xff] }
  0xf3   : > { %8405 = vmatprep.subr.mxu0 %v10329_v10  ;;  %8441 = vmatprep.subr.mxu1 %v13523_v37 }
  0xf4   : > { %8406 = vmatpush3.msra.mxu0 %v10329_v10  ;;  %8442 = vmatpush3.msra.mxu1 %v13523_v37  ;;  %v10893_v29 = vand.u32 4294901760, %v1521_v12  ;;  %v13556_v37 = vld [vmem:[#allocation50_spill] sm:$0xff] }
  0xf5   : > { %8407 = vmatprep.subr.mxu0 %v10331_v11  ;;  %8443 = vmatprep.subr.mxu1 %v13524_v44 }
  0xf6   : > { %8350 = vmatprep.mubr.f32.mxu0 %v10676_v14  ;;  %8388 = vmatprep.mubr.f32.mxu1 %v10610_v36  ;;  %v13528_v36 = vld [vmem:[#allocation58_spill] sm:$0xff]  ;;  %v10906_v20 = vsub.f32 %v1521_v12, %v10893_v29 }
  0xf7   : > { %8408 = vmatpush3.msra.mxu0 %v10331_v11  ;;  %8444 = vmatpush3.msra.mxu1 %v13524_v44 }
  0xf8   : > { %8351 = vmatmul.mubr.f32.gmra.mxu0 %v10684_v58  ;;  %8389 = vmatmul.mubr.f32.gmra.mxu1 %v10615_v38  ;;  %v10897_v38 = vand.u32 4294901760, %v1522_v35  ;;  %v13257_v42 = vand.u32 4294901760, %v10906_v20 }
  0xf9   : > { %8409 = vmatprep.subr.mxu0 %v10340_v16  ;;  %8445 = vmatprep.subr.mxu1 %v13527_v0 }
  0xfa   : > { %8410 = vmatpush3.msra.mxu0 %v10340_v16  ;;  %8446 = vmatpush3.msra.mxu1 %v13527_v0  ;;  %13529 = vst [vmem:[#allocation65_spill] sm:$0xff] %v10897_v38  ;;  %v10911_v33 = vsub.f32 %v1522_v35, %v10897_v38  ;;  %v1613_v32 = vsub.f32 %v10906_v20, %v13257_v42  ;;  %v13539_v42 = vld [vmem:[#allocation91_spill] sm:$0xff] }
  0xfb   : > { %8411 = vmatprep.subr.mxu0 %v10363_v24  ;;  %8447 = vmatprep.subr.mxu1 %v13528_v36  ;;  %v1523_v35 = vmul.f32 %v13537_v19, %v13537_v19 }
  0xfc   : > { %8391 = vmatprep.mubr.f32.mxu1 %v10642_v15  ;;  %8412 = vmatpush3.msra.mxu0 %v10363_v24  ;;  %v13531_v15 = vld [vmem:[#allocation66_spill] sm:$0xff]  ;;  %v13256_v25 = vand.u32 4294901760, %v10911_v33  ;;  %v1614_v61 = vand.u32 4294901760, %v1613_v32  ;;  %v13540_v32 = vld [vmem:[#allocation88_spill] sm:$0xff] }
  0xfd   : > { %8448 = vmatpush3.msra.mxu1 %v13528_v36  ;;  %8413 = vmatprep.subr.mxu0 %v10369_v27 }
  0xfe   : > { %8392 = vmatmul.mubr.f32.gmra.mxu1 %v10647_v45  ;;  %8449 = vmatprep.subr.mxu1 %v13530_v63  ;;  %v13532_v45 = vld [vmem:[#allocation70_spill] sm:$0xff]  ;;  %v1623_v1 = vsub.f32 %v10911_v33, %v13256_v25 }
  0xff   : > { %8414 = vmatpush3.msra.mxu0 %v10369_v27  ;;  %8450 = vmatpush3.msra.mxu1 %v13530_v63  ;;  %v13538_v25 = vld [vmem:[#allocation86_spill] sm:$0xff]  ;;  %v13551_v63 = vld [vmem:[#allocation36_spill] sm:$0xff] }
 0x100   : > { %8415 = vmatprep.subr.mxu0 %v10393_v34  ;;  %8451 = vmatprep.subr.mxu1 %v13531_v15  ;;  %v1624_v12 = vand.u32 4294901760, %v1623_v1  ;;  %v10955_v1 = vand.u32 4294901760, %v1523_v35 }
 0x101   : > { %8394 = vmatprep.mubr.f32.mxu1 %v10676_v14  ;;  %8416 = vmatpush3.msra.mxu0 %v10393_v34  ;;  %v13533_v14 = vld [vmem:[#allocation74_spill] sm:$0xff] }
 0x102   : > { %8452 = vmatpush3.msra.mxu1 %v13531_v15  ;;  %8417 = vmatprep.subr.mxu0 %v10418_v46 }
 0x103   : > { %8395 = vmatmul.mubr.f32.gmra.mxu1 %v10684_v58  ;;  %8453 = vmatprep.subr.mxu1 %v13532_v45  ;;  %v13534_v58 = vld [vmem:[#allocation76_spill] sm:$0xff] }
 0x104   : > { %8418 = vmatpush3.msra.mxu0 %v10418_v46  ;;  %8454 = vmatpush3.msra.mxu1 %v13532_v45 }
 0x105   : > { %8419 = vmatprep.subr.mxu0 %v10431_v50  ;;  %8455 = vmatprep.subr.mxu1 %v13533_v14 }
 0x106   : > { %8420 = vmatpush3.msra.mxu0 %v10431_v50  ;;  %8456 = vmatpush3.msra.mxu1 %v13533_v14  ;;  %v13543_v14 = vld [vmem:[#allocation90_spill] sm:$0xff] }
 0x107   : > { %8421 = vmatprep.subr.mxu0 %v10456_v59  ;;  %8457 = vmatprep.subr.mxu1 %v13534_v58 }
 0x108   : > { %8422 = vmatpush3.msra.mxu0 %v10456_v59  ;;  %8458 = vmatpush3.msra.mxu1 %v13534_v58  ;;  %v13541_v58 = vld [vmem:[#allocation31_spill] sm:$0xff] }
 0x109   : > { %8423 = vmatprep.subr.mxu0 %v10485_v8  ;;  %8459 = vmatprep.subr.mxu1 %v13535_v51 }
 0x10a   : > { %8424 = vmatpush3.msra.mxu0 %v10485_v8  ;;  %8460 = vmatpush3.msra.mxu1 %v13535_v51  ;;  %v1524_v51 = vmul.f32 %v13539_v42, %v13539_v42 }
 0x10b   : > { %8425 = vmatprep.subr.mxu0 %v10503_v31  ;;  %8461 = vmatprep.subr.mxu1 %v13536_v17 }
 0x10c   : > { %8426 = vmatpush3.msra.mxu0 %v10503_v31  ;;  %8462 = vmatpush3.msra.mxu1 %v13536_v17  ;;  %v10959_v19 = vand.u32 4294901760, %v1524_v51  ;;  %v13542_v17 = vld [vmem:[#allocation94_spill] sm:$0xff] }
 0x10d   : > { %8427 = vmatprep.subr.mxu0 %v10522_v43  ;;  %8463 = vmatprep.subr.mxu1 %v13538_v25  ;;  %v1525_v42 = vmul.f32 %v13542_v17, %v13542_v17 }
 0x10e   : > { %8428 = vmatpush3.msra.mxu0 %v10522_v43  ;;  %8464 = vmatpush3.msra.mxu1 %v13538_v25  ;;  %v13544_v25 = vld [vmem:[#allocation32_spill] sm:$0xff]  ;;  %v10977_v17 = vsub.f32 %v1524_v51, %v10959_v19 }
 0x10f   : > { %8429 = vmatprep.mubr.f32.mxu0 %v1614_v61  ;;  %8465 = vmatprep.subr.mxu1 %v13540_v32  ;;  %v13545_v61 = vld [vmem:[#allocation95_spill] sm:$0xff]  ;;  %v10979_v15 = vand.u32 4294901760, %v1525_v42  ;;  %v13552_v51 = vld [vmem:[#allocation44_spill] sm:$0xff] }
 0x110   : > { %8485 = vmatprep.subr.mxu0 %v13541_v58  ;;  %8430 = vmatmul.mubr.f32.vlgmr.msra.gmra.mxu0 %v1624_v12  ;;  %v1526_v45 = vmul.f32 %v13545_v61, %v13545_v61  ;;  %v13546_v12 = vld [vmem:[#allocation92_spill] sm:$0xff]  ;;  %v13548_v61 = vld [vmem:[#allocation93_spill] sm:$0xff] }
 0x111   : > { %8466 = vmatpush3.msra.mxu1 %v13540_v32  ;;  %8486 = vmatpush3.msra.mxu0 %v13541_v58  ;;  %v13547_v32 = vld [vmem:[#allocation34_spill] sm:$0xff]  ;;  %v10972_v58 = vsub.f32 %v1523_v35, %v10955_v1  ;;  %v1527_v35 = vmul.f32 %v10655_v62, %v10655_v62  ;;  %v10998_v36 = vsub.f32 %v1525_v42, %v10979_v15 }
 0x112   : > { %8467 = vmatprep.subr.mxu1 %v13543_v14  ;;  %8487 = vmatprep.subr.mxu0 %v13544_v25 }
 0x113   : > { %8468 = vmatpush3.msra.mxu1 %v13543_v14  ;;  %8488 = vmatpush3.msra.mxu0 %v13544_v25  ;;  %v13549_v14 = vld [vmem:[#allocation35_spill] sm:$0xff]  ;;  %v10983_v25 = vand.u32 4294901760, %v1526_v45  ;;  %v13553_v42 = vand.u32 4294901760, %v10972_v58 }
 0x114   : > { %8469 = vmatprep.subr.mxu1 %v13546_v12  ;;  %8489 = vmatprep.subr.mxu0 %v13547_v32 }
 0x115   : > { %8470 = vmatpush3.msra.mxu1 %v13546_v12  ;;  %8490 = vmatpush3.msra.mxu0 %v13547_v32  ;;  %v13550_v32 = vld [vmem:[#allocation96_spill] sm:$0xff]  ;;  %v11003_v62 = vsub.f32 %v1526_v45, %v10983_v25  ;;  %v13555_v45 = vand.u32 4294901760, %v10977_v17 }
 0x116   : > { %8471 = vmatprep.subr.mxu1 %v13548_v61  ;;  %8491 = vmatprep.subr.mxu0 %v13549_v14  ;;  %v1528_v12 = vmul.f32 %v13550_v32, %v13550_v32  ;;  %v11007_v32 = vand.u32 4294901760, %v1527_v35 }
 0x117   : > { %8472 = vmatpush3.msra.mxu1 %v13548_v61  ;;  %8473 = vmatprep.mubr.f32.mxu1 %v10893_v29  ;;  %v1633_v61 = vsub.f32 %v10972_v58, %v13553_v42  ;;  %v1643_v0 = vsub.f32 %v10977_v17, %v13555_v45 }
 0x118   : > { %8492 = vmatpush3.msra.mxu0 %v13549_v14  ;;  %8474 = vmatmul.mubr.f32.vlgmr.msra.gmra.mxu1 %v10897_v38  ;;  %v13554_v14 = vld [vmem:[#allocation45_spill] sm:$0xff]  ;;  %v11028_v42 = vsub.f32 %v1527_v35, %v11007_v32  ;;  %v13558_v35 = vand.u32 4294901760, %v11003_v62 }
 0x119   : > { %8493 = vmatprep.subr.mxu0 %v13551_v63  ;;  %8529 = vmatprep.subr.mxu1 %v10321_v3  ;;  %v1634_v45 = vand.u32 4294901760, %v1633_v61 }
 0x11a   : > { %8494 = vmatpush3.msra.mxu0 %v13551_v63  ;;  %8530 = vmatpush3.msra.mxu1 %v10321_v3  ;;  %v11014_v63 = vand.u32 4294901760, %v1528_v12  ;;  %v1663_v61 = vsub.f32 %v11003_v62, %v13558_v35 }
 0x11b   : > { %8495 = vmatprep.subr.mxu0 %v13552_v51  ;;  %8531 = vmatprep.subr.mxu1 %v10323_v4 }
 0x11c   : > { %8496 = vmatpush3.msra.mxu0 %v13552_v51  ;;  %8532 = vmatpush3.msra.mxu1 %v10323_v4  ;;  %v11033_v44 = vsub.f32 %v1528_v12, %v11014_v63  ;;  %v1644_v51 = vand.u32 4294901760, %v1643_v0  ;;  %v1672_v12 = vand.u32 4294901760, %v11028_v42  ;;  %v1664_v35 = vand.u32 4294901760, %v1663_v61 }
 0x11d   : > { %8497 = vmatprep.subr.mxu0 %v13554_v14  ;;  %8533 = vmatprep.subr.mxu1 %v10325_v5 }
 0x11e   : > { %8498 = vmatpush3.msra.mxu0 %v13554_v14  ;;  %8534 = vmatpush3.msra.mxu1 %v10325_v5  ;;  %v13557_v14 = vand.u32 4294901760, %v10998_v36  ;;  %v1682_v0 = vand.u32 4294901760, %v11033_v44 }
 0x11f   : > { %8499 = vmatprep.subr.mxu0 %v13556_v37  ;;  %8535 = vmatprep.subr.mxu1 %v10327_v9 }
 0x120   : > { %8500 = vmatpush3.msra.mxu0 %v13556_v37  ;;  %8536 = vmatpush3.msra.mxu1 %v10327_v9  ;;  %v1653_v38 = vsub.f32 %v10998_v36, %v13557_v14 }
 0x121   : > { %8501 = vmatprep.subr.mxu0 %v10424_v48  ;;  %8537 = vmatprep.subr.mxu1 %v10329_v10 }
 0x122   : > { %8502 = vmatpush3.msra.mxu0 %v10424_v48  ;;  %8538 = vmatpush3.msra.mxu1 %v10329_v10  ;;  %v1654_v14 = vand.u32 4294901760, %v1653_v38  ;;  %v1683_v38 = vsub.f32 %v11033_v44, %v1682_v0 }
 0x123   : > { %8503 = vmatprep.subr.mxu0 %v10443_v55  ;;  %8539 = vmatprep.subr.mxu1 %v10331_v11 }
 0x124   : > { %8432 = vmatprep.mubr.f32.mxu0 %v1634_v45  ;;  %8504 = vmatpush3.msra.mxu0 %v10443_v55  ;;  %v1673_v45 = vsub.f32 %v11028_v42, %v1672_v12  ;;  %v1684_v61 = vand.u32 4294901760, %v1683_v38 }
 0x125   : > { %8540 = vmatpush3.msra.mxu1 %v10331_v11  ;;  %8433 = vmatmul.mubr.f32.gmra.mxu0 %v1644_v51 }
 0x126   : > { %8505 = vmatprep.subr.mxu0 %v10459_v60  ;;  %8541 = vmatprep.subr.mxu1 %v10340_v16  ;;  %v1674_v51 = vand.u32 4294901760, %v1673_v45 }
 0x127   : > { %8506 = vmatpush3.msra.mxu0 %v10459_v60  ;;  %8542 = vmatpush3.msra.mxu1 %v10340_v16 }
 0x128   : > { %8507 = vmatprep.subr.mxu0 %v10479_v6  ;;  %8543 = vmatprep.subr.mxu1 %v10363_v24 }
 0x129   : > { %8435 = vmatprep.mubr.f32.mxu0 %v1654_v14  ;;  %8508 = vmatpush3.msra.mxu0 %v10479_v6  ;;  %v13559_v14 = vand.u32 4294901760, %v10906_v20 }
 0x12a   : > { %8544 = vmatpush3.msra.mxu1 %v10363_v24  ;;  %8436 = vmatmul.mubr.f32.gmra.mxu0 %v1664_v35  ;;  %v13560_v35 = vand.u32 4294901760, %v10911_v33 }
 0x12b   : > { %8476 = vmatprep.mubr.f32.mxu1 %v10955_v1  ;;  %8509 = vmatprep.subr.mxu0 %v10499_v30 }
 0x12c   : > { %8545 = vmatprep.subr.mxu1 %v10369_v27  ;;  %8477 = vmatmul.mubr.f32.gmra.mxu1 %v10959_v19 }
 0x12d   : > { %8510 = vmatpush3.msra.mxu0 %v10499_v30  ;;  %8546 = vmatpush3.msra.mxu1 %v10369_v27 }
 0x12e   : > { %8511 = vmatprep.subr.mxu0 %v10525_v52  ;;  %8547 = vmatprep.subr.mxu1 %v10393_v34 }
 0x12f   : > { %8438 = vmatprep.mubr.f32.mxu0 %v1674_v51  ;;  %8512 = vmatpush3.msra.mxu0 %v10525_v52 }
 0x130   : > { %8548 = vmatpush3.msra.mxu1 %v10393_v34  ;;  %8439 = vmatmul.mubr.f32.gmra.mxu0 %v1684_v61 }
 0x131   : > { %8479 = vmatprep.mubr.f32.mxu1 %v10979_v15  ;;  %8513 = vmatprep.subr.mxu0 %v10539_v54 }
 0x132   : > { %8549 = vmatprep.subr.mxu1 %v10418_v46  ;;  %8480 = vmatmul.mubr.f32.gmra.mxu1 %v10983_v25 }
 0x133   : > { %8514 = vmatpush3.msra.mxu0 %v10539_v54  ;;  %8550 = vmatpush3.msra.mxu1 %v10418_v46 }
 0x134   : > { %8515 = vmatprep.subr.mxu0 %v10553_v7  ;;  %8551 = vmatprep.subr.mxu1 %v10431_v50 }
 0x135   : > { %8516 = vmatpush3.msra.mxu0 %v10553_v7  ;;  %8517 = vmatprep.mubr.f32.mxu0 %v10906_v20  ;;  %v13561_v20 = vand.u32 4294901760, %v10972_v58 }
 0x136   : > { %8552 = vmatpush3.msra.mxu1 %v10431_v50  ;;  %8482 = vmatprep.mubr.f32.mxu1 %v11007_v32 }
 0x137   : > { %8518 = vmatmul.mubr.f32.vlgmr.msra.gmra.mxu0 %v10911_v33  ;;  %8553 = vmatprep.subr.mxu1 %v10456_v59  ;;  %v13562_v33 = vand.u32 4294901760, %v10977_v17 }
 0x138   : > { %8573 = vmatprep.subr.mxu0 %v10355_v21  ;;  %8483 = vmatmul.mubr.f32.gmra.mxu1 %v11014_v63 }
 0x139   : > { %8554 = vmatpush3.msra.mxu1 %v10456_v59  ;;  %8574 = vmatpush3.msra.mxu0 %v10355_v21 }
 0x13a   : > { %8555 = vmatprep.subr.mxu1 %v10485_v8  ;;  %8575 = vmatprep.subr.mxu0 %v10358_v22 }
 0x13b   : > { %8520 = vmatprep.mubr.f32.mxu0 %v10972_v58  ;;  %8556 = vmatpush3.msra.mxu1 %v10485_v8  ;;  %v13563_v58 = vand.u32 4294901760, %v10998_v36 }
 0x13c   : > { %8576 = vmatpush3.msra.mxu0 %v10358_v22  ;;  %8557 = vmatprep.subr.mxu1 %v10503_v31 }
 0x13d   : > { %8521 = vmatmul.mubr.f32.gmra.mxu0 %v10977_v17  ;;  %8577 = vmatprep.subr.mxu0 %v10361_v23  ;;  %v13564_v17 = vand.u32 4294901760, %v11003_v62 }
 0x13e   : > { %8558 = vmatpush3.msra.mxu1 %v10503_v31  ;;  %8578 = vmatpush3.msra.mxu0 %v10361_v23 }
 0x13f   : > { %8559 = vmatprep.subr.mxu1 %v10522_v43  ;;  %8579 = vmatprep.subr.mxu0 %v10367_v26 }
 0x140   : > { %8523 = vmatprep.mubr.f32.mxu0 %v10998_v36  ;;  %8560 = vmatpush3.msra.mxu1 %v10522_v43 }
 0x141   : > { %8561 = vmatprep.mubr.f32.mxu1 %v13559_v14  ;;  %8580 = vmatpush3.msra.mxu0 %v10367_v26 }
 0x142   : > { %8524 = vmatmul.mubr.f32.gmra.mxu0 %v11003_v62  ;;  %8562 = vmatmul.mubr.f32.vlgmr.msra.gmra.mxu1 %v13560_v35 }
 0x143   : > { %8581 = vmatprep.subr.mxu0 %v10372_v28  ;;  %8617 = vmatprep.subr.mxu1 %v10321_v3 }
 0x144   : > { %8582 = vmatpush3.msra.mxu0 %v10372_v28  ;;  %8618 = vmatpush3.msra.mxu1 %v10321_v3 }
 0x145   : > { %8583 = vmatprep.subr.mxu0 %v10403_v39  ;;  %8619 = vmatprep.subr.mxu1 %v10323_v4 }
 0x146   : > { %8526 = vmatprep.mubr.f32.mxu0 %v11028_v42  ;;  %8564 = vmatprep.mubr.f32.mxu1 %v13561_v20 }
 0x147   : > { %8584 = vmatpush3.msra.mxu0 %v10403_v39  ;;  %8620 = vmatpush3.msra.mxu1 %v10323_v4 }
 0x148   : > { %8527 = vmatmul.mubr.f32.gmra.mxu0 %v11033_v44  ;;  %8565 = vmatmul.mubr.f32.gmra.mxu1 %v13562_v33  ;;  %v13565_v44 = vld [vmem:[#allocation65_spill] sm:$0xff] }
 0x149   : > { %8585 = vmatprep.subr.mxu0 %v10421_v47  ;;  %8621 = vmatprep.subr.mxu1 %v10325_v5 }
 0x14a   : > { %8586 = vmatpush3.msra.mxu0 %v10421_v47  ;;  %8622 = vmatpush3.msra.mxu1 %v10325_v5 }
 0x14b   : > { %8587 = vmatprep.subr.mxu0 %v10440_v53  ;;  %8623 = vmatprep.subr.mxu1 %v10327_v9 }
 0x14c   : > { %8567 = vmatprep.mubr.f32.mxu1 %v13563_v58  ;;  %8588 = vmatpush3.msra.mxu0 %v10440_v53 }
 0x14d   : > { %8624 = vmatpush3.msra.mxu1 %v10327_v9  ;;  %8589 = vmatprep.subr.mxu0 %v10450_v57 }
 0x14e   : > { %8568 = vmatmul.mubr.f32.gmra.mxu1 %v13564_v17  ;;  %8625 = vmatprep.subr.mxu1 %v10329_v10 }
 0x14f   : > { %8590 = vmatpush3.msra.mxu0 %v10450_v57  ;;  %8626 = vmatpush3.msra.mxu1 %v10329_v10  ;;  %v2549_v57 = vld [vmem:[%s13183_s6] sm:$0xff] }
 0x150   : > { %8591 = vmatprep.subr.mxu0 %v10476_v2  ;;  %8627 = vmatprep.subr.mxu1 %v10331_v11 }
 0x151   : > { %8570 = vmatprep.mubr.f32.mxu1 %v1672_v12  ;;  %8592 = vmatpush3.msra.mxu0 %v10476_v2 }
 0x152   : > { %8628 = vmatpush3.msra.mxu1 %v10331_v11  ;;  %8593 = vmatprep.subr.mxu0 %v10492_v18 }
 0x153   : > { %8571 = vmatmul.mubr.f32.gmra.mxu1 %v1682_v0  ;;  %8629 = vmatprep.subr.mxu1 %v10340_v16 }
 0x154   : > { %8594 = vmatpush3.msra.mxu0 %v10492_v18  ;;  %8630 = vmatpush3.msra.mxu1 %v10340_v16 }
 0x155   : > { %8595 = vmatprep.subr.mxu0 %v10516_v40  ;;  %8631 = vmatprep.subr.mxu1 %v10363_v24 }
 0x156   : > { %8596 = vmatpush3.msra.mxu0 %v10516_v40  ;;  %8632 = vmatpush3.msra.mxu1 %v10363_v24 }
 0x157   : > { %8597 = vmatprep.subr.mxu0 %v10533_v56  ;;  %8633 = vmatprep.subr.mxu1 %v10369_v27 }
 0x158   : > { %8598 = vmatpush3.msra.mxu0 %v10533_v56  ;;  %8634 = vmatpush3.msra.mxu1 %v10369_v27  ;;  %v8167_v36 = vpop.f32.mrf.mxu0 }
 0x159   : > { %8599 = vmatprep.subr.mxu0 %v10550_v13  ;;  %8635 = vmatprep.subr.mxu1 %v10393_v34 }
 0x15a   : > { %8600 = vmatpush3.msra.mxu0 %v10550_v13  ;;  %8636 = vmatpush3.msra.mxu1 %v10393_v34 }
 0x15b   : > { %8601 = vmatprep.subr.mxu0 %v10570_v49  ;;  %8637 = vmatprep.subr.mxu1 %v10418_v46 }
 0x15c   : > { %8602 = vmatpush3.msra.mxu0 %v10570_v49  ;;  %8638 = vmatpush3.msra.mxu1 %v10418_v46 }
 0x15d   : > { %8603 = vmatprep.subr.mxu0 %v10581_v41  ;;  %8639 = vmatprep.subr.mxu1 %v10431_v50 }
 0x15e   : > { %8604 = vmatpush3.msra.mxu0 %v10581_v41  ;;  %8605 = vmatprep.mubr.f32.mxu0 %v10893_v29 }
 0x15f   : > { %8640 = vmatpush3.msra.mxu1 %v10431_v50  ;;  %8606 = vmatmul.mubr.f32.vlgmr.msra.gmra.mxu0 %v13565_v44 }
 0x160   : > { %8641 = vmatprep.subr.mxu1 %v10456_v59  ;;  %8608 = vmatprep.mubr.f32.mxu0 %v10955_v1  ;;  %v8211_v62 = vpop.f32.mrf.mxu1 }
 0x161   : > { %8642 = vmatpush3.msra.mxu1 %v10456_v59  ;;  %8649 = vmatprep.mubr.f32.mxu1 %v10893_v29  ;;  %v894_v42 = vadd.f32 %v8211_v62, %v8167_v36  ;;  %v11194_v29 = vpop.f32.mrf.mxu0 }
 0x162   : > { %8643 = vmatprep.subr.mxu1 %v10485_v8  ;;  %v11202_v45 = vpop.f32.mrf.mxu1 }
 0x163   : > { %8644 = vmatpush3.msra.mxu1 %v10485_v8  ;;  %8609 = vmatmul.mubr.f32.gmra.mxu0 %v10959_v19 }
 0x164   : > { %8645 = vmatprep.subr.mxu1 %v10503_v31  ;;  %8611 = vmatprep.mubr.f32.mxu0 %v10979_v15 }
 0x165   : > { %8646 = vmatpush3.msra.mxu1 %v10503_v31 }
 0x166   : > { %8647 = vmatprep.subr.mxu1 %v10522_v43 }
 0x167   : > { %8648 = vmatpush3.msra.mxu1 %v10522_v43  ;;  %8612 = vmatmul.mubr.f32.gmra.mxu0 %v10983_v25 }
 0x168   : > { %8650 = vmatmul.mubr.f32.vlgmr.msra.gmra.mxu1 %v13565_v44  ;;  %8614 = vmatprep.mubr.f32.mxu0 %v11007_v32 }
 0x169   : > { %8652 = vmatprep.mubr.f32.mxu1 %v10955_v1 }
 0x16b   : > { %8615 = vmatmul.mubr.f32.gmra.mxu0 %v11014_v63 }
 0x16c   : > { %8653 = vmatmul.mubr.f32.gmra.mxu1 %v10959_v19 }
 0x16d   : > { %8655 = vmatprep.mubr.f32.mxu1 %v10979_v15  ;;  %v8170_v12 = vpop.f32.mrf.mxu0 }
 0x16f   : > { %v11198_v0 = vpop.f32.mrf.mxu0 }
 0x170   : > { %8656 = vmatmul.mubr.f32.gmra.mxu1 %v10983_v25 }
 0x171   : > { %8658 = vmatprep.mubr.f32.mxu1 %v11007_v32 }
 0x172   : > { %v8173_v38 = vpop.f32.mrf.mxu0 }
 0x174   : > { %8659 = vmatmul.mubr.f32.gmra.mxu1 %v11014_v63  ;;  %v8214_v1 = vpop.f32.mrf.mxu1  ;;  %v11205_v51 = vpop.f32.mrf.mxu0 }
 0x175   : > { %v906_v61 = vadd.f32 %v8214_v1, %v8170_v12 }
 0x176   : > { %v11207_v14 = vpop.f32.mrf.mxu1 }
 0x178   : > { %v8176_v19 = vpop.f32.mrf.mxu0 }
 0x17a   : > { %v8217_v15 = vpop.f32.mrf.mxu1  ;;  %v11209_v20 = vpop.f32.mrf.mxu0 }
 0x17b   : > { %v918_v35 = vadd.f32 %v8217_v15, %v8173_v38 }
 0x17c   : > { %v11211_v33 = vpop.f32.mrf.mxu1 }
 0x17f   : > { %v8255_v25 = vpop.f32.mrf.mxu0 }
 0x180   : > { %v1041_v32 = vadd.f32 %v8255_v25, %v894_v42  ;;  %v8220_v58 = vpop.f32.mrf.mxu1 }
 0x181   : > { %v11213_v17 = vadd.f32 %v8220_v58, %v8176_v19  ;;  %v11215_v44 = vpop.f32.mrf.mxu0 }
 0x182   : > { %v11219_v12 = vpop.f32.mrf.mxu1 }
 0x185   : > { %v8258_v63 = vpop.f32.mrf.mxu0 }
 0x186   : > { %v1055_v36 = vadd.f32 %v8258_v63, %v906_v61 }
 0x187   : > { %v11217_v62 = vpop.f32.mrf.mxu0 }
 0x18a   : > { %v8261_v1 = vpop.f32.mrf.mxu0  ;;  %v8299_v41 = vpop.f32.mrf.mxu1 }
 0x18b   : > { %v1069_v38 = vadd.f32 %v8261_v1, %v918_v35  ;;  %v1180_v15 = vadd.f32 %v8299_v41, %v1041_v32 }
 0x18c   : > { %v11221_v49 = vpop.f32.mrf.mxu1  ;;  %v11229_v58 = vpop.f32.mrf.mxu0 }
 0x190   : > { %v8302_v13 = vpop.f32.mrf.mxu1  ;;  %v11231_v61 = vpop.f32.mrf.mxu0 }
 0x191   : > { %v11223_v56 = vadd.f32 %v8302_v13, %v1055_v36 }
 0x192   : > { %v11225_v42 = vpop.f32.mrf.mxu1  ;;  %v11233_v63 = vpop.f32.mrf.mxu0 }
 0x196   : > { %v8305_v19 = vpop.f32.mrf.mxu1 }
 0x197   : > { %v11227_v25 = vadd.f32 %v8305_v19, %v1069_v38 }
 0x198   : > { %v11235_v18 = vpop.f32.mrf.mxu1 }
 0x19b   : > { %v11237_v35 = vpop.f32.mrf.mxu1 }
 0x19d   : > { %v11239_v32 = vpop.f32.mrf.mxu1 }
 0x1a7   : > { %v8343_v40 = vpop.f32.mrf.mxu0 }
 0x1a8   : > { %v1353_v41 = vadd.f32 %v8343_v40, %v1180_v15  ;;  %v2563_v15 = vsel %vm2561_vm0, %v2549_v57, 0 }
 0x1a9   : > { %v11243_v1 = vpop.f32.mrf.mxu0  ;;  %v11257_v53 = vand.u32 4294901760, %v2563_v15 }
 0x1ab   : > { %13566 = vst [vmem:[#allocation51_spill] sm:$0xff] %v11257_v53  ;;  %8711 = vmatprep.mubr.f32.mxu1 %v11257_v53 }
 0x1ad   : > { %v11245_v38 = vpop.f32.mrf.mxu0 }
 0x1af   : > { %v11247_v19 = vpop.f32.mrf.mxu0 }
 0x1b2   : > { %v8387_v13 = vpop.f32.mrf.mxu1  ;;  %v11254_v40 = vpop.f32.mrf.mxu0 }
 0x1b3   : > { %v11241_v36 = vadd.f32 %v8387_v13, %v1353_v41  ;;  %v11262_v13 = vsub.f32 %v2563_v15, %v11257_v53 }
 0x1b4   : > { %v11249_v2 = vpop.f32.mrf.mxu1  ;;  %v11265_v47 = vpop.f32.mrf.mxu0 }
 0x1b5   : > { %13567 = vst [vmem:[#allocation56_spill] sm:$0xff] %v11262_v13  ;;  %v13329_v39 = vand.u32 4294901760, %v11262_v13 }
 0x1b7   : > { %v2674_v26 = vsub.f32 %v11262_v13, %v13329_v39 }
 0x1b8   : > { %v11259_v41 = vpop.f32.mrf.mxu1  ;;  %v11273_v57 = vpop.f32.mrf.mxu0 }
 0x1b9   : > { %v2675_v23 = vand.u32 4294901760, %v2674_v26 }
 0x1ba   : > { %v11268_v28 = vpop.f32.mrf.mxu1  ;;  %v11277_v15 = vpop.f32.mrf.mxu0 }
 0x1bb   : > { %8677 = vmatprep.mubr.f32.mxu0 %v2675_v23 }
 0x1be   : > { %v11275_v22 = vpop.f32.mrf.mxu1 }
 0x1c0   : > { %v11279_v7 = vpop.f32.mrf.mxu1 }
 0x1c3   : > { %v11281_v52 = vpop.f32.mrf.mxu1 }
 0x1c4   : > { %13568 = vst [vmem:[#allocation89_spill] sm:$0xff] %v11281_v52 }
 0x1c5   : > { %v11283_v6 = vpop.f32.mrf.mxu1 }
 0x1c6   : > { %13569 = vst [vmem:[#allocation91_spill] sm:$0xff] %v11283_v6  ;;  %v888_v6 = vadd.f32 %v11202_v45, %v11194_v29  ;;  %v924_v29 = vadd.f32 %v11219_v12, %v11209_v20  ;;  %v1377_v12 = vadd.f32 %v11254_v40, %v11227_v25 }
 0x1c8   : > { %v1034_v52 = vadd.f32 %v11215_v44, %v888_v6 }
 0x1d0   : > { %v8431_v21 = vpop.f32.mrf.mxu0 }
 0x1d2   : > { %v1616_v54 = vpop.f32.mrf.mxu0 }
 0x1d8   : > { %v8475_v55 = vpop.f32.mrf.mxu1 }
 0x1da   : > { %v1837_v48 = vpop.f32.mrf.mxu1 }
 0x1e5   : > { %v8434_v30 = vpop.f32.mrf.mxu0 }
 0x1e7   : > { %v1636_v60 = vpop.f32.mrf.mxu0 }
 0x1ea   : > { %v11285_v39 = vpop.f32.mrf.mxu0 }
 0x1ec   : > { %v8478_v26 = vpop.f32.mrf.mxu1  ;;  %v11287_v37 = vpop.f32.mrf.mxu0 }
 0x1ee   : > { %v1849_v23 = vpop.f32.mrf.mxu1 }
 0x1ef   : > { %v1850_v25 = vadd.f32 %v1849_v23, %v1636_v60 }
 0x1f0   : > { %v11289_v43 = vpop.f32.mrf.mxu0 }
 0x1f1   : > { %13570 = vst [vmem:[#allocation94_spill] sm:$0xff] %v11289_v43  ;;  %v1172_v43 = vadd.f32 %v11221_v49, %v1034_v52 }
 0x1f2   : > { %v11291_v31 = vpop.f32.mrf.mxu1  ;;  %v11293_v8 = vpop.f32.mrf.mxu0 }
 0x1f3   : > { %13571 = vst [vmem:[#allocation95_spill] sm:$0xff] %v11293_v8  ;;  %v1347_v45 = vadd.f32 %v11243_v1, %v1172_v43 }
 0x1f4   : > { %v11295_v59 = vpop.f32.mrf.mxu1 }
 0x1f5   : > { %v11334_v20 = vadd.f32 %v11249_v2, %v1347_v45  ;;  %v1856_v2 = vadd.f32 %v8478_v26, %v8434_v30 }
 0x1f7   : > { %v8519_v50 = vpop.f32.mrf.mxu0 }
 0x1f8   : > { %v11297_v46 = vpop.f32.mrf.mxu1 }
 0x1f9   : > { %13572 = vst [vmem:[#allocation96_spill] sm:$0xff] %v11297_v46  ;;  %v1983_v34 = vpop.f32.mrf.mxu0 }
 0x1fa   : > { %v11299_v27 = vpop.f32.mrf.mxu1 }
 0x1fb   : > { %13573 = vst [vmem:[#allocation65_spill] sm:$0xff] %v11299_v27  ;;  %v900_v27 = vadd.f32 %v11207_v14, %v11198_v0  ;;  %v1083_v0 = vadd.f32 %v11231_v61, %v11213_v17 }
 0x1fd   : > { %v8522_v24 = vpop.f32.mrf.mxu0  ;;  %v1228_v43 = vadd.f32 %v11237_v35, %v1083_v0 }
 0x1ff   : > { %v1997_v11 = vpop.f32.mrf.mxu0 }
 0x200   : > { %v1998_v40 = vadd.f32 %v1997_v11, %v1850_v25 }
 0x202   : > { %v8563_v16 = vpop.f32.mrf.mxu1  ;;  %v8525_v9 = vpop.f32.mrf.mxu0 }
 0x204   : > { %v2121_v10 = vpop.f32.mrf.mxu1  ;;  %v11301_v4 = vpop.f32.mrf.mxu0 }
 0x205   : > { %13574 = vst [vmem:[#allocation97_spill] sm:$0xff] %v11301_v4  ;;  %v912_v4 = vadd.f32 %v11211_v33, %v11205_v51  ;;  %v1365_v51 = vadd.f32 %v11245_v38, %v11223_v56 }
 0x207   : > { %v1062_v6 = vadd.f32 %v11229_v58, %v912_v4  ;;  %v11339_v17 = vadd.f32 %v11259_v41, %v1365_v51 }
 0x208   : > { %v8566_v5 = vpop.f32.mrf.mxu1  ;;  %v11303_v53 = vpop.f32.mrf.mxu0 }
 0x209   : > { %13575 = vst [vmem:[#allocation98_spill] sm:$0xff] %v11303_v53  ;;  %v1204_v52 = vadd.f32 %v11235_v18, %v1062_v6  ;;  %v11346_v18 = vmul.f32 %v11241_v36, %v11241_v36  ;;  %v2474_v30 = vmul.f32 %v11339_v17, %v11339_v17 }
 0x20a   : > { %v2137_v3 = vpop.f32.mrf.mxu1  ;;  %v11310_v8 = vpop.f32.mrf.mxu0 }
 0x20b   : > { %v1371_v58 = vadd.f32 %v11265_v47, %v1204_v52  ;;  %v11360_v47 = vadd.f32 %v11275_v22, %v1377_v12 }
 0x20d   : > { %v11368_v60 = vadd.f32 %v11279_v7, %v1371_v58  ;;  %v2476_v11 = vmul.f32 %v11360_v47, %v11360_v47  ;;  %v13579_v7 = vld [vmem:[#allocation97_spill] sm:$0xff] }
 0x20e   : > { %v11305_v13 = vpop.f32.mrf.mxu1 }
 0x20f   : > { %13576 = vst [vmem:[#allocation99_spill] sm:$0xff] %v11305_v13  ;;  %v1048_v13 = vadd.f32 %v11217_v62, %v900_v27  ;;  %v1076_v27 = vadd.f32 %v11233_v63, %v924_v29  ;;  %v1844_v62 = vadd.f32 %v8475_v55, %v8431_v21  ;;  %v1838_v63 = vadd.f32 %v1837_v48, %v1616_v54 }
 0x210   : > { %v11314_v46 = vpop.f32.mrf.mxu1  ;;  %v11354_v21 = vmul.f32 %v11334_v20, %v11334_v20  ;;  %v1389_v55 = vadd.f32 %v11273_v57, %v1228_v43  ;;  %v1868_v54 = vadd.f32 %v11291_v31, %v11285_v39  ;;  %v13578_v39 = vld [vmem:[#allocation96_spill] sm:$0xff]  ;;  %v13583_v52 = vld [vmem:[#allocation98_spill] sm:$0xff] }
 0x211   : > { %v1188_v14 = vadd.f32 %v11225_v42, %v1048_v13  ;;  %v1220_v56 = vadd.f32 %v11239_v32, %v1076_v27  ;;  %v1991_v35 = vadd.f32 %v8519_v50, %v1844_v62  ;;  %v2005_v32 = vadd.f32 %v8522_v24, %v1856_v2  ;;  %v13584_v2 = vld [vmem:[#allocation89_spill] sm:$0xff] }
 0x212   : > { %v11385_v58 = vadd.f32 %v13584_v2, %v1389_v55 }
 0x213   : > { %v11329_v49 = vpop.f32.mrf.mxu1  ;;  %v1359_v33 = vadd.f32 %v11247_v19, %v1188_v14  ;;  %v2130_v19 = vadd.f32 %v8563_v16, %v1991_v35  ;;  %v1383_v50 = vadd.f32 %v11277_v15, %v1220_v56  ;;  %v2146_v41 = vadd.f32 %v8566_v5, %v2005_v32  ;;  %v13577_v5 = vld [vmem:[#allocation94_spill] sm:$0xff] }
 0x214   : > { %v1862_v16 = vadd.f32 %v11295_v59, %v11287_v37  ;;  %v2138_v15 = vadd.f32 %v2137_v3, %v1998_v40  ;;  %v1880_v31 = vadd.f32 %v13578_v39, %v13577_v5  ;;  %v2475_v3 = vmul.f32 %v11368_v60, %v11368_v60  ;;  %v13582_v59 = vld [vmem:[#allocation65_spill] sm:$0xff]  ;;  %v13585_v40 = vld [vmem:[#allocation91_spill] sm:$0xff] }
 0x215   : > { %v11350_v61 = vadd.f32 %v11268_v28, %v1359_v33  ;;  %v2169_v1 = vpop.f32.mrf.mxu1  ;;  %v1984_v28 = vadd.f32 %v1983_v34, %v1838_v63  ;;  %v2019_v34 = vadd.f32 %v8525_v9, %v1868_v54  ;;  %v13581_v9 = vld [vmem:[#allocation95_spill] sm:$0xff] }
 0x216   : > { %v2012_v0 = vadd.f32 %v13579_v7, %v1862_v16  ;;  %v1874_v37 = vadd.f32 %v13582_v59, %v13581_v9  ;;  %v9839_v9 = vld [vmem:[%s10390_s18 + $0x20] sm:$0xff] }
 0x217   : > { %v2473_v24 = vmul.f32 %v11350_v61, %v11350_v61  ;;  %v2122_v57 = vadd.f32 %v2121_v10, %v1984_v28  ;;  %v13580_v10 = vld [vmem:[#allocation99_spill] sm:$0xff]  ;;  %v2491_v59 = vsub.f32 %v9839_v9, %v11368_v60 }
 0x21f   : > { %v8607_v53 = vpop.f32.mrf.mxu0 }
 0x220   : > { %v2303_v22 = vadd.f32 %v8607_v53, %v2130_v19  ;;  %v2162_v53 = vadd.f32 %v13580_v10, %v2019_v34  ;;  %v9837_v10 = vld [vmem:[%s10390_s18 + $0x10] sm:$0xff] }
 0x221   : > { %v2296_v44 = vpop.f32.mrf.mxu0 }
 0x222   : > { %v2297_v29 = vadd.f32 %v2296_v44, %v2122_v57  ;;  %v2154_v44 = vadd.f32 %v11314_v46, %v2012_v0  ;;  %v11391_v46 = vadd.f32 %v13585_v40, %v1383_v50  ;;  %v2551_v40 = vld [vmem:[%s13183_s6 + $0x10] sm:$0xff] }
 0x223   : > { %v8610_v4 = vpop.f32.mrf.mxu0 }
 0x224   : > { %v2315_v23 = vadd.f32 %v8610_v4, %v2146_v41  ;;  %v2033_v4 = vadd.f32 %v13583_v52, %v1880_v31 }
 0x225   : > { %v2308_v42 = vpop.f32.mrf.mxu0 }
 0x226   : > { %v2309_v14 = vadd.f32 %v2308_v42, %v2138_v15  ;;  %v2026_v42 = vadd.f32 %v11310_v8, %v1874_v37  ;;  %v2178_v63 = vadd.f32 %v11329_v49, %v2033_v4 }
 0x227   : > { %v8613_v38 = vpop.f32.mrf.mxu0 }
 0x228   : > { %v8651_v48 = vpop.f32.mrf.mxu1  ;;  %v2327_v62 = vadd.f32 %v8613_v38, %v2162_v53  ;;  %v2170_v38 = vadd.f32 %v2169_v1, %v2026_v42  ;;  %v2477_v1 = vmul.f32 %v11391_v46, %v11391_v46  ;;  %v2489_v53 = vsub.f32 %v9837_v10, %v11350_v61  ;;  %v2550_v61 = vld [vmem:[%s13183_s6 + $0x8] sm:$0xff]  ;;  %v9842_v42 = vld [vmem:[%s10390_s18] sm:$0xff] }
 0x229   : > { %v2320_v13 = vpop.f32.mrf.mxu0  ;;  %v2432_v6 = vadd.f32 %v8651_v48, %v2303_v22 }
 0x22a   : > { %v2425_v26 = vpop.f32.mrf.mxu1  ;;  %v2321_v32 = vadd.f32 %v2320_v13, %v2154_v44 }
 0x22b   : > { %v8616_v51 = vpop.f32.mrf.mxu0  ;;  %v2426_v43 = vadd.f32 %v2425_v26, %v2297_v29  ;;  %v2480_v35 = vsub.f32 %v2432_v6, %v11346_v18  ;;  %v2478_v18 = vmul.f32 %v11385_v58, %v11385_v58  ;;  %v9836_v6 = vld [vmem:[%s10390_s18 + $0x18] sm:$0xff] }
 0x22c   : > { %v8654_v45 = vpop.f32.mrf.mxu1  ;;  %v2339_v55 = vadd.f32 %v8616_v51, %v2178_v63  ;;  %v2487_v63 = vsub.f32 %v9842_v42, %v11334_v20 }
 0x22d   : > { %v2444_v27 = vadd.f32 %v8654_v45, %v2315_v23  ;;  %v2332_v19 = vpop.f32.mrf.mxu0  ;;  %v2496_v13 = vadd.f32 1e-05, %v2480_v35  ;;  %v2490_v45 = vsub.f32 %v9836_v6, %v11339_v17  ;;  %v7233_v17 = vld [vmem:[%s13179_s2] ss:$0 sm:$0xff]  ;;  %v9843_v35 = vld [vmem:[%s10390_s18 + $0x30] sm:$0xff] }
 0x22e   : > { %v2437_v33 = vpop.f32.mrf.mxu1  ;;  %v2333_v22 = vadd.f32 %v2332_v19, %v2170_v38 }
 0x22f   : > { %v2482_v56 = vsub.f32 %v2444_v27, %v2474_v30  ;;  %v2438_v12 = vadd.f32 %v2437_v33, %v2309_v14  ;;  %v2479_v30 = vsub.f32 %v2426_v43, %v11354_v21  ;;  %v9838_v14 = vld [vmem:[%s10390_s18 + $0x28] sm:$0xff] }
 0x230   : > { %v8657_v25 = vpop.f32.mrf.mxu1  ;;  %v2492_v51 = vsub.f32 %v9838_v14, %v11360_v47  ;;  %v9840_v43 = vld [vmem:[%s10390_s18 + $0x8] sm:$0xff] }
 0x231   : > { %v2498_v28 = vadd.f32 1e-05, %v2482_v56  ;;  %v2481_v48 = vsub.f32 %v2438_v12, %v2473_v24  ;;  %v2456_v54 = vadd.f32 %v8657_v25, %v2327_v62  ;;  %v2495_v21 = vadd.f32 1e-05, %v2479_v30  ;;  %v9841_v62 = vld [vmem:[%s10390_s18 + $0x38] sm:$0xff] }
 0x232   : > { %v2449_v41 = vpop.f32.mrf.mxu1  ;;  %v2488_v47 = vsub.f32 %v9840_v43, %v11241_v36  ;;  %v2494_v60 = vsub.f32 %v9841_v62, %v11385_v58  ;;  %v2493_v25 = vsub.f32 %v9843_v35, %v11391_v46  ;;  %v2566_v36 = vsel %vm2561_vm0, %v2550_v61, 0  ;;  %v2556_v35 = vld [vmem:[%s13183_s6 + $0x38] sm:$0xff] }
 0x233   : > { %9756 = vrsqrt.f32 %v2498_v28  ;;  %v2497_v8 = vadd.f32 1e-05, %v2481_v48  ;;  %v2484_v57 = vsub.f32 %v2456_v54, %v2476_v11  ;;  %v2450_v49 = vadd.f32 %v2449_v41, %v2321_v32  ;;  %v7234_v28 = vld [vmem:[%s13180_s3] ss:$0 sm:$0xff] }
 0x234   : > { %v8660_v26 = vpop.f32.mrf.mxu1 }
 0x235   : > { %9758 = vrsqrt.f32 %v2497_v8  ;;  %v2500_v24 = vadd.f32 1e-05, %v2484_v57  ;;  %v2483_v16 = vsub.f32 %v2450_v49, %v2475_v3  ;;  %v2468_v50 = vadd.f32 %v8660_v26, %v2339_v55  ;;  %v2552_v57 = vld [vmem:[%s13183_s6 + $0x18] sm:$0xff] }
 0x236   : > { %v2461_v34 = vpop.f32.mrf.mxu1 }
 0x237   : > { %9760 = vrsqrt.f32 %v2500_v24  ;;  %v2499_v15 = vadd.f32 1e-05, %v2483_v16  ;;  %v2486_v23 = vsub.f32 %v2468_v50, %v2478_v18  ;;  %v2462_v11 = vadd.f32 %v2461_v34, %v2333_v22  ;;  %v2553_v50 = vld [vmem:[%s13183_s6 + $0x20] sm:$0xff] }
 0x238   : > { %9762 = vrsqrt.f32 %v2496_v13  ;;  %v11432_v18 = vand.u32 4294901760, %v2566_v36  ;;  %v2569_v13 = vsel %vm2561_vm0, %v2551_v40, 0  ;;  %v2575_v6 = vsel %vm2561_vm0, %v2553_v50, 0 }
 0x239   : > { %9764 = vrsqrt.f32 %v2499_v15  ;;  %v2502_v5 = vadd.f32 1e-05, %v2486_v23  ;;  %v2485_v39 = vsub.f32 %v2462_v11, %v2477_v1  ;;  %v11492_v61 = vand.u32 4294901760, %v2575_v6 }
 0x23a   : > { %9766 = vrsqrt.f32 %v2495_v21  ;;  %v2572_v21 = vsel %vm2561_vm0, %v2552_v57, 0  ;;  %v2557_v57 = vld [vmem:[%s13183_s6 + $0x40] sm:$0xff] }
 0x23b   : > { %9768 = vrsqrt.f32 %v2502_v5  ;;  %v2501_v31 = vadd.f32 1e-05, %v2485_v39  ;;  %v2554_v5 = vld [vmem:[%s13183_s6 + $0x28] sm:$0xff]  ;;  %v11469_v14 = vand.u32 4294901760, %v2572_v21 }
 0x23d   : > { %9770 = vrsqrt.f32 %v2501_v31  ;;  %v11452_v31 = vsub.f32 %v2566_v36, %v11432_v18 }
 0x240   : > { %v9757_v29 = vpop.eup %9756 }
 0x241   : > { %v2514_v0 = vmul.f32 %v9757_v29, %v2490_v45  ;;  %v11454_v29 = vand.u32 4294901760, %v2569_v13 }
 0x242   : > { %v9759_v7 = vpop.eup %9758 }
 0x243   : > { %v2513_v37 = vmul.f32 %v9759_v7, %v2489_v53  ;;  %v2529_v33 = vmul.f32 %v7233_v17, %v2514_v0 }
 0x244   : > { %v9761_v27 = vpop.eup %9760 }
 0x245   : > { %v9763_v3 = vpop.eup %9762  ;;  %v2516_v52 = vmul.f32 %v9761_v27, %v2492_v51  ;;  %v2528_v19 = vmul.f32 %v7233_v17, %v2513_v37  ;;  %v2544_v30 = vadd.f32 %v7234_v28, %v2529_v33  ;;  %v2578_v51 = vsel %vm2561_vm0, %v2554_v5, 0 }
 0x246   : > { %v9765_v4 = vpop.eup %9764  ;;  %v2512_v32 = vmul.f32 %v9763_v3, %v2488_v47  ;;  %v2683_v37 = vand.u32 4294901760, %v11452_v31 }
 0x247   : > { %v9767_v44 = vpop.eup %9766  ;;  %v2531_v56 = vmul.f32 %v7233_v17, %v2516_v52  ;;  %v2515_v12 = vmul.f32 %v9765_v4, %v2491_v59  ;;  %v2543_v22 = vadd.f32 %v7234_v28, %v2528_v19  ;;  %v11441_v34 = vand.u32 4294901760, %v2544_v30 }
 0x248   : > { %v9769_v2 = vpop.eup %9768  ;;  %v2511_v20 = vmul.f32 %v9767_v44, %v2487_v63  ;;  %v2527_v49 = vmul.f32 %v7233_v17, %v2512_v32  ;;  %v11490_v52 = vsub.f32 %v2569_v13, %v11454_v29  ;;  %v2555_v44 = vld [vmem:[%s13183_s6 + $0x30] sm:$0xff] }
 0x249   : > { %v2546_v48 = vadd.f32 %v7234_v28, %v2531_v56  ;;  %v2530_v54 = vmul.f32 %v7233_v17, %v2515_v12  ;;  %v2518_v58 = vmul.f32 %v9769_v2, %v2494_v60  ;;  %v11463_v0 = vand.u32 4294901760, %v2543_v22 }
 0x24a   : > { %v9771_v38 = vpop.eup %9770  ;;  %v2526_v1 = vmul.f32 %v7233_v17, %v2511_v20  ;;  %v2542_v39 = vadd.f32 %v7234_v28, %v2527_v49  ;;  %v11483_v59 = vsub.f32 %v2544_v30, %v11441_v34  ;;  %v11513_v60 = vsub.f32 %v2572_v21, %v11469_v14  ;;  %v2558_v21 = vld [vmem:[%s13183_s6 + $0x48] sm:$0xff] }
 0x24b   : > { %v11427_v55 = vand.u32 4294901760, %v2546_v48  ;;  %v2545_v46 = vadd.f32 %v7234_v28, %v2530_v54  ;;  %v2533_v41 = vmul.f32 %v7233_v17, %v2518_v58  ;;  %v2517_v8 = vmul.f32 %v9771_v38, %v2493_v25 }
 0x24c   : > { %v2541_v53 = vadd.f32 %v7234_v28, %v2526_v1  ;;  %v11504_v33 = vsub.f32 %v2543_v22, %v11463_v0  ;;  %v11515_v56 = vand.u32 4294901760, %v2578_v51  ;;  %v11523_v63 = vand.u32 4294901760, %v11483_v59 }
 0x24d   : > { %v11435_v26 = vand.u32 4294901760, %v2545_v46  ;;  %v2548_v24 = vadd.f32 %v7234_v28, %v2533_v41  ;;  %v2532_v16 = vmul.f32 %v7233_v17, %v2517_v8  ;;  %v11446_v11 = vsub.f32 %v2546_v48, %v11427_v55 }
 0x24e   : > { %v11485_v17 = vand.u32 4294901760, %v2542_v39  ;;  %v11510_v62 = vand.u32 4294901760, %v2541_v53  ;;  %v2684_v25 = vsub.f32 %v11452_v31, %v2683_v37  ;;  %v2693_v32 = vand.u32 4294901760, %v11490_v52 }
 0x24f   : > { %v11443_v15 = vand.u32 4294901760, %v2548_v24  ;;  %v2547_v23 = vadd.f32 %v7234_v28, %v2532_v16  ;;  %v11466_v10 = vsub.f32 %v2545_v46, %v11435_v26  ;;  %v11480_v9 = vand.u32 4294901760, %v11446_v11 }
 0x250   : > { %v11534_v28 = vsub.f32 %v2542_v39, %v11485_v17  ;;  %v2581_v36 = vsel %vm2561_vm0, %v2555_v44, 0  ;;  %v11541_v54 = vand.u32 4294901760, %v11504_v33  ;;  %v11544_v58 = vsub.f32 %v2575_v6, %v11492_v61 }
 0x251   : > { %8661 = vmatprep.subr.mxu0 %v11443_v15  ;;  %v11458_v45 = vand.u32 4294901760, %v2547_v23  ;;  %v11461_v7 = vsub.f32 %v2548_v24, %v11443_v15  ;;  %v11501_v47 = vand.u32 4294901760, %v11466_v10  ;;  %v2825_v42 = vsub.f32 %v11446_v11, %v11480_v9 }
 0x252   : > { %8662 = vmatpush3.msra.mxu0 %v11443_v15  ;;  %v2703_v40 = vand.u32 4294901760, %v11513_v60  ;;  %v11549_v38 = vsub.f32 %v2541_v53, %v11510_v62  ;;  %v2584_v20 = vsel %vm2561_vm0, %v2556_v35, 0  ;;  %v2839_v46 = vsub.f32 %v11483_v59, %v11523_v63 }
 0x253   : > { %8663 = vmatprep.subr.mxu0 %v11458_v45  ;;  %v11474_v27 = vand.u32 4294901760, %v11461_v7  ;;  %v11477_v3 = vsub.f32 %v2547_v23, %v11458_v45  ;;  %v2832_v48 = vsub.f32 %v11466_v10, %v11501_v47  ;;  %v2826_v30 = vand.u32 4294901760, %v2825_v42 }
 0x254   : > { %8664 = vmatpush3.msra.mxu0 %v11458_v45  ;;  %v11556_v41 = vsub.f32 %v2578_v51, %v11515_v56  ;;  %v11558_v8 = vand.u32 4294901760, %v2581_v36  ;;  %v2685_v49 = vand.u32 4294901760, %v2684_v25  ;;  %v2694_v13 = vsub.f32 %v11490_v52, %v2693_v32 }
 0x255   : > { %8665 = vmatprep.subr.mxu0 %v11427_v55  ;;  %v2811_v4 = vsub.f32 %v11461_v7, %v11474_v27  ;;  %v11498_v43 = vand.u32 4294901760, %v11477_v3  ;;  %v11568_v22 = vand.u32 4294901760, %v11534_v28  ;;  %v2833_v24 = vand.u32 4294901760, %v2832_v48 }
 0x256   : > { %8666 = vmatpush3.msra.mxu0 %v11427_v55  ;;  %v2846_v16 = vsub.f32 %v11504_v33, %v11541_v54  ;;  %v2713_v50 = vand.u32 4294901760, %v11544_v58  ;;  %v11574_v1 = vand.u32 4294901760, %v2584_v20  ;;  %v2704_v23 = vsub.f32 %v11513_v60, %v2703_v40 }
 0x257   : > { %8667 = vmatprep.subr.mxu0 %v11435_v26  ;;  %v2812_v12 = vand.u32 4294901760, %v2811_v4  ;;  %v2818_v2 = vsub.f32 %v11477_v3, %v11498_v43  ;;  %v11584_v5 = vand.u32 4294901760, %v11549_v38  ;;  %v2587_v39 = vsel %vm2561_vm0, %v2557_v57, 0  ;;  %v2559_v4 = vld [vmem:[%s13183_s6 + $0x50] sm:$0xff] }
 0x258   : > { %8668 = vmatpush3.msra.mxu0 %v11435_v26  ;;  %v2840_v6 = vand.u32 4294901760, %v2839_v46  ;;  %v2723_v53 = vand.u32 4294901760, %v11556_v41  ;;  %v11590_v51 = vsub.f32 %v2581_v36, %v11558_v8  ;;  %v2695_v44 = vand.u32 4294901760, %v2694_v13 }
 0x259   : > { %8669 = vmatprep.subr.mxu0 %v11441_v34  ;;  %8695 = vmatprep.subr.mxu1 %v2812_v12  ;;  %v2819_v19 = vand.u32 4294901760, %v2818_v2  ;;  %v2590_v2 = vsel %vm2561_vm0, %v2558_v21, 0  ;;  %v2847_v42 = vand.u32 4294901760, %v2846_v16  ;;  %v2714_v35 = vsub.f32 %v11544_v58, %v2713_v50 }
 0x25a   : > { %8670 = vmatpush3.msra.mxu0 %v11441_v34  ;;  %8696 = vmatpush3.msra.mxu1 %v2812_v12  ;;  %v2853_v12 = vsub.f32 %v11534_v28, %v11568_v22  ;;  %v11603_v25 = vsub.f32 %v2584_v20, %v11574_v1  ;;  %v11605_v36 = vand.u32 4294901760, %v2587_v39  ;;  %v2705_v48 = vand.u32 4294901760, %v2704_v23 }
 0x25b   : > { %8671 = vmatprep.subr.mxu0 %v11463_v0  ;;  %8697 = vmatprep.subr.mxu1 %v2819_v19  ;;  %v2593_v46 = vsel %vm2561_vm0, %v2559_v4, 0  ;;  %v2724_v20 = vsub.f32 %v11556_v41, %v2723_v53  ;;  %v2733_v57 = vand.u32 4294901760, %v11590_v51  ;;  %v2715_v16 = vand.u32 4294901760, %v2714_v35 }
 0x25c   : > { %8672 = vmatpush3.msra.mxu0 %v11463_v0  ;;  %8698 = vmatpush3.msra.mxu1 %v2819_v19  ;;  %v2560_v19 = vld [vmem:[%s13183_s6 + $0x58] sm:$0xff]  ;;  %v2854_v13 = vand.u32 4294901760, %v2853_v12  ;;  %v11626_v21 = vsub.f32 %v2587_v39, %v11605_v36  ;;  %v11628_v23 = vand.u32 4294901760, %v2593_v46 }
 0x25d   : > { %8673 = vmatprep.subr.mxu0 %v11485_v17  ;;  %8699 = vmatprep.subr.mxu1 %v2826_v30  ;;  %v2725_v4 = vand.u32 4294901760, %v2724_v20 }
 0x25e   : > { %8674 = vmatpush3.msra.mxu0 %v11485_v17  ;;  %8700 = vmatpush3.msra.mxu1 %v2826_v30  ;;  %v2860_v30 = vsub.f32 %v11549_v38, %v11584_v5  ;;  %v11646_v35 = vsub.f32 %v2593_v46, %v11628_v23 }
 0x25f   : > { %8675 = vmatprep.subr.mxu0 %v11510_v62  ;;  %8701 = vmatprep.subr.mxu1 %v2833_v24 }
 0x260   : > { %8676 = vmatpush3.msra.mxu0 %v11510_v62  ;;  %8702 = vmatpush3.msra.mxu1 %v2833_v24  ;;  %v2596_v24 = vsel %vm2561_vm0, %v2560_v19, 0 }
 0x261   : > { %8678 = vmatmul.mubr.f32.vlgmr.msra.gmra.mxu0 %v2685_v49  ;;  %8703 = vmatprep.subr.mxu1 %v2840_v6  ;;  %v11619_v49 = vand.u32 4294901760, %v2590_v2  ;;  %v11637_v12 = vand.u32 4294901760, %v2596_v24 }
 0x262   : > { %8729 = vmatprep.subr.mxu0 %v11461_v7  ;;  %8704 = vmatpush3.msra.mxu1 %v2840_v6  ;;  %v2861_v6 = vand.u32 4294901760, %v2860_v30  ;;  %v2773_v30 = vand.u32 4294901760, %v11646_v35 }
 0x263   : > { %8730 = vmatpush3.msra.mxu0 %v11461_v7  ;;  %8705 = vmatprep.subr.mxu1 %v2847_v42  ;;  %v2743_v7 = vand.u32 4294901760, %v11603_v25  ;;  %v11652_v19 = vsub.f32 %v2596_v24, %v11637_v12 }
 0x264   : > { %8731 = vmatprep.subr.mxu0 %v11477_v3  ;;  %8680 = vmatprep.mubr.f32.mxu0 %v2695_v44  ;;  %v2734_v44 = vsub.f32 %v11590_v51, %v2733_v57 }
 0x265   : > { %8706 = vmatpush3.msra.mxu1 %v2847_v42  ;;  %8732 = vmatpush3.msra.mxu0 %v11477_v3  ;;  %v11635_v3 = vsub.f32 %v2590_v2, %v11619_v49  ;;  %v2744_v39 = vsub.f32 %v11603_v25, %v2743_v7  ;;  %v2753_v42 = vand.u32 4294901760, %v11626_v21  ;;  %v2783_v46 = vand.u32 4294901760, %v11652_v19 }
 0x266   : > { %8681 = vmatmul.mubr.f32.gmra.mxu0 %v2705_v48  ;;  %8707 = vmatprep.subr.mxu1 %v2854_v13 }
 0x267   : > { %8733 = vmatprep.subr.mxu0 %v11446_v11  ;;  %8708 = vmatpush3.msra.mxu1 %v2854_v13  ;;  %v2763_v2 = vand.u32 4294901760, %v11635_v3  ;;  %v2745_v48 = vand.u32 4294901760, %v2744_v39  ;;  %v2774_v13 = vsub.f32 %v11646_v35, %v2773_v30 }
 0x268   : > { %8734 = vmatpush3.msra.mxu0 %v11446_v11  ;;  %8709 = vmatprep.subr.mxu1 %v2861_v6  ;;  %v2735_v11 = vand.u32 4294901760, %v2734_v44 }
 0x269   : > { %8735 = vmatprep.subr.mxu0 %v11466_v10  ;;  %8683 = vmatprep.mubr.f32.mxu0 %v2715_v16  ;;  %v2775_v16 = vand.u32 4294901760, %v2774_v13 }
 0x26a   : > { %8710 = vmatpush3.msra.mxu1 %v2861_v6  ;;  %8736 = vmatpush3.msra.mxu0 %v11466_v10  ;;  %v2754_v10 = vsub.f32 %v11626_v21, %v2753_v42 }
 0x26b   : > { %8684 = vmatmul.mubr.f32.gmra.mxu0 %v2725_v4  ;;  %8712 = vmatmul.mubr.f32.vlgmr.msra.gmra.mxu1 %v11432_v18 }
 0x26c   : > { %8737 = vmatprep.subr.mxu0 %v11483_v59  ;;  %8763 = vmatprep.subr.mxu1 %v11443_v15  ;;  %v2755_v20 = vand.u32 4294901760, %v2754_v10 }
 0x26d   : > { %8738 = vmatpush3.msra.mxu0 %v11483_v59  ;;  %8764 = vmatpush3.msra.mxu1 %v11443_v15  ;;  %v2764_v59 = vsub.f32 %v11635_v3, %v2763_v2 }
 0x26e   : > { %8739 = vmatprep.subr.mxu0 %v11504_v33  ;;  %8765 = vmatprep.subr.mxu1 %v11458_v45 }
 0x26f   : > { %8686 = vmatprep.mubr.f32.mxu0 %v2735_v11  ;;  %8714 = vmatprep.mubr.f32.mxu1 %v11454_v29  ;;  %v2765_v24 = vand.u32 4294901760, %v2764_v59 }
 0x270   : > { %8740 = vmatpush3.msra.mxu0 %v11504_v33  ;;  %8766 = vmatpush3.msra.mxu1 %v11458_v45  ;;  %v2784_v33 = vsub.f32 %v11652_v19, %v2783_v46 }
 0x271   : > { %8687 = vmatmul.mubr.f32.gmra.mxu0 %v2745_v48  ;;  %8715 = vmatmul.mubr.f32.gmra.mxu1 %v11469_v14 }
 0x272   : > { %8741 = vmatprep.subr.mxu0 %v11534_v28  ;;  %8767 = vmatprep.subr.mxu1 %v11427_v55 }
 0x273   : > { %8742 = vmatpush3.msra.mxu0 %v11534_v28  ;;  %8768 = vmatpush3.msra.mxu1 %v11427_v55  ;;  %v2785_v28 = vand.u32 4294901760, %v2784_v33 }
 0x274   : > { %8743 = vmatprep.subr.mxu0 %v11549_v38  ;;  %8769 = vmatprep.subr.mxu1 %v11435_v26 }
 0x275   : > { %8689 = vmatprep.mubr.f32.mxu0 %v2755_v20  ;;  %8717 = vmatprep.mubr.f32.mxu1 %v11492_v61 }
 0x276   : > { %8744 = vmatpush3.msra.mxu0 %v11549_v38  ;;  %8770 = vmatpush3.msra.mxu1 %v11435_v26  ;;  %v13586_v38 = vld [vmem:[#allocation56_spill] sm:$0xff] }
 0x277   : > { %8690 = vmatmul.mubr.f32.gmra.mxu0 %v2765_v24  ;;  %8718 = vmatmul.mubr.f32.gmra.mxu1 %v11515_v56 }
 0x278   : > { %8771 = vmatprep.subr.mxu1 %v11441_v34  ;;  %8797 = vmatprep.subr.mxu0 %v11474_v27 }
 0x279   : > { %8772 = vmatpush3.msra.mxu1 %v11441_v34  ;;  %8692 = vmatprep.mubr.f32.mxu0 %v2775_v16 }
 0x27a   : > { %8773 = vmatprep.subr.mxu1 %v11463_v0  ;;  %8720 = vmatprep.mubr.f32.mxu1 %v11558_v8 }
 0x27b   : > { %8774 = vmatpush3.msra.mxu1 %v11463_v0  ;;  %8693 = vmatmul.mubr.f32.gmra.mxu0 %v2785_v28 }
 0x27c   : > { %8721 = vmatmul.mubr.f32.gmra.mxu1 %v11574_v1  ;;  %8775 = vmatprep.subr.mxu1 %v11485_v17 }
 0x27d   : > { %8776 = vmatpush3.msra.mxu1 %v11485_v17  ;;  %8723 = vmatprep.mubr.f32.mxu1 %v11605_v36 }
 0x27e   : > { %8777 = vmatprep.subr.mxu1 %v11510_v62  ;;  %8745 = vmatprep.mubr.f32.mxu0 %v13586_v38 }
 0x27f   : > { %8778 = vmatpush3.msra.mxu1 %v11510_v62  ;;  %8746 = vmatmul.mubr.f32.vlgmr.msra.gmra.mxu0 %v11452_v31 }
 0x280   : > { %8724 = vmatmul.mubr.f32.gmra.mxu1 %v11619_v49  ;;  %8798 = vmatpush3.msra.mxu0 %v11474_v27  ;;  %v13587_v27 = vand.u32 4294901760, %v13586_v38 }
 0x281   : > { %8831 = vmatprep.subr.mxu1 %v11443_v15  ;;  %8799 = vmatprep.subr.mxu0 %v11498_v43 }
 0x282   : > { %8800 = vmatpush3.msra.mxu0 %v11498_v43  ;;  %8726 = vmatprep.mubr.f32.mxu1 %v11628_v23 }
 0x283   : > { %8748 = vmatprep.mubr.f32.mxu0 %v11490_v52  ;;  %8801 = vmatprep.subr.mxu0 %v11480_v9 }
 0x284   : > { %8727 = vmatmul.mubr.f32.gmra.mxu1 %v11637_v12  ;;  %8749 = vmatmul.mubr.f32.gmra.mxu0 %v11513_v60 }
 0x285   : > { %8802 = vmatpush3.msra.mxu0 %v11480_v9  ;;  %8751 = vmatprep.mubr.f32.mxu0 %v11544_v58 }
 0x286   : > { %8803 = vmatprep.subr.mxu0 %v11501_v47  ;;  %8779 = vmatprep.mubr.f32.mxu1 %v13587_v27 }
 0x287   : > { %8804 = vmatpush3.msra.mxu0 %v11501_v47 }
 0x288   : > { %8805 = vmatprep.subr.mxu0 %v11523_v63  ;;  %8752 = vmatmul.mubr.f32.gmra.mxu0 %v11556_v41 }
 0x289   : > { %8780 = vmatmul.mubr.f32.vlgmr.msra.gmra.mxu1 %v2683_v37  ;;  %8806 = vmatpush3.msra.mxu0 %v11523_v63 }
 0x28a   : > { %8832 = vmatpush3.msra.mxu1 %v11443_v15  ;;  %8807 = vmatprep.subr.mxu0 %v11541_v54 }
 0x28b   : > { %8833 = vmatprep.subr.mxu1 %v11458_v45  ;;  %8808 = vmatpush3.msra.mxu0 %v11541_v54 }
 0x28c   : > { %8834 = vmatpush3.msra.mxu1 %v11458_v45  ;;  %8754 = vmatprep.mubr.f32.mxu0 %v11590_v51 }
 0x28d   : > { %8782 = vmatprep.mubr.f32.mxu1 %v2693_v32  ;;  %8809 = vmatprep.subr.mxu0 %v11568_v22 }
 0x28e   : > { %8835 = vmatprep.subr.mxu1 %v11427_v55  ;;  %8755 = vmatmul.mubr.f32.gmra.mxu0 %v11603_v25 }
 0x28f   : > { %8783 = vmatmul.mubr.f32.gmra.mxu1 %v2703_v40  ;;  %8810 = vmatpush3.msra.mxu0 %v11568_v22 }
 0x290   : > { %8836 = vmatpush3.msra.mxu1 %v11427_v55  ;;  %8811 = vmatprep.subr.mxu0 %v11584_v5  ;;  %v13588_v55 = vld [vmem:[#allocation51_spill] sm:$0xff] }
 0x291   : > { %8837 = vmatprep.subr.mxu1 %v11435_v26  ;;  %8812 = vmatpush3.msra.mxu0 %v11584_v5 }
 0x292   : > { %8838 = vmatpush3.msra.mxu1 %v11435_v26  ;;  %8757 = vmatprep.mubr.f32.mxu0 %v11626_v21 }
 0x293   : > { %8785 = vmatprep.mubr.f32.mxu1 %v2713_v50  ;;  %8839 = vmatprep.subr.mxu1 %v11441_v34 }
 0x294   : > { %8758 = vmatmul.mubr.f32.gmra.mxu0 %v11635_v3  ;;  %8786 = vmatmul.mubr.f32.gmra.mxu1 %v2723_v53 }
 0x295   : > { %8840 = vmatpush3.msra.mxu1 %v11441_v34  ;;  %8760 = vmatprep.mubr.f32.mxu0 %v11646_v35 }
 0x296   : > { %8841 = vmatprep.subr.mxu1 %v11463_v0  ;;  %8788 = vmatprep.mubr.f32.mxu1 %v2733_v57 }
 0x297   : > { %8842 = vmatpush3.msra.mxu1 %v11463_v0 }
 0x298   : > { %8843 = vmatprep.subr.mxu1 %v11485_v17  ;;  %8761 = vmatmul.mubr.f32.gmra.mxu0 %v11652_v19 }
 0x299   : > { %8789 = vmatmul.mubr.f32.gmra.mxu1 %v2743_v7  ;;  %8813 = vmatprep.mubr.f32.mxu0 %v13588_v55 }
 0x29a   : > { %8844 = vmatpush3.msra.mxu1 %v11485_v17  ;;  %8791 = vmatprep.mubr.f32.mxu1 %v2753_v42 }
 0x29b   : > { %8845 = vmatprep.subr.mxu1 %v11510_v62 }
 0x29c   : > { %8846 = vmatpush3.msra.mxu1 %v11510_v62  ;;  %8814 = vmatmul.mubr.f32.vlgmr.msra.gmra.mxu0 %v11432_v18 }
 0x29d   : > { %8792 = vmatmul.mubr.f32.gmra.mxu1 %v2763_v2  ;;  %8816 = vmatprep.mubr.f32.mxu0 %v11454_v29 }
 0x29e   : > { %8794 = vmatprep.mubr.f32.mxu1 %v2773_v30 }
 0x2a0   : > { %8817 = vmatmul.mubr.f32.gmra.mxu0 %v11469_v14 }
 0x2a1   : > { %8795 = vmatmul.mubr.f32.gmra.mxu1 %v2783_v46  ;;  %8819 = vmatprep.mubr.f32.mxu0 %v11492_v61 }
 0x2a2   : > { %8847 = vmatprep.mubr.f32.mxu1 %v13588_v55 }
 0x2a4   : > { %8820 = vmatmul.mubr.f32.gmra.mxu0 %v11515_v56 }
 0x2a5   : > { %8848 = vmatmul.mubr.f32.vlgmr.msra.gmra.mxu1 %v11432_v18  ;;  %8822 = vmatprep.mubr.f32.mxu0 %v11558_v8  ;;  %v3656_v18 = vld [vmem:[#allocation8] sm:$0xff] }
 0x2a6   : > { %8850 = vmatprep.mubr.f32.mxu1 %v11454_v29  ;;  %v3666_v26 = vsel %vm3664_vm1, %v3656_v18, 0 }
 0x2a7   : > { %v11795_v34 = vand.u32 4294901760, %v3666_v26 }
 0x2a8   : > { %8823 = vmatmul.mubr.f32.gmra.mxu0 %v11574_v1 }
 0x2a9   : > { %8851 = vmatmul.mubr.f32.gmra.mxu1 %v11469_v14  ;;  %8825 = vmatprep.mubr.f32.mxu0 %v11605_v36  ;;  %13589 = vst [vmem:[#allocation94_spill] sm:$0xff] %v11795_v34  ;;  %v11798_v15 = vsub.f32 %v3666_v26, %v11795_v34 }
 0x2aa   : > { %8853 = vmatprep.mubr.f32.mxu1 %v11492_v61 }
 0x2ab   : > { %13590 = vst [vmem:[#allocation96_spill] sm:$0xff] %v11798_v15  ;;  %v13369_v31 = vand.u32 4294901760, %v11798_v15 }
 0x2ac   : > { %8826 = vmatmul.mubr.f32.gmra.mxu0 %v11619_v49 }
 0x2ad   : > { %8854 = vmatmul.mubr.f32.gmra.mxu1 %v11515_v56  ;;  %8828 = vmatprep.mubr.f32.mxu0 %v11628_v23  ;;  %v3769_v29 = vsub.f32 %v11798_v15, %v13369_v31 }
 0x2ae   : > { %8856 = vmatprep.mubr.f32.mxu1 %v11558_v8 }
 0x2af   : > { %v3770_v45 = vand.u32 4294901760, %v3769_v29 }
 0x2b0   : > { %8829 = vmatmul.mubr.f32.gmra.mxu0 %v11637_v12 }
 0x2b1   : > { %8857 = vmatmul.mubr.f32.gmra.mxu1 %v11574_v1  ;;  %8889 = vmatprep.mubr.f32.mxu0 %v3770_v45 }
 0x2b2   : > { %8859 = vmatprep.mubr.f32.mxu1 %v11605_v36 }
 0x2b5   : > { %8860 = vmatmul.mubr.f32.gmra.mxu1 %v11619_v49 }
 0x2b6   : > { %8862 = vmatprep.mubr.f32.mxu1 %v11628_v23 }
 0x2b9   : > { %8863 = vmatmul.mubr.f32.gmra.mxu1 %v11637_v12 }
 0x2ba   : > { %8925 = vmatprep.mubr.f32.mxu1 %v11795_v34 }
 0x321   : > { %v8679_v0 = vpop.f32.mrf.mxu0 }
 0x323   : > { %v2677_v14 = vpop.f32.mrf.mxu0 }
 0x326   : > { %v8682_v9 = vpop.f32.mrf.mxu0 }
 0x328   : > { %v2697_v17 = vpop.f32.mrf.mxu0 }
 0x32b   : > { %v8685_v37 = vpop.f32.mrf.mxu0  ;;  %v8713_v52 = vpop.f32.mrf.mxu1 }
 0x32c   : > { %v11805_v61 = vadd.f32 %v8713_v52, %v8679_v0 }
 0x32d   : > { %v2717_v43 = vpop.f32.mrf.mxu0  ;;  %v2898_v47 = vpop.f32.mrf.mxu1 }
 0x32e   : > { %13591 = vst [vmem:[#allocation97_spill] sm:$0xff] %v11805_v61  ;;  %v2899_v62 = vadd.f32 %v2898_v47, %v2677_v14 }
 0x331   : > { %v8688_v60 = vpop.f32.mrf.mxu0  ;;  %v8716_v56 = vpop.f32.mrf.mxu1 }
 0x332   : > { %v2917_v0 = vadd.f32 %v8716_v56, %v8682_v9 }
 0x333   : > { %v2737_v63 = vpop.f32.mrf.mxu0  ;;  %v2910_v32 = vpop.f32.mrf.mxu1 }
 0x334   : > { %v2911_v52 = vadd.f32 %v2910_v32, %v2697_v17 }
 0x337   : > { %v8691_v54 = vpop.f32.mrf.mxu0  ;;  %v8719_v58 = vpop.f32.mrf.mxu1 }
 0x338   : > { %v2929_v47 = vadd.f32 %v8719_v58, %v8685_v37 }
 0x339   : > { %v2757_v40 = vpop.f32.mrf.mxu0  ;;  %v2922_v41 = vpop.f32.mrf.mxu1 }
 0x33a   : > { %v2923_v31 = vadd.f32 %v2922_v41, %v2717_v43 }
 0x33b   : > { %v8694_v8 = vpop.f32.mrf.mxu0 }
 0x33c   : > { %v8722_v22 = vpop.f32.mrf.mxu1 }
 0x33d   : > { %v2777_v50 = vpop.f32.mrf.mxu0  ;;  %v2941_v34 = vadd.f32 %v8722_v22, %v8688_v60 }
 0x33e   : > { %v2934_v1 = vpop.f32.mrf.mxu1 }
 0x33f   : > { %v8747_v5 = vpop.f32.mrf.mxu0  ;;  %v2935_v61 = vadd.f32 %v2934_v1, %v2737_v63 }
 0x340   : > { %v8725_v53 = vpop.f32.mrf.mxu1 }
 0x341   : > { %v3052_v51 = vpop.f32.mrf.mxu0 }
 0x342   : > { %v2946_v25 = vpop.f32.mrf.mxu1  ;;  %v3053_v56 = vadd.f32 %v3052_v51, %v2899_v62 }
 0x343   : > { %v2947_v32 = vadd.f32 %v2946_v25, %v2757_v40 }
 0x344   : > { %v8728_v36 = vpop.f32.mrf.mxu1  ;;  %v8750_v57 = vpop.f32.mrf.mxu0 }
 0x345   : > { %v2965_v37 = vadd.f32 %v8728_v36, %v8694_v8  ;;  %v3074_v58 = vadd.f32 %v8750_v57, %v2917_v0 }
 0x346   : > { %v2958_v49 = vpop.f32.mrf.mxu1  ;;  %v3066_v7 = vpop.f32.mrf.mxu0 }
 0x347   : > { %v2959_v41 = vadd.f32 %v2958_v49, %v2777_v50  ;;  %v3067_v43 = vadd.f32 %v3066_v7, %v2911_v52 }
 0x348   : > { %v8753_v21 = vpop.f32.mrf.mxu0 }
 0x349   : > { %v8781_v23 = vpop.f32.mrf.mxu1  ;;  %v3088_v22 = vadd.f32 %v8753_v21, %v2929_v47 }
 0x34a   : > { %v3080_v6 = vpop.f32.mrf.mxu0 }
 0x34b   : > { %v3210_v4 = vpop.f32.mrf.mxu1 }
 0x34e   : > { %v8756_v44 = vpop.f32.mrf.mxu0 }
 0x34f   : > { %v8784_v3 = vpop.f32.mrf.mxu1  ;;  %v3102_v1 = vadd.f32 %v8756_v44, %v2941_v34 }
 0x350   : > { %v3094_v12 = vpop.f32.mrf.mxu0 }
 0x351   : > { %v3226_v39 = vpop.f32.mrf.mxu1  ;;  %v3095_v51 = vadd.f32 %v3094_v12, %v2935_v61 }
 0x352   : > { %v3227_v62 = vadd.f32 %v3226_v39, %v3067_v43  ;;  %v3610_v43 = vld [vmem:[#allocation5 + $0x10] sm:$0xff] }
 0x354   : > { %v8759_v42 = vpop.f32.mrf.mxu0  ;;  %v8787_v35 = vpop.f32.mrf.mxu1 }
 0x355   : > { %v3251_v40 = vadd.f32 %v8787_v35, %v3088_v22  ;;  %v3619_v22 = vld [vmem:[#allocation7 + $0x28] sm:$0xff] }
 0x356   : > { %v3108_v11 = vpop.f32.mrf.mxu0  ;;  %v3242_v2 = vpop.f32.mrf.mxu1 }
 0x357   : > { %v3109_v0 = vadd.f32 %v3108_v11, %v2947_v32 }
 0x358   : > { %v8762_v19 = vpop.f32.mrf.mxu0 }
 0x359   : > { %v8790_v48 = vpop.f32.mrf.mxu1  ;;  %v3130_v49 = vadd.f32 %v8762_v19, %v2965_v37 }
 0x35a   : > { %v3122_v10 = vpop.f32.mrf.mxu0  ;;  %v3267_v8 = vadd.f32 %v8790_v48, %v3102_v1 }
 0x35b   : > { %v3258_v30 = vpop.f32.mrf.mxu1  ;;  %v3123_v7 = vadd.f32 %v3122_v10, %v2959_v41  ;;  %v11820_v10 = vld [vmem:[#allocation7 + $0x8] sm:$0xff] }
 0x35c   : > { %v8815_v59 = vpop.f32.mrf.mxu0  ;;  %v3259_v52 = vadd.f32 %v3258_v30, %v3095_v51 }
 0x35d   : > { %v8793_v46 = vpop.f32.mrf.mxu1 }
 0x35e   : > { %v3393_v20 = vpop.f32.mrf.mxu0 }
 0x35f   : > { %v3274_v13 = vpop.f32.mrf.mxu1 }
 0x360   : > { %v8818_v24 = vpop.f32.mrf.mxu0 }
 0x361   : > { %v8796_v33 = vpop.f32.mrf.mxu1 }
 0x362   : > { %v3405_v16 = vpop.f32.mrf.mxu0  ;;  %v3299_v11 = vadd.f32 %v8796_v33, %v3130_v49 }
 0x363   : > { %v11807_v28 = vpop.f32.mrf.mxu1  ;;  %v3406_v61 = vadd.f32 %v3405_v16, %v3227_v62  ;;  %v3613_v62 = vld [vmem:[#allocation5 + $0x28] sm:$0xff] }
 0x364   : > { %13592 = vst [vmem:[#allocation99_spill] sm:$0xff] %v11807_v28  ;;  %v8821_v38 = vpop.f32.mrf.mxu0  ;;  %v2953_v28 = vadd.f32 %v8725_v53, %v8691_v54  ;;  %v3081_v54 = vadd.f32 %v3080_v6, %v2923_v31  ;;  %v3275_v31 = vadd.f32 %v3274_v13, %v3109_v0  ;;  %v3612_v0 = vld [vmem:[#allocation5 + $0x20] sm:$0xff] }
 0x365   : > { %v8849_v27 = vpop.f32.mrf.mxu1 }
 0x366   : > { %v3417_v55 = vpop.f32.mrf.mxu0  ;;  %v3116_v25 = vadd.f32 %v8759_v42, %v2953_v28  ;;  %v3243_v57 = vadd.f32 %v3242_v2, %v3081_v54  ;;  %v3424_v2 = vadd.f32 %v8821_v38, %v3251_v40  ;;  %v11827_v28 = vld [vmem:[#allocation5 + $0x8] sm:$0xff]  ;;  %v3611_v38 = vld [vmem:[#allocation5 + $0x18] sm:$0xff] }
 0x367   : > { %v11809_v18 = vpop.f32.mrf.mxu1 }
 0x368   : > { %13593 = vst [vmem:[#allocation95_spill] sm:$0xff] %v11809_v18  ;;  %v8824_v26 = vpop.f32.mrf.mxu0  ;;  %v13594_v18 = vld [vmem:[#allocation97_spill] sm:$0xff]  ;;  %v3283_v21 = vadd.f32 %v8793_v46, %v3116_v25  ;;  %v3418_v48 = vadd.f32 %v3417_v55, %v3243_v57 }
 0x369   : > { %v8852_v29 = vpop.f32.mrf.mxu1  ;;  %v3060_v9 = vadd.f32 %v8747_v5, %v13594_v18  ;;  %v3211_v5 = vadd.f32 %v3210_v4, %v3053_v56  ;;  %v3235_v18 = vadd.f32 %v8784_v3, %v3074_v58  ;;  %v11814_v3 = vld [vmem:[#allocation7 + $0x18] sm:$0xff]  ;;  %v3616_v55 = vld [vmem:[#allocation7 + $0x10] sm:$0xff] }
 0x36a   : > { %v3429_v45 = vpop.f32.mrf.mxu0 }
 0x36b   : > { %v3550_v14 = vpop.f32.mrf.mxu1  ;;  %v3219_v60 = vadd.f32 %v8781_v23, %v3060_v9  ;;  %v3412_v50 = vadd.f32 %v8818_v24, %v3235_v18  ;;  %v3436_v23 = vadd.f32 %v8824_v26, %v3267_v8  ;;  %v3394_v6 = vadd.f32 %v3393_v20, %v3211_v5  ;;  %v13595_v16 = vld [vmem:[#allocation99_spill] sm:$0xff]  ;;  %v3657_v8 = vld [vmem:[#allocation8 + $0x8] sm:$0xff] }
 0x36c   : > { %v8827_v15 = vpop.f32.mrf.mxu0  ;;  %v3430_v12 = vadd.f32 %v3429_v45, %v3259_v52  ;;  %v11822_v30 = vadd.f32 %v3550_v14, %v3406_v61  ;;  %v11834_v45 = vld [vmem:[#allocation5] sm:$0xff]  ;;  %v11836_v14 = vld [vmem:[#allocation7] sm:$0xff] }
 0x36d   : > { %v8855_v17 = vpop.f32.mrf.mxu1  ;;  %v3400_v47 = vadd.f32 %v8815_v59, %v3219_v60  ;;  %v11812_v4 = vadd.f32 %v8852_v29, %v3412_v50  ;;  %v3448_v39 = vadd.f32 %v8827_v15, %v3283_v21  ;;  %v3291_v15 = vadd.f32 %v13595_v16, %v3123_v7  ;;  %v3618_v60 = vld [vmem:[#allocation7 + $0x20] sm:$0xff] }
 0x36e   : > { %v3441_v63 = vpop.f32.mrf.mxu0  ;;  %v3569_v29 = vadd.f32 %v8855_v17, %v3424_v2  ;;  %v3640_v17 = vmul.f32 %v3616_v55, %v11822_v30 }
 0x36f   : > { %v3562_v53 = vpop.f32.mrf.mxu1  ;;  %v11818_v19 = vadd.f32 %v8849_v27, %v3400_v47  ;;  %v3442_v59 = vadd.f32 %v3441_v63, %v3275_v31  ;;  %v13596_v26 = vld [vmem:[#allocation95_spill] sm:$0xff]  ;;  %v3641_v27 = vmul.f32 %v11814_v3, %v11812_v4  ;;  %v11850_v47 = vsel %vm3664_vm1, %v3657_v8, 0 }
 0x370   : > { %v8830_v34 = vpop.f32.mrf.mxu0  ;;  %v11830_v33 = vadd.f32 %v13596_v26, %v3394_v6  ;;  %v3563_v9 = vadd.f32 %v3562_v53, %v3418_v48  ;;  %v11868_v26 = vand.u32 4294901760, %v11850_v47 }
 0x371   : > { %v8858_v36 = vpop.f32.mrf.mxu1  ;;  %v3639_v41 = vmul.f32 %v11820_v10, %v11818_v19  ;;  %v3460_v1 = vadd.f32 %v8830_v34, %v3299_v11  ;;  %v3625_v34 = vmul.f32 %v3613_v62, %v3569_v29 }
 0x372   : > { %v11816_v42 = vadd.f32 %v8858_v36, %v3436_v23  ;;  %v3453_v46 = vpop.f32.mrf.mxu0  ;;  %v3638_v51 = vmul.f32 %v11836_v14, %v11830_v33  ;;  %v3643_v36 = vmul.f32 %v3619_v22, %v3569_v29  ;;  %v3642_v57 = vmul.f32 %v3618_v60, %v3563_v9 }
 0x373   : > { %v3574_v44 = vpop.f32.mrf.mxu1  ;;  %v3454_v63 = vadd.f32 %v3453_v46, %v3291_v15 }
 0x374   : > { %v11824_v20 = vadd.f32 %v3574_v44, %v3430_v12  ;;  %v3645_v56 = vmul.f32 %v11827_v28, %v11816_v42 }
 0x375   : > { %v8861_v35 = vpop.f32.mrf.mxu1 }
 0x376   : > { %v3593_v13 = vadd.f32 %v8861_v35, %v3448_v39  ;;  %v3644_v54 = vmul.f32 %v11834_v45, %v11824_v20  ;;  %v3651_v49 = vadd.f32 %v3645_v56, %v3639_v41  ;;  %v3624_v39 = vmul.f32 %v3612_v0, %v3563_v9 }
 0x377   : > { %v3586_v24 = vpop.f32.mrf.mxu1 }
 0x378   : > { %v3647_v32 = vmul.f32 %v3611_v38, %v3593_v13  ;;  %v3587_v37 = vadd.f32 %v3586_v24, %v3442_v59  ;;  %v3650_v44 = vadd.f32 %v3644_v54, %v3638_v51  ;;  %v11854_v35 = vand.u32 4294901760, %v3651_v49 }
 0x379   : > { %v8864_v58 = vpop.f32.mrf.mxu1  ;;  %v3629_v11 = vmul.f32 %v11814_v3, %v3593_v13  ;;  %v3623_v24 = vmul.f32 %v3611_v38, %v11812_v4  ;;  %v3622_v4 = vmul.f32 %v3610_v43, %v11822_v30  ;;  %v3627_v38 = vmul.f32 %v11820_v10, %v11816_v42 }
 0x37a   : > { %v3653_v53 = vadd.f32 %v3647_v32, %v3641_v27  ;;  %v3646_v5 = vmul.f32 %v3610_v43, %v3587_v37  ;;  %v3605_v25 = vadd.f32 %v8864_v58, %v3460_v1  ;;  %v11865_v16 = vand.u32 4294901760, %v3650_v44 }
 0x37b   : > { %v3598_v18 = vpop.f32.mrf.mxu1  ;;  %v3628_v15 = vmul.f32 %v3616_v55, %v3587_v37  ;;  %v11884_v55 = vsub.f32 %v3651_v49, %v11854_v35  ;;  %v3635_v9 = vsub.f32 %v3623_v24, %v3629_v11  ;;  %v3621_v42 = vmul.f32 %v11827_v28, %v11818_v19  ;;  %v3659_v49 = vld [vmem:[#allocation8 + $0x18] sm:$0xff]  ;;  %v3660_v24 = vld [vmem:[#allocation8 + $0x20] sm:$0xff] }
 0x37c   : > { %v3599_v40 = vadd.f32 %v3598_v18, %v3454_v63  ;;  %v3652_v50 = vadd.f32 %v3646_v5, %v3640_v17  ;;  %v11847_v7 = vand.u32 4294901760, %v3653_v53  ;;  %v3631_v52 = vmul.f32 %v3619_v22, %v3605_v25 }
 0x37d   : > { %v3649_v21 = vmul.f32 %v3613_v62, %v3605_v25  ;;  %v3626_v10 = vmul.f32 %v11836_v14, %v11824_v20  ;;  %v11904_v58 = vsub.f32 %v3650_v44, %v11865_v16  ;;  %v3634_v41 = vsub.f32 %v3622_v4, %v3628_v15  ;;  %v3658_v62 = vld [vmem:[#allocation8 + $0x10] sm:$0xff] }
 0x37e   : > { %v3648_v23 = vmul.f32 %v3612_v0, %v3599_v40  ;;  %v11852_v31 = vand.u32 4294901760, %v3652_v50  ;;  %v3630_v61 = vmul.f32 %v3618_v60, %v3599_v40  ;;  %v11858_v2 = vsub.f32 %v3653_v53, %v11847_v7 }
 0x37f   : > { %v3655_v6 = vadd.f32 %v3649_v21, %v3643_v36  ;;  %v3637_v48 = vsub.f32 %v3625_v34, %v3631_v52  ;;  %v3620_v20 = vmul.f32 %v11834_v45, %v11830_v33  ;;  %v3633_v28 = vsub.f32 %v3621_v42, %v3627_v38 }
 0x380   : > { %v3654_v12 = vadd.f32 %v3648_v23, %v3642_v57  ;;  %v11871_v27 = vsub.f32 %v3652_v50, %v11852_v31  ;;  %v3636_v13 = vsub.f32 %v3624_v39, %v3630_v61  ;;  %v11897_v30 = vand.u32 4294901760, %v11858_v2 }
 0x381   : > { %v11860_v59 = vand.u32 4294901760, %v3655_v6  ;;  %v11887_v56 = vand.u32 4294901760, %v3637_v48  ;;  %v11919_v14 = vand.u32 4294901760, %v3635_v9  ;;  %v11923_v1 = vand.u32 4294901760, %v11884_v55 }
 0x382   : > { %v11862_v46 = vand.u32 4294901760, %v3654_v12  ;;  %v11907_v43 = vand.u32 4294901760, %v3636_v13  ;;  %v11915_v19 = vand.u32 4294901760, %v11871_v27  ;;  %v3872_v53 = vsub.f32 %v11858_v2, %v11897_v30 }
 0x383   : > { %v11874_v3 = vsub.f32 %v3655_v6, %v11860_v59  ;;  %8865 = vmatprep.subr.mxu0 %v11860_v59  ;;  %v11926_v63 = vsub.f32 %v3637_v48, %v11887_v56  ;;  %v3632_v5 = vsub.f32 %v3620_v20, %v3626_v10  ;;  %v11932_v33 = vand.u32 4294901760, %v3634_v41 }
 0x384   : > { %v11877_v29 = vsub.f32 %v3654_v12, %v11862_v46  ;;  %8866 = vmatpush3.msra.mxu0 %v11860_v59  ;;  %v11935_v45 = vsub.f32 %v3636_v13, %v11907_v43  ;;  %v3879_v18 = vsub.f32 %v11871_v27, %v11915_v19  ;;  %v11941_v51 = vand.u32 4294901760, %v11904_v58 }
 0x385   : > { %8867 = vmatprep.subr.mxu0 %v11862_v46  ;;  %v11891_v32 = vand.u32 4294901760, %v11874_v3  ;;  %v11943_v25 = vand.u32 4294901760, %v3633_v28  ;;  %v11948_v40 = vsub.f32 %v11850_v47, %v11868_v26  ;;  %v11951_v8 = vsub.f32 %v3635_v9, %v11919_v14  ;;  %v3661_v9 = vld [vmem:[#allocation8 + $0x28] sm:$0xff] }
 0x386   : > { %v11894_v37 = vand.u32 4294901760, %v11877_v29  ;;  %8868 = vmatpush3.msra.mxu0 %v11862_v46  ;;  %v3873_v36 = vand.u32 4294901760, %v3872_v53  ;;  %v3886_v0 = vsub.f32 %v11884_v55, %v11923_v1  ;;  %v11957_v57 = vand.u32 4294901760, %v11926_v63 }
 0x387   : > { %8869 = vmatprep.subr.mxu0 %v11847_v7  ;;  %v3858_v22 = vsub.f32 %v11874_v3, %v11891_v32  ;;  %v11959_v50 = vand.u32 4294901760, %v3632_v5  ;;  %v3672_v52 = vsel %vm3664_vm1, %v3658_v62, 0  ;;  %v11964_v21 = vsub.f32 %v3634_v41, %v11932_v33 }
 0x388   : > { %v3865_v60 = vsub.f32 %v11877_v29, %v11894_v37  ;;  %8870 = vmatpush3.msra.mxu0 %v11847_v7  ;;  %v3880_v23 = vand.u32 4294901760, %v3879_v18  ;;  %v3893_v34 = vsub.f32 %v11904_v58, %v11941_v51  ;;  %v11970_v44 = vand.u32 4294901760, %v11935_v45 }
 0x389   : > { %8871 = vmatprep.subr.mxu0 %v11852_v31  ;;  %v3859_v17 = vand.u32 4294901760, %v3858_v22  ;;  %v3778_v47 = vand.u32 4294901760, %v11948_v40  ;;  %v3675_v6 = vsel %vm3664_vm1, %v3659_v49, 0  ;;  %v11976_v61 = vsub.f32 %v3633_v28, %v11943_v25 }
 0x38a   : > { %v3866_v54 = vand.u32 4294901760, %v3865_v60  ;;  %8872 = vmatpush3.msra.mxu0 %v11852_v31  ;;  %v3887_v12 = vand.u32 4294901760, %v3886_v0  ;;  %v3900_v39 = vsub.f32 %v11926_v63, %v11957_v57  ;;  %v11982_v11 = vand.u32 4294901760, %v11951_v8  ;;  %v3662_v0 = vld [vmem:[#allocation8 + $0x30] sm:$0xff] }
 0x38b   : > { %8873 = vmatprep.subr.mxu0 %v11854_v35  ;;  %8901 = vmatprep.subr.mxu1 %v3859_v17  ;;  %v11985_v48 = vand.u32 4294901760, %v3672_v52  ;;  %v11988_v15 = vsub.f32 %v3632_v5, %v11959_v50  ;;  %v3894_v13 = vand.u32 4294901760, %v3893_v34  ;;  %v3907_v4 = vsub.f32 %v11935_v45, %v11970_v44 }
 0x38c   : > { %8874 = vmatpush3.msra.mxu0 %v11854_v35  ;;  %8902 = vmatpush3.msra.mxu1 %v3859_v17  ;;  %v11994_v38 = vand.u32 4294901760, %v11964_v21  ;;  %v3779_v42 = vsub.f32 %v11948_v40, %v3778_v47  ;;  %v12000_v10 = vand.u32 4294901760, %v3675_v6  ;;  %v3901_v41 = vand.u32 4294901760, %v3900_v39 }
 0x38d   : > { %8875 = vmatprep.subr.mxu0 %v11865_v16  ;;  %8903 = vmatprep.subr.mxu1 %v3866_v54  ;;  %v3914_v22 = vsub.f32 %v11951_v8, %v11982_v11  ;;  %v12006_v60 = vand.u32 4294901760, %v11976_v61  ;;  %v3678_v20 = vsel %vm3664_vm1, %v3660_v24, 0  ;;  %v3681_v28 = vsel %vm3664_vm1, %v3661_v9, 0 }
 0x38e   : > { %8876 = vmatpush3.msra.mxu0 %v11865_v16  ;;  %8904 = vmatpush3.msra.mxu1 %v3866_v54  ;;  %v3908_v17 = vand.u32 4294901760, %v3907_v4  ;;  %v3921_v54 = vsub.f32 %v11964_v21, %v11994_v38  ;;  %v12015_v53 = vand.u32 4294901760, %v11988_v15  ;;  %v12018_v5 = vsub.f32 %v3672_v52, %v11985_v48  ;;  %v3663_v52 = vld [vmem:[#allocation8 + $0x38] sm:$0xff] }
 0x38f   : > { %8877 = vmatprep.subr.mxu0 %v11887_v56  ;;  %8905 = vmatprep.subr.mxu1 %v3873_v36  ;;  %v3780_v18 = vand.u32 4294901760, %v3779_v42  ;;  %v12022_v62 = vsub.f32 %v3675_v6, %v12000_v10  ;;  %v3915_v49 = vand.u32 4294901760, %v3914_v22  ;;  %v12029_v34 = vand.u32 4294901760, %v3681_v28 }
 0x390   : > { %8878 = vmatpush3.msra.mxu0 %v11887_v56  ;;  %8906 = vmatpush3.msra.mxu1 %v3873_v36  ;;  %v12024_v36 = vand.u32 4294901760, %v3678_v20  ;;  %v3922_v6 = vand.u32 4294901760, %v3921_v54  ;;  %v3788_v39 = vand.u32 4294901760, %v12018_v5  ;;  %v3684_v24 = vsel %vm3664_vm1, %v3662_v0, 0 }
 0x391   : > { %8879 = vmatprep.subr.mxu0 %v11907_v43  ;;  %8907 = vmatprep.subr.mxu1 %v3880_v23  ;;  %v3687_v9 = vsel %vm3664_vm1, %v3663_v52, 0  ;;  %v12047_v22 = vand.u32 4294901760, %v3684_v24 }
 0x392   : > { %8880 = vmatpush3.msra.mxu0 %v11907_v43  ;;  %8908 = vmatpush3.msra.mxu1 %v3880_v23  ;;  %v3928_v23 = vsub.f32 %v11976_v61, %v12006_v60  ;;  %v12039_v4 = vsub.f32 %v3678_v20, %v12024_v36  ;;  %v3789_v20 = vsub.f32 %v12018_v5, %v3788_v39  ;;  %v12053_v54 = vand.u32 4294901760, %v3687_v9 }
 0x393   : > { %8881 = vmatprep.subr.mxu0 %v11919_v14  ;;  %8909 = vmatprep.subr.mxu1 %v3887_v12 }
 0x394   : > { %8882 = vmatpush3.msra.mxu0 %v11919_v14  ;;  %8910 = vmatpush3.msra.mxu1 %v3887_v12  ;;  %v3935_v12 = vsub.f32 %v11988_v15, %v12015_v53  ;;  %v3929_v42 = vand.u32 4294901760, %v3928_v23  ;;  %v3790_v0 = vand.u32 4294901760, %v3789_v20 }
 0x395   : > { %8883 = vmatprep.subr.mxu0 %v11932_v33  ;;  %8911 = vmatprep.subr.mxu1 %v3894_v13 }
 0x396   : > { %8884 = vmatpush3.msra.mxu0 %v11932_v33  ;;  %8912 = vmatpush3.msra.mxu1 %v3894_v13  ;;  %v3798_v13 = vand.u32 4294901760, %v12022_v62 }
 0x397   : > { %8885 = vmatprep.subr.mxu0 %v11943_v25  ;;  %8913 = vmatprep.subr.mxu1 %v3901_v41 }
 0x398   : > { %8886 = vmatpush3.msra.mxu0 %v11943_v25  ;;  %8914 = vmatpush3.msra.mxu1 %v3901_v41  ;;  %v12044_v41 = vsub.f32 %v3681_v28, %v12029_v34  ;;  %v3808_v28 = vand.u32 4294901760, %v12039_v4 }
 0x399   : > { %8887 = vmatprep.subr.mxu0 %v11959_v50  ;;  %8915 = vmatprep.subr.mxu1 %v3908_v17 }
 0x39a   : > { %8888 = vmatpush3.msra.mxu0 %v11959_v50  ;;  %8916 = vmatpush3.msra.mxu1 %v3908_v17  ;;  %v3936_v17 = vand.u32 4294901760, %v3935_v12  ;;  %v3809_v23 = vsub.f32 %v12039_v4, %v3808_v28 }
 0x39b   : > { %8917 = vmatprep.subr.mxu1 %v3915_v49  ;;  %8937 = vmatprep.subr.mxu0 %v11874_v3 }
 0x39c   : > { %8890 = vmatmul.mubr.f32.vlgmr.msra.gmra.mxu0 %v3780_v18  ;;  %8918 = vmatpush3.msra.mxu1 %v3915_v49  ;;  %v12064_v18 = vsub.f32 %v3684_v24, %v12047_v22  ;;  %v12069_v49 = vsub.f32 %v3687_v9, %v12053_v54 }
 0x39d   : > { %8938 = vmatpush3.msra.mxu0 %v11874_v3  ;;  %8919 = vmatprep.subr.mxu1 %v3922_v6  ;;  %v3799_v3 = vsub.f32 %v12022_v62, %v3798_v13 }
 0x39e   : > { %8939 = vmatprep.subr.mxu0 %v11877_v29  ;;  %8920 = vmatpush3.msra.mxu1 %v3922_v6  ;;  %v3828_v52 = vand.u32 4294901760, %v12064_v18  ;;  %v3838_v6 = vand.u32 4294901760, %v12069_v49 }
 0x39f   : > { %8940 = vmatpush3.msra.mxu0 %v11877_v29  ;;  %8921 = vmatprep.subr.mxu1 %v3929_v42  ;;  %v3818_v29 = vand.u32 4294901760, %v12044_v41 }
 0x3a0   : > { %8941 = vmatprep.subr.mxu0 %v11858_v2  ;;  %8922 = vmatpush3.msra.mxu1 %v3929_v42  ;;  %v3829_v24 = vsub.f32 %v12064_v18, %v3828_v52 }
 0x3a1   : > { %8942 = vmatpush3.msra.mxu0 %v11858_v2  ;;  %8923 = vmatprep.subr.mxu1 %v3936_v17  ;;  %v3800_v2 = vand.u32 4294901760, %v3799_v3 }
 0x3a2   : > { %8943 = vmatprep.subr.mxu0 %v11871_v27  ;;  %8924 = vmatpush3.msra.mxu1 %v3936_v17 }
 0x3a3   : > { %8944 = vmatpush3.msra.mxu0 %v11871_v27  ;;  %8926 = vmatmul.mubr.f32.vlgmr.msra.gmra.mxu1 %v11868_v26  ;;  %v3819_v27 = vsub.f32 %v12044_v41, %v3818_v29 }
 0x3a4   : > { %8945 = vmatprep.subr.mxu0 %v11884_v55  ;;  %8973 = vmatprep.subr.mxu1 %v11860_v59 }
 0x3a5   : > { %8946 = vmatpush3.msra.mxu0 %v11884_v55  ;;  %8974 = vmatpush3.msra.mxu1 %v11860_v59  ;;  %v3810_v55 = vand.u32 4294901760, %v3809_v23  ;;  %v3820_v12 = vand.u32 4294901760, %v3819_v27 }
 0x3a6   : > { %8947 = vmatprep.subr.mxu0 %v11904_v58  ;;  %8975 = vmatprep.subr.mxu1 %v11862_v46 }
 0x3a7   : > { %8892 = vmatprep.mubr.f32.mxu0 %v3790_v0  ;;  %8948 = vmatpush3.msra.mxu0 %v11904_v58  ;;  %v3839_v58 = vsub.f32 %v12069_v49, %v3838_v6 }
 0x3a8   : > { %8976 = vmatpush3.msra.mxu1 %v11862_v46  ;;  %8893 = vmatmul.mubr.f32.gmra.mxu0 %v3800_v2 }
 0x3a9   : > { %8949 = vmatprep.subr.mxu0 %v11926_v63  ;;  %8977 = vmatprep.subr.mxu1 %v11847_v7  ;;  %v3840_v9 = vand.u32 4294901760, %v3839_v58 }
 0x3aa   : > { %8950 = vmatpush3.msra.mxu0 %v11926_v63  ;;  %8978 = vmatpush3.msra.mxu1 %v11847_v7  ;;  %v3830_v63 = vand.u32 4294901760, %v3829_v24 }
 0x3ab   : > { %8951 = vmatprep.subr.mxu0 %v11935_v45  ;;  %8979 = vmatprep.subr.mxu1 %v11852_v31 }
 0x3ac   : > { %8895 = vmatprep.mubr.f32.mxu0 %v3810_v55  ;;  %8952 = vmatpush3.msra.mxu0 %v11935_v45  ;;  %v13597_v45 = vld [vmem:[#allocation96_spill] sm:$0xff] }
 0x3ad   : > { %8980 = vmatpush3.msra.mxu1 %v11852_v31  ;;  %8896 = vmatmul.mubr.f32.gmra.mxu0 %v3820_v12 }
 0x3ae   : > { %8953 = vmatprep.subr.mxu0 %v11951_v8  ;;  %8981 = vmatprep.subr.mxu1 %v11854_v35 }
 0x3af   : > { %8928 = vmatprep.mubr.f32.mxu1 %v11985_v48  ;;  %8954 = vmatpush3.msra.mxu0 %v11951_v8  ;;  %v13617_v8 = vld [vmem:[#allocation81_spill] sm:$0xff] }
 0x3b0   : > { %8982 = vmatpush3.msra.mxu1 %v11854_v35  ;;  %8955 = vmatprep.subr.mxu0 %v11964_v21 }
 0x3b1   : > { %8929 = vmatmul.mubr.f32.gmra.mxu1 %v12000_v10  ;;  %8983 = vmatprep.subr.mxu1 %v11865_v16 }
 0x3b2   : > { %8898 = vmatprep.mubr.f32.mxu0 %v3830_v63  ;;  %8956 = vmatpush3.msra.mxu0 %v11964_v21  ;;  %v13620_v21 = vld [vmem:[#allocation46_spill] sm:$0xff] }
 0x3b3   : > { %8984 = vmatpush3.msra.mxu1 %v11865_v16  ;;  %8899 = vmatmul.mubr.f32.gmra.mxu0 %v3840_v9 }
 0x3b4   : > { %8957 = vmatprep.subr.mxu0 %v11976_v61  ;;  %8985 = vmatprep.subr.mxu1 %v11887_v56 }
 0x3b5   : > { %8931 = vmatprep.mubr.f32.mxu1 %v12024_v36  ;;  %8958 = vmatpush3.msra.mxu0 %v11976_v61  ;;  %v13623_v61 = vld [vmem:[#allocation88_spill] sm:$0xff] }
 0x3b6   : > { %8986 = vmatpush3.msra.mxu1 %v11887_v56  ;;  %8959 = vmatprep.subr.mxu0 %v11988_v15 }
 0x3b7   : > { %8932 = vmatmul.mubr.f32.gmra.mxu1 %v12029_v34  ;;  %8987 = vmatprep.subr.mxu1 %v11907_v43 }
 0x3b8   : > { %8960 = vmatpush3.msra.mxu0 %v11988_v15  ;;  %8961 = vmatprep.mubr.f32.mxu0 %v13597_v45  ;;  %v13626_v15 = vld [vmem:[#allocation63_spill] sm:$0xff] }
 0x3b9   : > { %8988 = vmatpush3.msra.mxu1 %v11907_v43  ;;  %8962 = vmatmul.mubr.f32.vlgmr.msra.gmra.mxu0 %v11948_v40  ;;  %v13616_v40 = vld [vmem:[#allocation40_spill] sm:$0xff] }
 0x3ba   : > { %8989 = vmatprep.subr.mxu1 %v11919_v14  ;;  %9009 = vmatprep.subr.mxu0 %v11891_v32 }
 0x3bb   : > { %8934 = vmatprep.mubr.f32.mxu1 %v12047_v22  ;;  %8990 = vmatpush3.msra.mxu1 %v11919_v14 }
 0x3bc   : > { %9010 = vmatpush3.msra.mxu0 %v11891_v32  ;;  %8935 = vmatmul.mubr.f32.gmra.mxu1 %v12053_v54  ;;  %v13598_v32 = vand.u32 4294901760, %v13597_v45 }
 0x3bd   : > { %8991 = vmatprep.subr.mxu1 %v11932_v33  ;;  %9011 = vmatprep.subr.mxu0 %v11894_v37 }
 0x3be   : > { %8964 = vmatprep.mubr.f32.mxu0 %v12018_v5  ;;  %8992 = vmatpush3.msra.mxu1 %v11932_v33  ;;  %v13631_v5 = vld [vmem:[#allocation77_spill] sm:$0xff] }
 0x3bf   : > { %9012 = vmatpush3.msra.mxu0 %v11894_v37  ;;  %8993 = vmatprep.subr.mxu1 %v11943_v25  ;;  %v13607_v37 = vld [vmem:[#allocation58_spill] sm:$0xff] }
 0x3c0   : > { %8965 = vmatmul.mubr.f32.gmra.mxu0 %v12022_v62  ;;  %9013 = vmatprep.subr.mxu0 %v11897_v30  ;;  %v13632_v62 = vld [vmem:[#allocation31_spill] sm:$0xff] }
 0x3c1   : > { %8994 = vmatpush3.msra.mxu1 %v11943_v25  ;;  %9014 = vmatpush3.msra.mxu0 %v11897_v30  ;;  %v13608_v30 = vld [vmem:[#allocation61_spill] sm:$0xff] }
 0x3c2   : > { %8995 = vmatprep.subr.mxu1 %v11959_v50  ;;  %9015 = vmatprep.subr.mxu0 %v11915_v19 }
 0x3c3   : > { %8967 = vmatprep.mubr.f32.mxu0 %v12039_v4  ;;  %8996 = vmatpush3.msra.mxu1 %v11959_v50 }
 0x3c4   : > { %8997 = vmatprep.mubr.f32.mxu1 %v13598_v32  ;;  %9016 = vmatpush3.msra.mxu0 %v11915_v19  ;;  %v13610_v19 = vld [vmem:[#allocation66_spill] sm:$0xff] }
 0x3c5   : > { %8968 = vmatmul.mubr.f32.gmra.mxu0 %v12044_v41  ;;  %8998 = vmatmul.mubr.f32.vlgmr.msra.gmra.mxu1 %v3778_v47  ;;  %v13622_v47 = vld [vmem:[#allocation53_spill] sm:$0xff] }
 0x3c6   : > { %9017 = vmatprep.subr.mxu0 %v11923_v1  ;;  %9045 = vmatprep.subr.mxu1 %v11860_v59 }
 0x3c7   : > { %9018 = vmatpush3.msra.mxu0 %v11923_v1  ;;  %9046 = vmatpush3.msra.mxu1 %v11860_v59  ;;  %v13602_v59 = vld [vmem:[#allocation47_spill] sm:$0xff]  ;;  %v13612_v1 = vld [vmem:[#allocation30_spill] sm:$0xff] }
 0x3c8   : > { %9019 = vmatprep.subr.mxu0 %v11941_v51  ;;  %9047 = vmatprep.subr.mxu1 %v11862_v46 }
 0x3c9   : > { %8970 = vmatprep.mubr.f32.mxu0 %v12064_v18  ;;  %9000 = vmatprep.mubr.f32.mxu1 %v3788_v39 }
 0x3ca   : > { %9020 = vmatpush3.msra.mxu0 %v11941_v51  ;;  %9048 = vmatpush3.msra.mxu1 %v11862_v46  ;;  %v13603_v46 = vld [vmem:[#allocation48_spill] sm:$0xff]  ;;  %v13614_v51 = vld [vmem:[#allocation33_spill] sm:$0xff] }
 0x3cb   : > { %8971 = vmatmul.mubr.f32.gmra.mxu0 %v12069_v49  ;;  %9001 = vmatmul.mubr.f32.gmra.mxu1 %v3798_v13 }
 0x3cc   : > { %9021 = vmatprep.subr.mxu0 %v11957_v57  ;;  %9049 = vmatprep.subr.mxu1 %v11847_v7 }
 0x3cd   : > { %9022 = vmatpush3.msra.mxu0 %v11957_v57  ;;  %9050 = vmatpush3.msra.mxu1 %v11847_v7  ;;  %v13599_v7 = vld [vmem:[#allocation94_spill] sm:$0xff] }
 0x3ce   : > { %9023 = vmatprep.subr.mxu0 %v11970_v44  ;;  %9051 = vmatprep.subr.mxu1 %v11852_v31  ;;  %v13618_v57 = vld [vmem:[#allocation42_spill] sm:$0xff] }
 0x3cf   : > { %9003 = vmatprep.mubr.f32.mxu1 %v3808_v28  ;;  %9024 = vmatpush3.msra.mxu0 %v11970_v44  ;;  %v13621_v44 = vld [vmem:[#allocation86_spill] sm:$0xff] }
 0x3d0   : > { %9052 = vmatpush3.msra.mxu1 %v11852_v31  ;;  %9025 = vmatprep.subr.mxu0 %v11982_v11  ;;  %v13600_v31 = vld [vmem:[#allocation25_spill] sm:$0xff] }
 0x3d1   : > { %9004 = vmatmul.mubr.f32.gmra.mxu1 %v3818_v29  ;;  %9053 = vmatprep.subr.mxu1 %v11854_v35 }
 0x3d2   : > { %9026 = vmatpush3.msra.mxu0 %v11982_v11  ;;  %9054 = vmatpush3.msra.mxu1 %v11854_v35  ;;  %v13601_v35 = vld [vmem:[#allocation26_spill] sm:$0xff]  ;;  %v13624_v11 = vld [vmem:[#allocation57_spill] sm:$0xff] }
 0x3d3   : > { %9027 = vmatprep.subr.mxu0 %v11994_v38  ;;  %9055 = vmatprep.subr.mxu1 %v11865_v16 }
 0x3d4   : > { %9006 = vmatprep.mubr.f32.mxu1 %v3828_v52  ;;  %9028 = vmatpush3.msra.mxu0 %v11994_v38  ;;  %v13627_v38 = vld [vmem:[#allocation92_spill] sm:$0xff] }
 0x3d5   : > { %9056 = vmatpush3.msra.mxu1 %v11865_v16  ;;  %9029 = vmatprep.subr.mxu0 %v12006_v60  ;;  %v13604_v16 = vld [vmem:[#allocation27_spill] sm:$0xff] }
 0x3d6   : > { %9007 = vmatmul.mubr.f32.gmra.mxu1 %v3838_v6  ;;  %9057 = vmatprep.subr.mxu1 %v11887_v56 }
 0x3d7   : > { %9030 = vmatpush3.msra.mxu0 %v12006_v60  ;;  %9058 = vmatpush3.msra.mxu1 %v11887_v56  ;;  %v13606_v56 = vld [vmem:[#allocation28_spill] sm:$0xff]  ;;  %v13629_v60 = vld [vmem:[#allocation93_spill] sm:$0xff] }
 0x3d8   : > { %9031 = vmatprep.subr.mxu0 %v12015_v53  ;;  %9059 = vmatprep.subr.mxu1 %v11907_v43 }
 0x3d9   : > { %9032 = vmatpush3.msra.mxu0 %v12015_v53  ;;  %9033 = vmatprep.mubr.f32.mxu0 %v13599_v7  ;;  %v13630_v53 = vld [vmem:[#allocation73_spill] sm:$0xff] }
 0x3da   : > { %9060 = vmatpush3.msra.mxu1 %v11907_v43  ;;  %9034 = vmatmul.mubr.f32.vlgmr.msra.gmra.mxu0 %v11868_v26  ;;  %v13609_v43 = vld [vmem:[#allocation29_spill] sm:$0xff] }
 0x3db   : > { %9061 = vmatprep.subr.mxu1 %v11919_v14  ;;  %9036 = vmatprep.mubr.f32.mxu0 %v11985_v48 }
 0x3dc   : > { %9062 = vmatpush3.msra.mxu1 %v11919_v14  ;;  %9069 = vmatprep.mubr.f32.mxu1 %v13599_v7  ;;  %v13611_v14 = vld [vmem:[#allocation70_spill] sm:$0xff] }
 0x3dd   : > { %9063 = vmatprep.subr.mxu1 %v11932_v33  ;;  %9081 = vmatprep.subr.mxu0 %v13600_v31 }
 0x3de   : > { %9064 = vmatpush3.msra.mxu1 %v11932_v33  ;;  %9037 = vmatmul.mubr.f32.gmra.mxu0 %v12000_v10  ;;  %v13613_v33 = vld [vmem:[#allocation74_spill] sm:$0xff] }
 0x3df   : > { %9065 = vmatprep.subr.mxu1 %v11943_v25  ;;  %9039 = vmatprep.mubr.f32.mxu0 %v12024_v36 }
 0x3e0   : > { %9066 = vmatpush3.msra.mxu1 %v11943_v25  ;;  %9082 = vmatpush3.msra.mxu0 %v13600_v31  ;;  %v13615_v25 = vld [vmem:[#allocation76_spill] sm:$0xff] }
 0x3e1   : > { %9067 = vmatprep.subr.mxu1 %v11959_v50  ;;  %9083 = vmatprep.subr.mxu0 %v13601_v35 }
 0x3e2   : > { %9068 = vmatpush3.msra.mxu1 %v11959_v50  ;;  %9040 = vmatmul.mubr.f32.gmra.mxu0 %v12029_v34  ;;  %v13619_v50 = vld [vmem:[#allocation84_spill] sm:$0xff] }
 0x3e3   : > { %9070 = vmatmul.mubr.f32.vlgmr.msra.gmra.mxu1 %v11868_v26  ;;  %9042 = vmatprep.mubr.f32.mxu0 %v12047_v22  ;;  %v13605_v26 = vld [vmem:[#allocation52_spill] sm:$0xff] }
 0x3e4   : > { %9072 = vmatprep.mubr.f32.mxu1 %v11985_v48  ;;  %9125 = vmatprep.subr.mxu1 %v13602_v59  ;;  %v13625_v48 = vld [vmem:[#allocation90_spill] sm:$0xff] }
 0x3e5   : > { %9126 = vmatpush3.msra.mxu1 %v13602_v59  ;;  %9084 = vmatpush3.msra.mxu0 %v13601_v35 }
 0x3e6   : > { %9043 = vmatmul.mubr.f32.gmra.mxu0 %v12053_v54  ;;  %9127 = vmatprep.subr.mxu1 %v13603_v46 }
 0x3e7   : > { %9073 = vmatmul.mubr.f32.gmra.mxu1 %v12000_v10  ;;  %9085 = vmatprep.subr.mxu0 %v13604_v16  ;;  %v13628_v10 = vld [vmem:[#allocation69_spill] sm:$0xff] }
 0x3e8   : > { %9075 = vmatprep.mubr.f32.mxu1 %v12024_v36  ;;  %9128 = vmatpush3.msra.mxu1 %v13603_v46 }
 0x3e9   : > { %9129 = vmatprep.subr.mxu1 %v13605_v26  ;;  %9086 = vmatpush3.msra.mxu0 %v13604_v16 }
 0x3ea   : > { %9130 = vmatpush3.msra.mxu1 %v13605_v26  ;;  %9087 = vmatprep.subr.mxu0 %v13606_v56 }
 0x3eb   : > { %9076 = vmatmul.mubr.f32.gmra.mxu1 %v12029_v34  ;;  %9131 = vmatprep.subr.mxu1 %v13607_v37 }
 0x3ec   : > { %9078 = vmatprep.mubr.f32.mxu1 %v12047_v22  ;;  %9132 = vmatpush3.msra.mxu1 %v13607_v37 }
 0x3ed   : > { %9133 = vmatprep.subr.mxu1 %v13608_v30  ;;  %9088 = vmatpush3.msra.mxu0 %v13606_v56 }
 0x3ee   : > { %9134 = vmatpush3.msra.mxu1 %v13608_v30  ;;  %9089 = vmatprep.subr.mxu0 %v13609_v43 }
 0x3ef   : > { %9079 = vmatmul.mubr.f32.gmra.mxu1 %v12053_v54  ;;  %9135 = vmatprep.subr.mxu1 %v13610_v19 }
 0x3f0   : > { %9136 = vmatpush3.msra.mxu1 %v13610_v19  ;;  %9090 = vmatpush3.msra.mxu0 %v13609_v43 }
 0x3f1   : > { %9137 = vmatprep.subr.mxu1 %v13611_v14  ;;  %9091 = vmatprep.subr.mxu0 %v13612_v1 }
 0x3f2   : > { %9138 = vmatpush3.msra.mxu1 %v13611_v14  ;;  %9092 = vmatpush3.msra.mxu0 %v13612_v1 }
 0x3f3   : > { %9139 = vmatprep.subr.mxu1 %v13613_v33  ;;  %9093 = vmatprep.subr.mxu0 %v13614_v51 }
 0x3f4   : > { %9140 = vmatpush3.msra.mxu1 %v13613_v33  ;;  %9094 = vmatpush3.msra.mxu0 %v13614_v51 }
 0x3f5   : > { %9141 = vmatprep.subr.mxu1 %v13615_v25  ;;  %9095 = vmatprep.subr.mxu0 %v13616_v40 }
 0x3f6   : > { %9142 = vmatpush3.msra.mxu1 %v13615_v25  ;;  %9096 = vmatpush3.msra.mxu0 %v13616_v40 }
 0x3f7   : > { %9143 = vmatprep.subr.mxu1 %v13617_v8  ;;  %9097 = vmatprep.subr.mxu0 %v13618_v57 }
 0x3f8   : > { %9144 = vmatpush3.msra.mxu1 %v13617_v8  ;;  %9098 = vmatpush3.msra.mxu0 %v13618_v57 }
 0x3f9   : > { %9145 = vmatprep.subr.mxu1 %v13619_v50  ;;  %9099 = vmatprep.subr.mxu0 %v13620_v21 }
 0x3fa   : > { %9146 = vmatpush3.msra.mxu1 %v13619_v50  ;;  %9100 = vmatpush3.msra.mxu0 %v13620_v21 }
 0x3fb   : > { %9147 = vmatprep.subr.mxu1 %v13621_v44  ;;  %9101 = vmatprep.subr.mxu0 %v13622_v47 }
 0x3fc   : > { %9148 = vmatpush3.msra.mxu1 %v13621_v44  ;;  %9102 = vmatpush3.msra.mxu0 %v13622_v47 }
 0x3fd   : > { %9149 = vmatprep.subr.mxu1 %v13623_v61  ;;  %9103 = vmatprep.subr.mxu0 %v13624_v11 }
 0x3fe   : > { %9150 = vmatpush3.msra.mxu1 %v13623_v61  ;;  %9104 = vmatpush3.msra.mxu0 %v13624_v11 }
 0x3ff   : > { %9151 = vmatprep.subr.mxu1 %v13625_v48  ;;  %9105 = vmatprep.subr.mxu0 %v13626_v15 }
 0x400   : > { %9152 = vmatpush3.msra.mxu1 %v13625_v48  ;;  %9106 = vmatpush3.msra.mxu0 %v13626_v15 }
 0x401   : > { %9153 = vmatprep.subr.mxu1 %v13627_v38  ;;  %9107 = vmatprep.subr.mxu0 %v13628_v10 }
 0x402   : > { %9154 = vmatpush3.msra.mxu1 %v13627_v38  ;;  %9108 = vmatpush3.msra.mxu0 %v13628_v10 }
 0x403   : > { %9155 = vmatprep.subr.mxu1 %v13629_v60  ;;  %9109 = vmatprep.subr.mxu0 %v13630_v53 }
 0x404   : > { %9156 = vmatpush3.msra.mxu1 %v13629_v60  ;;  %9110 = vmatpush3.msra.mxu0 %v13630_v53 }
 0x405   : > { %9213 = vmatprep.subr.mxu1 %v13600_v31  ;;  %9111 = vmatprep.subr.mxu0 %v13631_v5 }
 0x406   : > { %9112 = vmatpush3.msra.mxu0 %v13631_v5 }
 0x407   : > { %9169 = vmatprep.subr.mxu0 %v13632_v62 }
 0x45c   : > { %v8891_v36 = vpop.f32.mrf.mxu0 }
 0x45e   : > { %v3772_v34 = vpop.f32.mrf.mxu0 }
 0x463   : > { %v8927_v4 = vpop.f32.mrf.mxu1 }
 0x464   : > { %v3980_v60 = vadd.f32 %v8927_v4, %v8891_v36 }
 0x465   : > { %v3973_v41 = vpop.f32.mrf.mxu1 }
 0x466   : > { %v3974_v61 = vadd.f32 %v3973_v41, %v3772_v34 }
 0x468   : > { %v8894_v39 = vpop.f32.mrf.mxu0 }
 0x46a   : > { %v3792_v13 = vpop.f32.mrf.mxu0 }
 0x46d   : > { %v8897_v42 = vpop.f32.mrf.mxu0 }
 0x46f   : > { %v3812_v22 = vpop.f32.mrf.mxu0 }
 0x471   : > { %v8930_v17 = vpop.f32.mrf.mxu1 }
 0x472   : > { %v3992_v8 = vadd.f32 %v8930_v17, %v8894_v39 }
 0x473   : > { %v3985_v20 = vpop.f32.mrf.mxu1  ;;  %v8900_v54 = vpop.f32.mrf.mxu0 }
 0x474   : > { %v3986_v30 = vadd.f32 %v3985_v20, %v3792_v13 }
 0x475   : > { %v3832_v28 = vpop.f32.mrf.mxu0 }
 0x477   : > { %v8933_v3 = vpop.f32.mrf.mxu1 }
 0x478   : > { %v4004_v5 = vadd.f32 %v8933_v3, %v8897_v42 }
 0x479   : > { %v3997_v29 = vpop.f32.mrf.mxu1  ;;  %v8963_v18 = vpop.f32.mrf.mxu0 }
 0x47a   : > { %v4119_v44 = vadd.f32 %v8963_v18, %v3980_v60  ;;  %v3998_v34 = vadd.f32 %v3997_v29, %v3812_v22 }
 0x47b   : > { %v4111_v49 = vpop.f32.mrf.mxu0 }
 0x47c   : > { %v8936_v0 = vpop.f32.mrf.mxu1  ;;  %v4112_v25 = vadd.f32 %v4111_v49, %v3974_v61 }
 0x47e   : > { %v4009_v2 = vpop.f32.mrf.mxu1 }
 0x480   : > { %v8966_v23 = vpop.f32.mrf.mxu0 }
 0x481   : > { %v4133_v37 = vadd.f32 %v8966_v23, %v3992_v8 }
 0x482   : > { %v4125_v52 = vpop.f32.mrf.mxu0 }
 0x483   : > { %v4126_v10 = vadd.f32 %v4125_v52, %v3986_v30 }
 0x485   : > { %v8999_v27 = vpop.f32.mrf.mxu1  ;;  %v8969_v55 = vpop.f32.mrf.mxu0 }
 0x486   : > { %v4254_v33 = vadd.f32 %v8999_v27, %v4119_v44  ;;  %v4147_v60 = vadd.f32 %v8969_v55, %v4004_v5 }
 0x487   : > { %v4245_v6 = vpop.f32.mrf.mxu1  ;;  %v4139_v24 = vpop.f32.mrf.mxu0 }
 0x488   : > { %v4246_v26 = vadd.f32 %v4245_v6, %v4112_v25  ;;  %v4140_v25 = vadd.f32 %v4139_v24, %v3998_v34 }
 0x48b   : > { %v9002_v12 = vpop.f32.mrf.mxu1  ;;  %v8972_v63 = vpop.f32.mrf.mxu0 }
 0x48c   : > { %v4270_v15 = vadd.f32 %v9002_v12, %v4133_v37  ;;  %v4010_v37 = vadd.f32 %v4009_v2, %v3832_v28 }
 0x48d   : > { %v4261_v58 = vpop.f32.mrf.mxu1  ;;  %v4153_v45 = vpop.f32.mrf.mxu0 }
 0x48e   : > { %v4262_v61 = vadd.f32 %v4261_v58, %v4126_v10 }
 0x491   : > { %v9005_v9 = vpop.f32.mrf.mxu1 }
 0x492   : > { %v4286_v42 = vadd.f32 %v9005_v9, %v4147_v60 }
 0x493   : > { %v4277_v32 = vpop.f32.mrf.mxu1 }
 0x496   : > { %v9008_v48 = vpop.f32.mrf.mxu1 }
 0x498   : > { %v4293_v19 = vpop.f32.mrf.mxu1 }
 0x49a   : > { %v9035_v7 = vpop.f32.mrf.mxu0 }
 0x49b   : > { %v4415_v46 = vadd.f32 %v9035_v7, %v4254_v33  ;;  %v4016_v33 = vadd.f32 %v8936_v0, %v8900_v54 }
 0x49c   : > { %v4408_v38 = vpop.f32.mrf.mxu0 }
 0x49d   : > { %v4409_v36 = vadd.f32 %v4408_v38, %v4246_v26  ;;  %v4161_v38 = vadd.f32 %v8972_v63, %v4016_v33 }
 0x49e   : > { %v9038_v50 = vpop.f32.mrf.mxu0 }
 0x49f   : > { %v4427_v44 = vadd.f32 %v9038_v50, %v4270_v15  ;;  %v4302_v29 = vadd.f32 %v9008_v48, %v4161_v38 }
 0x4a0   : > { %v4420_v14 = vpop.f32.mrf.mxu0 }
 0x4a1   : > { %v4421_v30 = vadd.f32 %v4420_v14, %v4262_v61  ;;  %v4154_v14 = vadd.f32 %v4153_v45, %v4010_v37  ;;  %v13641_v37 = vld [vmem:[#allocation32_spill] sm:$0xff] }
 0x4a2   : > { %v9041_v59 = vpop.f32.mrf.mxu0 }
 0x4a3   : > { %v9071_v53 = vpop.f32.mrf.mxu1  ;;  %v4439_v5 = vadd.f32 %v9041_v59, %v4286_v42  ;;  %v4294_v49 = vadd.f32 %v4293_v19, %v4154_v14 }
 0x4a4   : > { %v12285_v4 = vadd.f32 %v9071_v53, %v4415_v46  ;;  %v4432_v41 = vpop.f32.mrf.mxu0  ;;  %v4278_v53 = vadd.f32 %v4277_v32, %v4140_v25 }
 0x4a5   : > { %v4533_v39 = vpop.f32.mrf.mxu1 }
 0x4a6   : > { %13633 = vst [vmem:[#allocation65_spill] sm:$0xff] %v12285_v4  ;;  %v12288_v17 = vand.u32 4294901760, %v12285_v4  ;;  %v12290_v8 = vadd.f32 %v4533_v39, %v4409_v36  ;;  %v9044_v10 = vpop.f32.mrf.mxu0  ;;  %v4433_v18 = vadd.f32 %v4432_v41, %v4278_v53 }
 0x4a7   : > { %v9074_v13 = vpop.f32.mrf.mxu1  ;;  %v4451_v48 = vadd.f32 %v9044_v10, %v4302_v29 }
 0x4a8   : > { %13634 = vst [vmem:[#allocation98_spill] sm:$0xff] %v12290_v8  ;;  %v12294_v46 = vsub.f32 %v12285_v4, %v12288_v17  ;;  %v12296_v26 = vadd.f32 %v9074_v13, %v4427_v44  ;;  %v12299_v15 = vand.u32 4294901760, %v12290_v8  ;;  %v4444_v2 = vpop.f32.mrf.mxu0 }
 0x4a9   : > { %v4545_v50 = vpop.f32.mrf.mxu1  ;;  %v4445_v63 = vadd.f32 %v4444_v2, %v4294_v49  ;;  %v13643_v2 = vld [vmem:[#allocation35_spill] sm:$0xff] }
 0x4aa   : > { %13635 = vst [vmem:[#allocation89_spill] sm:$0xff] %v12296_v26  ;;  %v4672_v22 = vand.u32 4294901760, %v12294_v46  ;;  %v12302_v20 = vadd.f32 %v4545_v50, %v4421_v30  ;;  %9157 = vmatprep.mubr.f32.mxu1 %v12299_v15  ;;  %v12306_v3 = vand.u32 4294901760, %v12296_v26  ;;  %v12310_v28 = vsub.f32 %v12290_v8, %v12299_v15 }
 0x4ab   : > { %v9077_v54 = vpop.f32.mrf.mxu1  ;;  %9158 = vmatmul.mubr.f32.vlgmr.msra.gmra.mxu1 %v12288_v17 }
 0x4ac   : > { %13636 = vst [vmem:[#allocation91_spill] sm:$0xff] %v12302_v20  ;;  %v12312_v0 = vadd.f32 %v9077_v54, %v4439_v5  ;;  %v12316_v59 = vand.u32 4294901760, %v12302_v20  ;;  %9214 = vmatpush3.msra.mxu1 %v13600_v31  ;;  %v4662_v27 = vand.u32 4294901760, %v12310_v28  ;;  %v12322_v52 = vsub.f32 %v12296_v26, %v12306_v3  ;;  %v13642_v54 = vld [vmem:[#allocation34_spill] sm:$0xff] }
 0x4ad   : > { %v4557_v23 = vpop.f32.mrf.mxu1  ;;  %9215 = vmatprep.subr.mxu1 %v13601_v35  ;;  %v4673_v19 = vsub.f32 %v12294_v46, %v4672_v22 }
 0x4ae   : > { %13637 = vst [vmem:[#allocation56_spill] sm:$0xff] %v12312_v0  ;;  %v12325_v6 = vadd.f32 %v4557_v23, %v4433_v18  ;;  %9160 = vmatprep.mubr.f32.mxu1 %v12316_v59  ;;  %v12332_v55 = vand.u32 4294901760, %v12312_v0  ;;  %9216 = vmatpush3.msra.mxu1 %v13601_v35  ;;  %v4663_v24 = vsub.f32 %v12310_v28, %v4662_v27  ;;  %v4692_v32 = vand.u32 4294901760, %v12322_v52 }
 0x4af   : > { %v9080_v12 = vpop.f32.mrf.mxu1  ;;  %v12340_v58 = vsub.f32 %v12302_v20, %v12316_v59  ;;  %9217 = vmatprep.subr.mxu1 %v13604_v16  ;;  %9161 = vmatmul.mubr.f32.gmra.mxu1 %v12306_v3  ;;  %v4674_v41 = vand.u32 4294901760, %v4673_v19  ;;  %v13644_v19 = vld [vmem:[#allocation36_spill] sm:$0xff] }
 0x4b0   : > { %13638 = vst [vmem:[#allocation51_spill] sm:$0xff] %v12325_v6  ;;  %v12343_v9 = vadd.f32 %v9080_v12, %v4451_v48  ;;  %v12347_v45 = vand.u32 4294901760, %v12325_v6  ;;  %9218 = vmatpush3.msra.mxu1 %v13604_v16  ;;  %v4664_v36 = vand.u32 4294901760, %v4663_v24  ;;  %v12362_v61 = vsub.f32 %v12312_v0, %v12332_v55 }
 0x4b1   : > { %v4569_v7 = vpop.f32.mrf.mxu1  ;;  %v4682_v34 = vand.u32 4294901760, %v12340_v58  ;;  %9219 = vmatprep.subr.mxu1 %v13606_v56  ;;  %v4693_v13 = vsub.f32 %v12322_v52, %v4692_v32 }
 0x4b2   : > { %13639 = vst [vmem:[#allocation97_spill] sm:$0xff] %v12343_v9  ;;  %v12353_v60 = vadd.f32 %v4569_v7, %v4445_v63  ;;  %9163 = vmatprep.mubr.f32.mxu1 %v12347_v45  ;;  %v12358_v39 = vsub.f32 %v12325_v6, %v12347_v45  ;;  %9220 = vmatpush3.msra.mxu1 %v13606_v56  ;;  %v12369_v33 = vand.u32 4294901760, %v12343_v9  ;;  %v4712_v38 = vand.u32 4294901760, %v12362_v61  ;;  %v13646_v7 = vld [vmem:[#allocation45_spill] sm:$0xff] }
 0x4b3   : > { %9113 = vmatprep.mubr.f32.mxu0 %v4664_v36  ;;  %v4683_v44 = vsub.f32 %v12340_v58, %v4682_v34  ;;  %9221 = vmatprep.subr.mxu1 %v13609_v43  ;;  %v4694_v5 = vand.u32 4294901760, %v4693_v13  ;;  %v13647_v36 = vld [vmem:[#allocation50_spill] sm:$0xff]  ;;  %v13650_v13 = vld [vmem:[#allocation60_spill] sm:$0xff] }
 0x4b4   : > { %13640 = vst [vmem:[#allocation99_spill] sm:$0xff] %v12353_v60  ;;  %9114 = vmatmul.mubr.f32.vlgmr.msra.gmra.mxu0 %v4674_v41  ;;  %v12373_v25 = vand.u32 4294901760, %v12353_v60  ;;  %v4702_v42 = vand.u32 4294901760, %v12358_v39  ;;  %9164 = vmatmul.mubr.f32.gmra.mxu1 %v12332_v55  ;;  %v12395_v53 = vsub.f32 %v12343_v9, %v12369_v33  ;;  %v4713_v29 = vsub.f32 %v12362_v61, %v4712_v38  ;;  %v13648_v41 = vld [vmem:[#allocation55_spill] sm:$0xff] }
 0x4b5   : > { %9170 = vmatpush3.msra.mxu0 %v13632_v62  ;;  %v4684_v30 = vand.u32 4294901760, %v4683_v44  ;;  %9222 = vmatpush3.msra.mxu1 %v13609_v43  ;;  %v13649_v44 = vld [vmem:[#allocation63_spill] sm:$0xff] }
 0x4b6   : > { %9171 = vmatprep.subr.mxu0 %v13641_v37  ;;  %v12386_v10 = vsub.f32 %v12353_v60, %v12373_v25  ;;  %9223 = vmatprep.subr.mxu1 %v13612_v1  ;;  %v4703_v50 = vsub.f32 %v12358_v39, %v4702_v42  ;;  %v4732_v49 = vand.u32 4294901760, %v12395_v53  ;;  %v4714_v48 = vand.u32 4294901760, %v4713_v29  ;;  %v13655_v29 = vld [vmem:[#allocation77_spill] sm:$0xff] }
 0x4b7   : > { %9172 = vmatpush3.msra.mxu0 %v13641_v37  ;;  %9224 = vmatpush3.msra.mxu1 %v13612_v1 }
 0x4b8   : > { %9116 = vmatprep.mubr.f32.mxu0 %v4684_v30  ;;  %v4722_v14 = vand.u32 4294901760, %v12386_v10  ;;  %9166 = vmatprep.mubr.f32.mxu1 %v12373_v25  ;;  %v4704_v18 = vand.u32 4294901760, %v4703_v50  ;;  %v4733_v12 = vsub.f32 %v12395_v53, %v4732_v49  ;;  %v13651_v30 = vld [vmem:[#allocation69_spill] sm:$0xff] }
 0x4b9   : > { %9173 = vmatprep.subr.mxu0 %v13642_v54  ;;  %9225 = vmatprep.subr.mxu1 %v13614_v51  ;;  %v13653_v50 = vld [vmem:[#allocation73_spill] sm:$0xff] }
 0x4ba   : > { %9117 = vmatmul.mubr.f32.gmra.mxu0 %v4694_v5  ;;  %9167 = vmatmul.mubr.f32.gmra.mxu1 %v12369_v33  ;;  %v4723_v23 = vsub.f32 %v12386_v10, %v4722_v14  ;;  %v4734_v63 = vand.u32 4294901760, %v4733_v12  ;;  %v13654_v5 = vld [vmem:[#allocation68_spill] sm:$0xff]  ;;  %v13674_v12 = vld [vmem:[#allocation82_spill] sm:$0xff] }
 0x4bb   : > { %9174 = vmatpush3.msra.mxu0 %v13642_v54  ;;  %9226 = vmatpush3.msra.mxu1 %v13614_v51 }
 0x4bc   : > { %9175 = vmatprep.subr.mxu0 %v13643_v2  ;;  %9227 = vmatprep.subr.mxu1 %v13616_v40  ;;  %v4724_v24 = vand.u32 4294901760, %v4723_v23  ;;  %v13657_v23 = vld [vmem:[#allocation78_spill] sm:$0xff] }
 0x4bd   : > { %9245 = vmatprep.mubr.f32.mxu1 %v4662_v27  ;;  %9176 = vmatpush3.msra.mxu0 %v13643_v2  ;;  %v13645_v27 = vld [vmem:[#allocation44_spill] sm:$0xff] }
 0x4be   : > { %9228 = vmatpush3.msra.mxu1 %v13616_v40  ;;  %9119 = vmatprep.mubr.f32.mxu0 %v4704_v18  ;;  %v13656_v18 = vld [vmem:[#allocation72_spill] sm:$0xff] }
 0x4bf   : > { %9177 = vmatprep.subr.mxu0 %v13644_v19  ;;  %9229 = vmatprep.subr.mxu1 %v13618_v57 }
 0x4c0   : > { %9120 = vmatmul.mubr.f32.gmra.mxu0 %v4714_v48  ;;  %9230 = vmatpush3.msra.mxu1 %v13618_v57  ;;  %v13658_v48 = vld [vmem:[#allocation80_spill] sm:$0xff] }
 0x4c1   : > { %9178 = vmatpush3.msra.mxu0 %v13644_v19  ;;  %9231 = vmatprep.subr.mxu1 %v13620_v21 }
 0x4c2   : > { %9179 = vmatprep.subr.mxu0 %v13645_v27  ;;  %9232 = vmatpush3.msra.mxu1 %v13620_v21 }
 0x4c3   : > { %9180 = vmatpush3.msra.mxu0 %v13645_v27  ;;  %9122 = vmatprep.mubr.f32.mxu0 %v4724_v24  ;;  %v13675_v24 = vld [vmem:[#allocation48_spill] sm:$0xff] }
 0x4c4   : > { %9181 = vmatprep.subr.mxu0 %v13646_v7  ;;  %9233 = vmatprep.subr.mxu1 %v13622_v47 }
 0x4c5   : > { %9123 = vmatmul.mubr.f32.gmra.mxu0 %v4734_v63  ;;  %9234 = vmatpush3.msra.mxu1 %v13622_v47  ;;  %v13676_v63 = vld [vmem:[#allocation85_spill] sm:$0xff] }
 0x4c6   : > { %9182 = vmatpush3.msra.mxu0 %v13646_v7  ;;  %9201 = vmatprep.mubr.f32.mxu0 %v12310_v28  ;;  %v13652_v28 = vld [vmem:[#allocation64_spill] sm:$0xff] }
 0x4c7   : > { %9183 = vmatprep.subr.mxu0 %v13647_v36  ;;  %9235 = vmatprep.subr.mxu1 %v13624_v11 }
 0x4c8   : > { %9184 = vmatpush3.msra.mxu0 %v13647_v36  ;;  %9236 = vmatpush3.msra.mxu1 %v13624_v11 }
 0x4c9   : > { %9185 = vmatprep.subr.mxu0 %v13648_v41  ;;  %9237 = vmatprep.subr.mxu1 %v13649_v44 }
 0x4ca   : > { %9186 = vmatpush3.msra.mxu0 %v13648_v41  ;;  %9238 = vmatpush3.msra.mxu1 %v13649_v44 }
 0x4cb   : > { %9187 = vmatprep.subr.mxu0 %v13650_v13  ;;  %9239 = vmatprep.subr.mxu1 %v13651_v30 }
 0x4cc   : > { %9188 = vmatpush3.msra.mxu0 %v13650_v13  ;;  %9240 = vmatpush3.msra.mxu1 %v13651_v30 }
 0x4cd   : > { %9189 = vmatprep.subr.mxu0 %v13652_v28  ;;  %9241 = vmatprep.subr.mxu1 %v13653_v50 }
 0x4ce   : > { %9190 = vmatpush3.msra.mxu0 %v13652_v28  ;;  %9242 = vmatpush3.msra.mxu1 %v13653_v50 }
 0x4cf   : > { %9191 = vmatprep.subr.mxu0 %v13654_v5  ;;  %9243 = vmatprep.subr.mxu1 %v13655_v29 }
 0x4d0   : > { %9192 = vmatpush3.msra.mxu0 %v13654_v5  ;;  %9244 = vmatpush3.msra.mxu1 %v13655_v29 }
 0x4d1   : > { %9193 = vmatprep.subr.mxu0 %v13656_v18  ;;  %9246 = vmatmul.mubr.f32.vlgmr.msra.gmra.mxu1 %v4672_v22  ;;  %v13659_v22 = vld [vmem:[#allocation83_spill] sm:$0xff] }
 0x4d2   : > { %9301 = vmatprep.subr.mxu1 %v13600_v31  ;;  %9194 = vmatpush3.msra.mxu0 %v13656_v18 }
 0x4d3   : > { %9248 = vmatprep.mubr.f32.mxu1 %v4682_v34  ;;  %9302 = vmatpush3.msra.mxu1 %v13600_v31  ;;  %v13661_v34 = vld [vmem:[#allocation38_spill] sm:$0xff] }
 0x4d4   : > { %9195 = vmatprep.subr.mxu0 %v13657_v23  ;;  %9303 = vmatprep.subr.mxu1 %v13601_v35 }
 0x4d5   : > { %9196 = vmatpush3.msra.mxu0 %v13657_v23  ;;  %9304 = vmatpush3.msra.mxu1 %v13601_v35 }
 0x4d6   : > { %9197 = vmatprep.subr.mxu0 %v13658_v48  ;;  %9249 = vmatmul.mubr.f32.gmra.mxu1 %v4692_v32  ;;  %v13660_v32 = vld [vmem:[#allocation37_spill] sm:$0xff] }
 0x4d7   : > { %9305 = vmatprep.subr.mxu1 %v13604_v16  ;;  %9198 = vmatpush3.msra.mxu0 %v13658_v48 }
 0x4d8   : > { %9251 = vmatprep.mubr.f32.mxu1 %v4702_v42  ;;  %9306 = vmatpush3.msra.mxu1 %v13604_v16  ;;  %v13667_v42 = vld [vmem:[#allocation59_spill] sm:$0xff] }
 0x4d9   : > { %9199 = vmatprep.subr.mxu0 %v13659_v22  ;;  %9307 = vmatprep.subr.mxu1 %v13606_v56 }
 0x4da   : > { %9200 = vmatpush3.msra.mxu0 %v13659_v22  ;;  %9308 = vmatpush3.msra.mxu1 %v13606_v56 }
 0x4db   : > { %9202 = vmatmul.mubr.f32.vlgmr.msra.gmra.mxu0 %v12294_v46  ;;  %9252 = vmatmul.mubr.f32.gmra.mxu1 %v4712_v38  ;;  %v13662_v46 = vld [vmem:[#allocation39_spill] sm:$0xff]  ;;  %v13668_v38 = vld [vmem:[#allocation62_spill] sm:$0xff] }
 0x4dc   : > { %9257 = vmatprep.subr.mxu0 %v13660_v32  ;;  %9309 = vmatprep.subr.mxu1 %v13609_v43 }
 0x4dd   : > { %9204 = vmatprep.mubr.f32.mxu0 %v12340_v58  ;;  %9254 = vmatprep.mubr.f32.mxu1 %v4722_v14  ;;  %v13663_v58 = vld [vmem:[#allocation41_spill] sm:$0xff]  ;;  %v13672_v14 = vld [vmem:[#allocation79_spill] sm:$0xff] }
 0x4de   : > { %9258 = vmatpush3.msra.mxu0 %v13660_v32  ;;  %9310 = vmatpush3.msra.mxu1 %v13609_v43 }
 0x4df   : > { %9259 = vmatprep.subr.mxu0 %v13661_v34  ;;  %9311 = vmatprep.subr.mxu1 %v13612_v1 }
 0x4e0   : > { %9260 = vmatpush3.msra.mxu0 %v13661_v34  ;;  %9312 = vmatpush3.msra.mxu1 %v13612_v1 }
 0x4e1   : > { %9205 = vmatmul.mubr.f32.gmra.mxu0 %v12322_v52  ;;  %9255 = vmatmul.mubr.f32.gmra.mxu1 %v4732_v49  ;;  %v13664_v52 = vld [vmem:[#allocation43_spill] sm:$0xff] }
 0x4e2   : > { %9261 = vmatprep.subr.mxu0 %v13662_v46  ;;  %9313 = vmatprep.subr.mxu1 %v13614_v51  ;;  %v13673_v49 = vld [vmem:[#allocation47_spill] sm:$0xff] }
 0x4e3   : > { %9207 = vmatprep.mubr.f32.mxu0 %v12358_v39  ;;  %9262 = vmatpush3.msra.mxu0 %v13662_v46  ;;  %v13665_v39 = vld [vmem:[#allocation49_spill] sm:$0xff] }
 0x4e4   : > { %9314 = vmatpush3.msra.mxu1 %v13614_v51  ;;  %9333 = vmatprep.mubr.f32.mxu1 %v12299_v15 }
 0x4e5   : > { %9263 = vmatprep.subr.mxu0 %v13663_v58  ;;  %9315 = vmatprep.subr.mxu1 %v13616_v40 }
 0x4e6   : > { %9264 = vmatpush3.msra.mxu0 %v13663_v58  ;;  %9316 = vmatpush3.msra.mxu1 %v13616_v40 }
 0x4e7   : > { %9208 = vmatmul.mubr.f32.gmra.mxu0 %v12362_v61  ;;  %9265 = vmatprep.subr.mxu0 %v13664_v52  ;;  %v13666_v61 = vld [vmem:[#allocation54_spill] sm:$0xff] }
 0x4e8   : > { %9317 = vmatprep.subr.mxu1 %v13618_v57  ;;  %9210 = vmatprep.mubr.f32.mxu0 %v12386_v10  ;;  %v13669_v10 = vld [vmem:[#allocation67_spill] sm:$0xff] }
 0x4e9   : > { %9266 = vmatpush3.msra.mxu0 %v13664_v52  ;;  %9318 = vmatpush3.msra.mxu1 %v13618_v57 }
 0x4ea   : > { %9267 = vmatprep.subr.mxu0 %v13665_v39  ;;  %9319 = vmatprep.subr.mxu1 %v13620_v21 }
 0x4eb   : > { %9268 = vmatpush3.msra.mxu0 %v13665_v39  ;;  %9320 = vmatpush3.msra.mxu1 %v13620_v21 }
 0x4ec   : > { %9211 = vmatmul.mubr.f32.gmra.mxu0 %v12395_v53  ;;  %9269 = vmatprep.subr.mxu0 %v13666_v61  ;;  %v13671_v53 = vld [vmem:[#allocation75_spill] sm:$0xff] }
 0x4ed   : > { %9321 = vmatprep.subr.mxu1 %v13622_v47  ;;  %9270 = vmatpush3.msra.mxu0 %v13666_v61 }
 0x4ee   : > { %9289 = vmatprep.mubr.f32.mxu0 %v12299_v15  ;;  %9322 = vmatpush3.msra.mxu1 %v13622_v47  ;;  %v13670_v15 = vld [vmem:[#allocation71_spill] sm:$0xff] }
 0x4ef   : > { %9271 = vmatprep.subr.mxu0 %v13667_v42  ;;  %9323 = vmatprep.subr.mxu1 %v13624_v11 }
 0x4f0   : > { %9272 = vmatpush3.msra.mxu0 %v13667_v42  ;;  %9324 = vmatpush3.msra.mxu1 %v13624_v11 }
 0x4f1   : > { %9273 = vmatprep.subr.mxu0 %v13668_v38  ;;  %9325 = vmatprep.subr.mxu1 %v13649_v44 }
 0x4f2   : > { %9274 = vmatpush3.msra.mxu0 %v13668_v38  ;;  %9326 = vmatpush3.msra.mxu1 %v13649_v44 }
 0x4f3   : > { %9275 = vmatprep.subr.mxu0 %v13669_v10  ;;  %9327 = vmatprep.subr.mxu1 %v13651_v30 }
 0x4f4   : > { %9276 = vmatpush3.msra.mxu0 %v13669_v10  ;;  %9328 = vmatpush3.msra.mxu1 %v13651_v30 }
 0x4f5   : > { %9277 = vmatprep.subr.mxu0 %v13670_v15  ;;  %9329 = vmatprep.subr.mxu1 %v13653_v50 }
 0x4f6   : > { %9278 = vmatpush3.msra.mxu0 %v13670_v15  ;;  %9330 = vmatpush3.msra.mxu1 %v13653_v50 }
 0x4f7   : > { %9279 = vmatprep.subr.mxu0 %v13671_v53  ;;  %9331 = vmatprep.subr.mxu1 %v13655_v29 }
 0x4f8   : > { %9280 = vmatpush3.msra.mxu0 %v13671_v53  ;;  %9332 = vmatpush3.msra.mxu1 %v13655_v29  ;;  %v13677_v53 = vld [vmem:[#allocation52_spill] sm:$0xff] }
 0x4f9   : > { %9281 = vmatprep.subr.mxu0 %v13672_v14  ;;  %9334 = vmatmul.mubr.f32.vlgmr.msra.gmra.mxu1 %v12288_v17 }
 0x4fa   : > { %9389 = vmatprep.subr.mxu1 %v13673_v49  ;;  %9282 = vmatpush3.msra.mxu0 %v13672_v14  ;;  %v5521_v14 = vmul.f32 %v12290_v8, %v12290_v8  ;;  %v13680_v8 = vld [vmem:[#allocation61_spill] sm:$0xff] }
 0x4fb   : > { %9336 = vmatprep.mubr.f32.mxu1 %v12316_v59  ;;  %9390 = vmatpush3.msra.mxu1 %v13673_v49  ;;  %v13678_v49 = vld [vmem:[#allocation87_spill] sm:$0xff] }
 0x4fc   : > { %9283 = vmatprep.subr.mxu0 %v13674_v12  ;;  %9391 = vmatprep.subr.mxu1 %v13675_v24 }
 0x4fd   : > { %9284 = vmatpush3.msra.mxu0 %v13674_v12  ;;  %9392 = vmatpush3.msra.mxu1 %v13675_v24  ;;  %v13679_v12 = vld [vmem:[#allocation58_spill] sm:$0xff]  ;;  %v12566_v24 = vand.u32 4294901760, %v5521_v14 }
 0x4fe   : > { %9285 = vmatprep.subr.mxu0 %v13676_v63  ;;  %9337 = vmatmul.mubr.f32.gmra.mxu1 %v12306_v3 }
 0x4ff   : > { %9393 = vmatprep.subr.mxu1 %v13677_v53  ;;  %9286 = vmatpush3.msra.mxu0 %v13676_v63 }
 0x500   : > { %9339 = vmatprep.mubr.f32.mxu1 %v12347_v45  ;;  %9394 = vmatpush3.msra.mxu1 %v13677_v53  ;;  %v13681_v53 = vld [vmem:[#allocation66_spill] sm:$0xff] }
 0x501   : > { %9287 = vmatprep.subr.mxu0 %v13678_v49  ;;  %9395 = vmatprep.subr.mxu1 %v13679_v12 }
 0x502   : > { %9288 = vmatpush3.msra.mxu0 %v13678_v49  ;;  %9396 = vmatpush3.msra.mxu1 %v13679_v12  ;;  %v13685_v12 = vld [vmem:[#allocation81_spill] sm:$0xff] }
 0x503   : > { %9290 = vmatmul.mubr.f32.vlgmr.msra.gmra.mxu0 %v12288_v17  ;;  %9340 = vmatmul.mubr.f32.gmra.mxu1 %v12332_v55  ;;  %v12577_v17 = vsub.f32 %v5521_v14, %v12566_v24  ;;  %v13683_v14 = vld [vmem:[#allocation74_spill] sm:$0xff] }
 0x504   : > { %9345 = vmatprep.subr.mxu0 %v13600_v31  ;;  %9397 = vmatprep.subr.mxu1 %v13680_v8 }
 0x505   : > { %9292 = vmatprep.mubr.f32.mxu0 %v12316_v59  ;;  %9342 = vmatprep.mubr.f32.mxu1 %v12373_v25  ;;  %v13682_v59 = vld [vmem:[#allocation70_spill] sm:$0xff] }
 0x506   : > { %9346 = vmatpush3.msra.mxu0 %v13600_v31  ;;  %9398 = vmatpush3.msra.mxu1 %v13680_v8  ;;  %v13398_v8 = vand.u32 4294901760, %v12577_v17 }
 0x507   : > { %9347 = vmatprep.subr.mxu0 %v13601_v35  ;;  %9399 = vmatprep.subr.mxu1 %v13681_v53 }
 0x508   : > { %9348 = vmatpush3.msra.mxu0 %v13601_v35  ;;  %9400 = vmatpush3.msra.mxu1 %v13681_v53  ;;  %v5522_v53 = vmul.f32 %v12285_v4, %v12285_v4 }
 0x509   : > { %9293 = vmatmul.mubr.f32.gmra.mxu0 %v12306_v3  ;;  %9343 = vmatmul.mubr.f32.gmra.mxu1 %v12369_v33  ;;  %v13684_v3 = vld [vmem:[#allocation76_spill] sm:$0xff] }
 0x50a   : > { %9349 = vmatprep.subr.mxu0 %v13604_v16  ;;  %9401 = vmatprep.subr.mxu1 %v13682_v59 }
 0x50b   : > { %9295 = vmatprep.mubr.f32.mxu0 %v12347_v45  ;;  %9350 = vmatpush3.msra.mxu0 %v13604_v16  ;;  %v5613_v45 = vsub.f32 %v12577_v17, %v13398_v8  ;;  %v13691_v8 = vld [vmem:[#allocation92_spill] sm:$0xff] }
 0x50c   : > { %9402 = vmatpush3.msra.mxu1 %v13682_v59  ;;  %9421 = vmatprep.mubr.f32.mxu1 %v12566_v24  ;;  %v5523_v59 = vmul.f32 %v12302_v20, %v12302_v20  ;;  %v13693_v20 = vld [vmem:[#allocation93_spill] sm:$0xff] }
 0x50d   : > { %9351 = vmatprep.subr.mxu0 %v13606_v56  ;;  %9403 = vmatprep.subr.mxu1 %v13683_v14 }
 0x50e   : > { %9352 = vmatpush3.msra.mxu0 %v13606_v56  ;;  %9404 = vmatpush3.msra.mxu1 %v13683_v14  ;;  %v13687_v14 = vld [vmem:[#allocation86_spill] sm:$0xff] }
 0x50f   : > { %9296 = vmatmul.mubr.f32.gmra.mxu0 %v12332_v55  ;;  %9353 = vmatprep.subr.mxu0 %v13609_v43  ;;  %v5614_v55 = vand.u32 4294901760, %v5613_v45  ;;  %v5524_v45 = vmul.f32 %v12296_v26, %v12296_v26 }
 0x510   : > { %9405 = vmatprep.subr.mxu1 %v13684_v3  ;;  %9298 = vmatprep.mubr.f32.mxu0 %v12373_v25  ;;  %v13686_v25 = vld [vmem:[#allocation84_spill] sm:$0xff] }
 0x511   : > { %9354 = vmatpush3.msra.mxu0 %v13609_v43  ;;  %9406 = vmatpush3.msra.mxu1 %v13684_v3  ;;  %v13688_v3 = vld [vmem:[#allocation88_spill] sm:$0xff] }
 0x512   : > { %9355 = vmatprep.subr.mxu0 %v13612_v1  ;;  %9407 = vmatprep.subr.mxu1 %v13685_v12 }
 0x513   : > { %9356 = vmatpush3.msra.mxu0 %v13612_v1  ;;  %9408 = vmatpush3.msra.mxu1 %v13685_v12  ;;  %v12628_v12 = vand.u32 4294901760, %v5523_v59 }
 0x514   : > { %9299 = vmatmul.mubr.f32.gmra.mxu0 %v12369_v33  ;;  %9357 = vmatprep.subr.mxu0 %v13614_v51  ;;  %v12618_v33 = vand.u32 4294901760, %v5522_v53 }
 0x515   : > { %9409 = vmatprep.subr.mxu1 %v13686_v25  ;;  %9358 = vmatpush3.msra.mxu0 %v13614_v51  ;;  %13689 = vst [vmem:[#allocation95_spill] sm:$0xff] %v12628_v12 }
 0x516   : > { %9377 = vmatprep.mubr.f32.mxu0 %v5614_v55  ;;  %9410 = vmatpush3.msra.mxu1 %v13686_v25  ;;  %v13690_v55 = vld [vmem:[#allocation90_spill] sm:$0xff]  ;;  %v12633_v25 = vsub.f32 %v5522_v53, %v12618_v33  ;;  %v12646_v53 = vsub.f32 %v5523_v59, %v12628_v12  ;;  %v5527_v59 = vmul.f32 %v12353_v60, %v12353_v60 }
 0x517   : > { %9359 = vmatprep.subr.mxu0 %v13616_v40  ;;  %9411 = vmatprep.subr.mxu1 %v13687_v14 }
 0x518   : > { %9360 = vmatpush3.msra.mxu0 %v13616_v40  ;;  %9412 = vmatpush3.msra.mxu1 %v13687_v14  ;;  %v5525_v14 = vmul.f32 %v12325_v6, %v12325_v6  ;;  %v5526_v6 = vmul.f32 %v12312_v0, %v12312_v0  ;;  %v12688_v49 = vand.u32 4294901760, %v5527_v59 }
 0x519   : > { %9361 = vmatprep.subr.mxu0 %v13618_v57  ;;  %9413 = vmatprep.subr.mxu1 %v13688_v3 }
 0x51a   : > { %9362 = vmatpush3.msra.mxu0 %v13618_v57  ;;  %9414 = vmatpush3.msra.mxu1 %v13688_v3  ;;  %v12643_v3 = vand.u32 4294901760, %v5524_v45  ;;  %v12674_v60 = vand.u32 4294901760, %v5526_v6 }
 0x51b   : > { %9363 = vmatprep.subr.mxu0 %v13620_v21  ;;  %9415 = vmatprep.subr.mxu1 %v13690_v55 }
 0x51c   : > { %9364 = vmatpush3.msra.mxu0 %v13620_v21  ;;  %9416 = vmatpush3.msra.mxu1 %v13690_v55  ;;  %13692 = vst [vmem:[#allocation96_spill] sm:$0xff] %v12643_v3  ;;  %v13410_v55 = vand.u32 4294901760, %v12646_v53  ;;  %v12665_v0 = vsub.f32 %v5524_v45, %v12643_v3  ;;  %v5528_v45 = vmul.f32 %v12343_v9, %v12343_v9 }
 0x51d   : > { %9365 = vmatprep.subr.mxu0 %v13622_v47  ;;  %9417 = vmatprep.subr.mxu1 %v13691_v8  ;;  %v12697_v63 = vsub.f32 %v5526_v6, %v12674_v60 }
 0x51e   : > { %9366 = vmatpush3.msra.mxu0 %v13622_v47  ;;  %9418 = vmatpush3.msra.mxu1 %v13691_v8  ;;  %v12655_v8 = vand.u32 4294901760, %v5525_v14 }
 0x51f   : > { %9367 = vmatprep.subr.mxu0 %v13624_v11  ;;  %9419 = vmatprep.subr.mxu1 %v13693_v20 }
 0x520   : > { %9368 = vmatpush3.msra.mxu0 %v13624_v11  ;;  %9420 = vmatpush3.msra.mxu1 %v13693_v20  ;;  %13694 = vst [vmem:[#allocation94_spill] sm:$0xff] %v12655_v8  ;;  %v13695_v20 = vand.u32 4294901760, %v12633_v25  ;;  %v12677_v4 = vsub.f32 %v5525_v14, %v12655_v8 }
 0x521   : > { %9369 = vmatprep.subr.mxu0 %v13649_v44  ;;  %9422 = vmatmul.mubr.f32.vlgmr.msra.gmra.mxu1 %v12618_v33 }
 0x522   : > { %9477 = vmatprep.subr.mxu1 %v13600_v31  ;;  %9370 = vmatpush3.msra.mxu0 %v13649_v44  ;;  %v5623_v26 = vsub.f32 %v12633_v25, %v13695_v20  ;;  %v5633_v20 = vsub.f32 %v12646_v53, %v13410_v55  ;;  %v12701_v55 = vand.u32 4294901760, %v5528_v45 }
 0x523   : > { %9424 = vmatprep.mubr.f32.mxu1 %v12628_v12  ;;  %9478 = vmatpush3.msra.mxu1 %v13600_v31  ;;  %v12708_v12 = vsub.f32 %v5527_v59, %v12688_v49 }
 0x524   : > { %9371 = vmatprep.subr.mxu0 %v13651_v30  ;;  %9479 = vmatprep.subr.mxu1 %v13601_v35  ;;  %v5624_v9 = vand.u32 4294901760, %v5623_v26  ;;  %v5634_v14 = vand.u32 4294901760, %v5633_v20  ;;  %v13696_v26 = vand.u32 4294901760, %v12665_v0  ;;  %v12720_v59 = vsub.f32 %v5528_v45, %v12701_v55 }
 0x525   : > { %9372 = vmatpush3.msra.mxu0 %v13651_v30  ;;  %9480 = vmatpush3.msra.mxu1 %v13601_v35  ;;  %v13697_v45 = vand.u32 4294901760, %v12577_v17 }
 0x526   : > { %9373 = vmatprep.subr.mxu0 %v13653_v50  ;;  %9425 = vmatmul.mubr.f32.gmra.mxu1 %v12643_v3  ;;  %v5652_v3 = vand.u32 4294901760, %v12677_v4 }
 0x527   : > { %9481 = vmatprep.subr.mxu1 %v13604_v16  ;;  %9374 = vmatpush3.msra.mxu0 %v13653_v50 }
 0x528   : > { %9427 = vmatprep.mubr.f32.mxu1 %v12655_v8  ;;  %9482 = vmatpush3.msra.mxu1 %v13604_v16  ;;  %v5643_v8 = vsub.f32 %v12665_v0, %v13696_v26  ;;  %v5653_v6 = vsub.f32 %v12677_v4, %v5652_v3 }
 0x529   : > { %9375 = vmatprep.subr.mxu0 %v13655_v29  ;;  %9483 = vmatprep.subr.mxu1 %v13606_v56 }
 0x52a   : > { %9376 = vmatpush3.msra.mxu0 %v13655_v29  ;;  %9484 = vmatpush3.msra.mxu1 %v13606_v56  ;;  %v5644_v20 = vand.u32 4294901760, %v5643_v8  ;;  %v5654_v26 = vand.u32 4294901760, %v5653_v6  ;;  %v5682_v8 = vand.u32 4294901760, %v12720_v59 }
 0x52b   : > { %9378 = vmatmul.mubr.f32.vlgmr.msra.gmra.mxu0 %v5624_v9  ;;  %9428 = vmatmul.mubr.f32.gmra.mxu1 %v12674_v60  ;;  %v5662_v9 = vand.u32 4294901760, %v12697_v63 }
 0x52c   : > { %9433 = vmatprep.subr.mxu0 %v13632_v62  ;;  %9485 = vmatprep.subr.mxu1 %v13609_v43 }
 0x52d   : > { %9380 = vmatprep.mubr.f32.mxu0 %v5634_v14  ;;  %9430 = vmatprep.mubr.f32.mxu1 %v12688_v49  ;;  %v5672_v14 = vand.u32 4294901760, %v12708_v12 }
 0x52e   : > { %9434 = vmatpush3.msra.mxu0 %v13632_v62  ;;  %9486 = vmatpush3.msra.mxu1 %v13609_v43  ;;  %v5663_v62 = vsub.f32 %v12697_v63, %v5662_v9 }
 0x52f   : > { %9435 = vmatprep.subr.mxu0 %v13641_v37  ;;  %9487 = vmatprep.subr.mxu1 %v13612_v1 }
 0x530   : > { %9436 = vmatpush3.msra.mxu0 %v13641_v37  ;;  %9488 = vmatpush3.msra.mxu1 %v13612_v1  ;;  %v5673_v37 = vsub.f32 %v12708_v12, %v5672_v14  ;;  %v5664_v6 = vand.u32 4294901760, %v5663_v62 }
 0x531   : > { %9381 = vmatmul.mubr.f32.gmra.mxu0 %v5644_v20  ;;  %9431 = vmatmul.mubr.f32.gmra.mxu1 %v12701_v55  ;;  %v5683_v20 = vsub.f32 %v12720_v59, %v5682_v8 }
 0x532   : > { %9437 = vmatprep.subr.mxu0 %v13642_v54  ;;  %9489 = vmatprep.subr.mxu1 %v13614_v51 }
 0x533   : > { %9383 = vmatprep.mubr.f32.mxu0 %v5654_v26  ;;  %9438 = vmatpush3.msra.mxu0 %v13642_v54  ;;  %v5674_v54 = vand.u32 4294901760, %v5673_v37 }
 0x534   : > { %9490 = vmatpush3.msra.mxu1 %v13614_v51  ;;  %9509 = vmatprep.mubr.f32.mxu1 %v13697_v45 }
 0x535   : > { %9439 = vmatprep.subr.mxu0 %v13643_v2  ;;  %9491 = vmatprep.subr.mxu1 %v13616_v40 }
 0x536   : > { %9440 = vmatpush3.msra.mxu0 %v13643_v2  ;;  %9492 = vmatpush3.msra.mxu1 %v13616_v40  ;;  %v5684_v2 = vand.u32 4294901760, %v5683_v20  ;;  %v9718_v20 = vld [vmem:[#allocation10 + $0x74] ss:$8 sps:$4 sm:$0xff]  }
 0x537   : > { %9384 = vmatmul.mubr.f32.gmra.mxu0 %v5664_v6  ;;  %9441 = vmatprep.subr.mxu0 %v13644_v19 }
 0x538   : > { %9493 = vmatprep.subr.mxu1 %v13618_v57  ;;  %9386 = vmatprep.mubr.f32.mxu0 %v5674_v54  ;;  %v9716_v54 = vld [vmem:[#allocation10 + $0x70] ss:$8 sps:$4 sm:$0xff]  }
 0x539   : > { %9442 = vmatpush3.msra.mxu0 %v13644_v19  ;;  %9494 = vmatpush3.msra.mxu1 %v13618_v57  ;;  %v13698_v19 = vand.u32 4294901760, %v12633_v25 }
 0x53a   : > { %9443 = vmatprep.subr.mxu0 %v13645_v27  ;;  %9495 = vmatprep.subr.mxu1 %v13620_v21 }
 0x53b   : > { %9444 = vmatpush3.msra.mxu0 %v13645_v27  ;;  %9496 = vmatpush3.msra.mxu1 %v13620_v21  ;;  %v13699_v27 = vand.u32 4294901760, %v12646_v53 }
 0x53c   : > { %9387 = vmatmul.mubr.f32.gmra.mxu0 %v5684_v2  ;;  %9445 = vmatprep.subr.mxu0 %v13646_v7  ;;  %v9721_v2 = vld [vmem:[#allocation10 + $0x64] ss:$8 sps:$4 sm:$0xff]  }
 0x53d   : > { %9497 = vmatprep.subr.mxu1 %v13622_v47  ;;  %9446 = vmatpush3.msra.mxu0 %v13646_v7  ;;  %v13700_v7 = vand.u32 4294901760, %v12665_v0 }
 0x53e   : > { %9465 = vmatprep.mubr.f32.mxu0 %v12577_v17  ;;  %9498 = vmatpush3.msra.mxu1 %v13622_v47 }
 0x53f   : > { %9447 = vmatprep.subr.mxu0 %v13647_v36  ;;  %9499 = vmatprep.subr.mxu1 %v13624_v11 }
 0x540   : > { %9448 = vmatpush3.msra.mxu0 %v13647_v36  ;;  %9500 = vmatpush3.msra.mxu1 %v13624_v11 }
 0x541   : > { %9449 = vmatprep.subr.mxu0 %v13648_v41  ;;  %9501 = vmatprep.subr.mxu1 %v13649_v44 }
 0x542   : > { %9450 = vmatpush3.msra.mxu0 %v13648_v41  ;;  %9502 = vmatpush3.msra.mxu1 %v13649_v44 }
 0x543   : > { %9451 = vmatprep.subr.mxu0 %v13650_v13  ;;  %9503 = vmatprep.subr.mxu1 %v13651_v30 }
 0x544   : > { %9452 = vmatpush3.msra.mxu0 %v13650_v13  ;;  %9504 = vmatpush3.msra.mxu1 %v13651_v30 }
 0x545   : > { %9453 = vmatprep.subr.mxu0 %v13652_v28  ;;  %9505 = vmatprep.subr.mxu1 %v13653_v50 }
 0x546   : > { %9454 = vmatpush3.msra.mxu0 %v13652_v28  ;;  %9506 = vmatpush3.msra.mxu1 %v13653_v50 }
 0x547   : > { %9455 = vmatprep.subr.mxu0 %v13654_v5  ;;  %9507 = vmatprep.subr.mxu1 %v13655_v29 }
 0x548   : > { %9456 = vmatpush3.msra.mxu0 %v13654_v5  ;;  %9508 = vmatpush3.msra.mxu1 %v13655_v29 }
 0x549   : > { %9457 = vmatprep.subr.mxu0 %v13656_v18  ;;  %9510 = vmatmul.mubr.f32.vlgmr.msra.gmra.mxu1 %v13698_v19  ;;  %v9719_v19 = vld [vmem:[#allocation10 + $0x60] ss:$8 sps:$4 sm:$0xff]  }
 0x54a   : > { %9565 = vmatprep.subr.mxu1 %v13600_v31  ;;  %9458 = vmatpush3.msra.mxu0 %v13656_v18 }
 0x54b   : > { %9512 = vmatprep.mubr.f32.mxu1 %v13699_v27  ;;  %9566 = vmatpush3.msra.mxu1 %v13600_v31  ;;  %v9724_v27 = vld [vmem:[#allocation10 + $0x54] ss:$8 sps:$4 sm:$0xff]  }
 0x54c   : > { %9459 = vmatprep.subr.mxu0 %v13657_v23  ;;  %9567 = vmatprep.subr.mxu1 %v13601_v35 }
 0x54d   : > { %9460 = vmatpush3.msra.mxu0 %v13657_v23  ;;  %9568 = vmatpush3.msra.mxu1 %v13601_v35  ;;  %v13701_v35 = vld [vmem:[#allocation75_spill] sm:$0xff] }
 0x54e   : > { %9461 = vmatprep.subr.mxu0 %v13658_v48  ;;  %9513 = vmatmul.mubr.f32.gmra.mxu1 %v13700_v7  ;;  %v9722_v7 = vld [vmem:[#allocation10 + $0x50] ss:$8 sps:$4 sm:$0xff]  }
 0x54f   : > { %9569 = vmatprep.subr.mxu1 %v13604_v16  ;;  %9462 = vmatpush3.msra.mxu0 %v13658_v48 }
 0x550   : > { %9515 = vmatprep.mubr.f32.mxu1 %v5652_v3  ;;  %9570 = vmatpush3.msra.mxu1 %v13604_v16 }
 0x551   : > { %9463 = vmatprep.subr.mxu0 %v13659_v22  ;;  %9571 = vmatprep.subr.mxu1 %v13606_v56 }
 0x552   : > { %9464 = vmatpush3.msra.mxu0 %v13659_v22  ;;  %9572 = vmatpush3.msra.mxu1 %v13606_v56  ;;  %v13702_v56 = vld [vmem:[#allocation79_spill] sm:$0xff] }
 0x553   : > { %9466 = vmatmul.mubr.f32.vlgmr.msra.gmra.mxu0 %v12633_v25  ;;  %9516 = vmatmul.mubr.f32.gmra.mxu1 %v5662_v9 }
 0x554   : > { %9521 = vmatprep.subr.mxu0 %v13660_v32  ;;  %9573 = vmatprep.subr.mxu1 %v13609_v43 }
 0x555   : > { %9468 = vmatprep.mubr.f32.mxu0 %v12646_v53  ;;  %9518 = vmatprep.mubr.f32.mxu1 %v5672_v14 }
 0x556   : > { %9522 = vmatpush3.msra.mxu0 %v13660_v32  ;;  %9574 = vmatpush3.msra.mxu1 %v13609_v43  ;;  %v13703_v43 = vld [vmem:[#allocation95_spill] sm:$0xff] }
 0x557   : > { %9523 = vmatprep.subr.mxu0 %v13661_v34  ;;  %9575 = vmatprep.subr.mxu1 %v13612_v1 }
 0x558   : > { %9524 = vmatpush3.msra.mxu0 %v13661_v34  ;;  %9576 = vmatpush3.msra.mxu1 %v13612_v1  ;;  %v13704_v1 = vld [vmem:[#allocation82_spill] sm:$0xff] }
 0x559   : > { %9469 = vmatmul.mubr.f32.gmra.mxu0 %v12665_v0  ;;  %9519 = vmatmul.mubr.f32.gmra.mxu1 %v5682_v8  ;;  %v13708_v0 = vld [vmem:[#allocation87_spill] sm:$0xff] }
 0x55a   : > { %9525 = vmatprep.subr.mxu0 %v13662_v46  ;;  %9577 = vmatprep.subr.mxu1 %v13614_v51 }
 0x55b   : > { %9471 = vmatprep.mubr.f32.mxu0 %v12677_v4  ;;  %9526 = vmatpush3.msra.mxu0 %v13662_v46  ;;  %v13707_v4 = vld [vmem:[#allocation94_spill] sm:$0xff] }
 0x55c   : > { %9578 = vmatpush3.msra.mxu1 %v13614_v51  ;;  %9597 = vmatprep.mubr.f32.mxu1 %v12566_v24 }
 0x55d   : > { %9527 = vmatprep.subr.mxu0 %v13663_v58  ;;  %9579 = vmatprep.subr.mxu1 %v13616_v40 }
 0x55e   : > { %9528 = vmatpush3.msra.mxu0 %v13663_v58  ;;  %9580 = vmatpush3.msra.mxu1 %v13616_v40 }
 0x55f   : > { %9472 = vmatmul.mubr.f32.gmra.mxu0 %v12697_v63  ;;  %9529 = vmatprep.subr.mxu0 %v13664_v52 }
 0x560   : > { %9581 = vmatprep.subr.mxu1 %v13618_v57  ;;  %9474 = vmatprep.mubr.f32.mxu0 %v12708_v12 }
 0x561   : > { %9530 = vmatpush3.msra.mxu0 %v13664_v52  ;;  %9582 = vmatpush3.msra.mxu1 %v13618_v57  ;;  %v13705_v57 = vld [vmem:[#allocation85_spill] sm:$0xff] }
 0x562   : > { %9531 = vmatprep.subr.mxu0 %v13665_v39  ;;  %9583 = vmatprep.subr.mxu1 %v13620_v21 }
 0x563   : > { %9532 = vmatpush3.msra.mxu0 %v13665_v39  ;;  %9584 = vmatpush3.msra.mxu1 %v13620_v21 }
 0x564   : > { %9475 = vmatmul.mubr.f32.gmra.mxu0 %v12720_v59  ;;  %9533 = vmatprep.subr.mxu0 %v13666_v61 }
 0x565   : > { %9585 = vmatprep.subr.mxu1 %v13622_v47  ;;  %9534 = vmatpush3.msra.mxu0 %v13666_v61 }
 0x566   : > { %9553 = vmatprep.mubr.f32.mxu0 %v12566_v24  ;;  %9586 = vmatpush3.msra.mxu1 %v13622_v47  ;;  %v13706_v47 = vld [vmem:[#allocation96_spill] sm:$0xff] }
 0x567   : > { %9535 = vmatprep.subr.mxu0 %v13667_v42  ;;  %9587 = vmatprep.subr.mxu1 %v13624_v11 }
 0x568   : > { %9536 = vmatpush3.msra.mxu0 %v13667_v42  ;;  %9588 = vmatpush3.msra.mxu1 %v13624_v11 }
 0x569   : > { %9537 = vmatprep.subr.mxu0 %v13668_v38  ;;  %9589 = vmatprep.subr.mxu1 %v13649_v44 }
 0x56a   : > { %9538 = vmatpush3.msra.mxu0 %v13668_v38  ;;  %9590 = vmatpush3.msra.mxu1 %v13649_v44 }
 0x56b   : > { %9539 = vmatprep.subr.mxu0 %v13669_v10  ;;  %9591 = vmatprep.subr.mxu1 %v13651_v30  ;;  %v9159_v31 = vpop.f32.mrf.mxu1 }
 0x56c   : > { %9540 = vmatpush3.msra.mxu0 %v13669_v10  ;;  %9592 = vmatpush3.msra.mxu1 %v13651_v30 }
 0x56d   : > { %9541 = vmatprep.subr.mxu0 %v13670_v15  ;;  %9593 = vmatprep.subr.mxu1 %v13653_v50  ;;  %v4887_v16 = vpop.f32.mrf.mxu1 }
 0x56e   : > { %9542 = vmatpush3.msra.mxu0 %v13670_v15  ;;  %9594 = vmatpush3.msra.mxu1 %v13653_v50 }
 0x56f   : > { %9543 = vmatprep.subr.mxu0 %v13701_v35  ;;  %9595 = vmatprep.subr.mxu1 %v13655_v29  ;;  %v9162_v51 = vpop.f32.mrf.mxu1 }
 0x570   : > { %9544 = vmatpush3.msra.mxu0 %v13701_v35  ;;  %9596 = vmatpush3.msra.mxu1 %v13655_v29  ;;  %v9725_v35 = vld [vmem:[#allocation10 + $0x40] ss:$8 sps:$4 sm:$0xff]  }
 0x571   : > { %9545 = vmatprep.subr.mxu0 %v13702_v56  ;;  %9598 = vmatmul.mubr.f32.vlgmr.msra.gmra.mxu1 %v12618_v33  ;;  %v4899_v36 = vpop.f32.mrf.mxu1 }
 0x572   : > { %9546 = vmatpush3.msra.mxu0 %v13702_v56  ;;  %9600 = vmatprep.mubr.f32.mxu1 %v13703_v43  ;;  %v9728_v56 = vld [vmem:[#allocation10 + $0x30] ss:$8 sps:$4 sm:$0xff]  }
 0x573   : > { %9547 = vmatprep.subr.mxu0 %v13704_v1 }
 0x574   : > { %9548 = vmatpush3.msra.mxu0 %v13704_v1  ;;  %v9115_v40 = vpop.f32.mrf.mxu0  ;;  %v9165_v13 = vpop.f32.mrf.mxu1  ;;  %v9731_v1 = vld [vmem:[#allocation10 + $0x20] ss:$8 sps:$4 sm:$0xff]  }
 0x575   : > { %9549 = vmatprep.subr.mxu0 %v13705_v57  ;;  %v12876_v21 = vadd.f32 %v9159_v31, %v9115_v40  ;;  %9601 = vmatmul.mubr.f32.gmra.mxu1 %v13706_v47  ;;  %v9727_v31 = vld [vmem:[#allocation10 + $0x44] ss:$8 sps:$4 sm:$0xff]   ;;  %v9734_v40 = vld [vmem:[#allocation10 + $0x10] ss:$8 sps:$4 sm:$0xff]  }
 0x576   : > { %9550 = vmatpush3.msra.mxu0 %v13705_v57  ;;  %v4666_v11 = vpop.f32.mrf.mxu0  ;;  %9603 = vmatprep.mubr.f32.mxu1 %v13707_v4  ;;  %v4911_v5 = vpop.f32.mrf.mxu1  ;;  %v9739_v57 = vld [vmem:[#allocation10 + $0x4] ss:$8 sps:$4 sm:$0xff]  }
 0x577   : > { %9551 = vmatprep.subr.mxu0 %v13708_v0  ;;  %v12882_v41 = vadd.f32 %v4887_v16, %v4666_v11  ;;  %v9730_v16 = vld [vmem:[#allocation10 + $0x34] ss:$8 sps:$4 sm:$0xff]   ;;  %v13415_v11 = vmov 0  }
 0x578   : > { %9552 = vmatpush3.msra.mxu0 %v13708_v0 }
 0x579   : > { %9554 = vmatmul.mubr.f32.vlgmr.msra.gmra.mxu0 %v12618_v33  ;;  %9604 = vmatmul.mubr.f32.gmra.mxu1 %v12674_v60 }
 0x57a   : > { %9556 = vmatprep.mubr.f32.mxu0 %v13703_v43  ;;  %v9118_v44 = vpop.f32.mrf.mxu0  ;;  %9606 = vmatprep.mubr.f32.mxu1 %v12688_v49  ;;  %v9168_v48 = vpop.f32.mrf.mxu1  ;;  %v9733_v43 = vld [vmem:[#allocation10 + $0x24] ss:$8 sps:$4 sm:$0xff]  }
 0x57b   : > { %v4906_v30 = vadd.f32 %v9162_v51, %v9118_v44  ;;  %6661 = vmatprep.subr.bf16.mxu0 %v9718_v20  ;;  %v9736_v51 = vld [vmem:[#allocation10 + $0x14] ss:$8 sps:$4 sm:$0xff]  }
 0x57c   : > { %v4686_v28 = vpop.f32.mrf.mxu0  ;;  %v4923_v46 = vpop.f32.mrf.mxu1  ;;  %6662 = vmatpush1.bf16.msra.mxu0 %v9716_v54 }
 0x57d   : > { %9557 = vmatmul.mubr.f32.gmra.mxu0 %v13706_v47  ;;  %v12890_v50 = vadd.f32 %v4899_v36, %v4686_v28  ;;  %9607 = vmatmul.mubr.f32.gmra.mxu1 %v12701_v55  ;;  %v9737_v47 = vld [vmem:[#allocation10] ss:$8 sps:$4 sm:$0xff]  }
 0x57e   : > { %9559 = vmatprep.mubr.f32.mxu0 %v13707_v4  ;;  %6663 = vmatprep.subr.bf16.mxu0 %v9721_v2 }
 0x580   : > { %v9121_v29 = vpop.f32.mrf.mxu0  ;;  %6664 = vmatpush1.bf16.msra.mxu0 %v9719_v19 }
 0x581   : > { %9560 = vmatmul.mubr.f32.gmra.mxu0 %v12674_v60  ;;  %v4918_v18 = vadd.f32 %v9165_v13, %v9121_v29  ;;  %6665 = vmatprep.subr.bf16.mxu0 %v9724_v27 }
 0x582   : > { %9562 = vmatprep.mubr.f32.mxu0 %v12688_v49  ;;  %v4706_v23 = vpop.f32.mrf.mxu0 }
 0x583   : > { %v4912_v22 = vadd.f32 %v4911_v5, %v4706_v23 }
 0x584   : > { %6666 = vmatpush1.bf16.msra.mxu0 %v9722_v7 }
 0x585   : > { %9563 = vmatmul.mubr.f32.gmra.mxu0 %v12701_v55  ;;  %v9124_v32 = vpop.f32.mrf.mxu0  ;;  %6667 = vmatprep.subr.bf16.mxu0 %v9727_v31 }
 0x586   : > { %v4930_v34 = vadd.f32 %v9168_v48, %v9124_v32  ;;  %6693 = vmatprep.mubr.bf16.mxu0 %v13415_v11 }
 0x587   : > { %v4726_v58 = vpop.f32.mrf.mxu0 }
 0x588   : > { %v4924_v52 = vadd.f32 %v4923_v46, %v4726_v58  ;;  %6668 = vmatpush1.bf16.msra.mxu0 %v9725_v35 }
 0x589   : > { %6669 = vmatprep.subr.bf16.mxu0 %v9730_v16 }
 0x58c   : > { %6670 = vmatpush1.bf16.msra.mxu0 %v9728_v56 }
 0x58d   : > { %6671 = vmatprep.subr.bf16.mxu0 %v9733_v43 }
 0x590   : > { %6672 = vmatpush1.bf16.msra.mxu0 %v9731_v1 }
 0x591   : > { %v12897_v39 = vpop.f32.mrf.mxu1  ;;  %6673 = vmatprep.subr.bf16.mxu0 %v9736_v51 }
 0x593   : > { %v12899_v61 = vpop.f32.mrf.mxu1 }
 0x594   : > { %6674 = vmatpush1.bf16.msra.mxu0 %v9734_v40 }
 0x595   : > { %6675 = vmatprep.subr.bf16.mxu0 %v9739_v57 }
 0x596   : > { %v9250_v60 = vpop.f32.mrf.mxu1 }
 0x598   : > { %v12905_v10 = vpop.f32.mrf.mxu1  ;;  %6676 = vmatpush1.bf16.msra.mxu0 %v9737_v47 }
 0x59b   : > { %v12901_v42 = vpop.f32.mrf.mxu0  ;;  %v9253_v24 = vpop.f32.mrf.mxu1 }
 0x59c   : > { %v5041_v56 = vadd.f32 %v12901_v42, %v12876_v21 }
 0x59d   : > { %v12903_v38 = vpop.f32.mrf.mxu0  ;;  %v5203_v12 = vpop.f32.mrf.mxu1 }
 0x59e   : > { %v5034_v1 = vadd.f32 %v12903_v38, %v12882_v41  ;;  %v5180_v57 = vadd.f32 %v12897_v39, %v5041_v56 }
 0x5a0   : > { %v5172_v11 = vadd.f32 %v12899_v61, %v5034_v1 }
 0x5a1   : > { %v9206_v15 = vpop.f32.mrf.mxu0  ;;  %v9256_v9 = vpop.f32.mrf.mxu1 }
 0x5a2   : > { %v5055_v63 = vadd.f32 %v9206_v15, %v4906_v30 }
 0x5a3   : > { %v12907_v49 = vpop.f32.mrf.mxu0  ;;  %v5219_v45 = vpop.f32.mrf.mxu1 }
 0x5a4   : > { %v12909_v17 = vadd.f32 %v9250_v60, %v5055_v63  ;;  %v5048_v40 = vadd.f32 %v12907_v49, %v12890_v50 }
 0x5a6   : > { %v5188_v21 = vadd.f32 %v12905_v10, %v5048_v40 }
 0x5a7   : > { %v9209_v33 = vpop.f32.mrf.mxu0 }
 0x5a8   : > { %v5069_v25 = vadd.f32 %v9209_v33, %v4918_v18 }
 0x5a9   : > { %v5061_v3 = vpop.f32.mrf.mxu0 }
 0x5aa   : > { %v5062_v53 = vadd.f32 %v5061_v3, %v4912_v22  ;;  %v12911_v55 = vadd.f32 %v9253_v24, %v5069_v25 }
 0x5ac   : > { %v9212_v59 = vpop.f32.mrf.mxu0  ;;  %v12913_v14 = vadd.f32 %v5203_v12, %v5062_v53 }
 0x5ad   : > { %v5083_v26 = vadd.f32 %v9212_v59, %v4930_v34 }
 0x5ae   : > { %v5075_v62 = vpop.f32.mrf.mxu0 }
 0x5af   : > { %v5076_v8 = vadd.f32 %v5075_v62, %v4924_v52  ;;  %v12915_v37 = vadd.f32 %v9256_v9, %v5083_v26 }
 0x5b1   : > { %v12917_v6 = vadd.f32 %v5219_v45, %v5076_v8 }
 0x5b3   : > { %13709 = vst [vmem:[#allocation25_spill] sm:$0xff] %v12917_v6 }
 0x5b9   : > { %v12920_v4 = vpop.f32.mrf.mxu1 }
 0x5ba   : > { %v13716_v1 = vld [vmem:[#allocation25_spill] sm:$0xff] }
 0x5bb   : > { %v5475_v0 = vpop.f32.mrf.mxu1 }
 0x5be   : > { %v12922_v44 = vpop.f32.mrf.mxu1 }
 0x5c0   : > { %v12924_v30 = vpop.f32.mrf.mxu1 }
 0x5c3   : > { %v9291_v36 = vpop.f32.mrf.mxu0  ;;  %v12926_v5 = vpop.f32.mrf.mxu1 }
 0x5c5   : > { %v5346_v13 = vpop.f32.mrf.mxu0  ;;  %v12928_v18 = vpop.f32.mrf.mxu1 }
 0x5c9   : > { %v9294_v28 = vpop.f32.mrf.mxu0  ;;  %v12932_v48 = vpop.f32.mrf.mxu1 }
 0x5ca   : > { %13710 = vst [vmem:[#allocation26_spill] sm:$0xff] %v12932_v48  ;;  %v5353_v48 = vadd.f32 %v9291_v36, %v5180_v57  ;;  %v5365_v41 = vadd.f32 %v9294_v28, %v12909_v17 }
 0x5cb   : > { %v5358_v29 = vpop.f32.mrf.mxu0  ;;  %v12936_v32 = vpop.f32.mrf.mxu1 }
 0x5cc   : > { %13711 = vst [vmem:[#allocation27_spill] sm:$0xff] %v12936_v32  ;;  %v12967_v39 = vadd.f32 %v12920_v4, %v5353_v48 }
 0x5cf   : > { %v12930_v23 = vpop.f32.mrf.mxu0 }
 0x5d0   : > { %v5377_v4 = vadd.f32 %v12930_v23, %v12911_v55 }
 0x5d1   : > { %v12934_v22 = vpop.f32.mrf.mxu0 }
 0x5d4   : > { %v12938_v46 = vpop.f32.mrf.mxu0 }
 0x5d6   : > { %v12940_v52 = vpop.f32.mrf.mxu0 }
 0x5d7   : > { %13712 = vst [vmem:[#allocation28_spill] sm:$0xff] %v12940_v52 }
 0x5e1   : > { %v9423_v34 = vpop.f32.mrf.mxu1 }
 0x5e3   : > { %v5837_v58 = vpop.f32.mrf.mxu1 }
 0x5e6   : > { %v9426_v15 = vpop.f32.mrf.mxu1 }
 0x5e8   : > { %v5849_v24 = vpop.f32.mrf.mxu1 }
 0x5eb   : > { %v9379_v60 = vpop.f32.mrf.mxu0  ;;  %v9429_v12 = vpop.f32.mrf.mxu1 }
 0x5ec   : > { %v5844_v42 = vadd.f32 %v9423_v34, %v9379_v60  ;;  %v6472_v34 = vmul.f32 %v12967_v39, %v12967_v39 }
 0x5ed   : > { %v5616_v63 = vpop.f32.mrf.mxu0  ;;  %v5861_v3 = vpop.f32.mrf.mxu1 }
 0x5ee   : > { %v5838_v52 = vadd.f32 %v5837_v58, %v5616_v63 }
 0x5f1   : > { %v9382_v33 = vpop.f32.mrf.mxu0  ;;  %v12942_v9 = vpop.f32.mrf.mxu1 }
 0x5f2   : > { %v5856_v61 = vadd.f32 %v9426_v15, %v9382_v33 }
 0x5f3   : > { %v5636_v25 = vpop.f32.mrf.mxu0  ;;  %v12944_v26 = vpop.f32.mrf.mxu1 }
 0x5f4   : > { %v5850_v17 = vadd.f32 %v5849_v24, %v5636_v25 }
 0x5f7   : > { %v9385_v53 = vpop.f32.mrf.mxu0 }
 0x5f8   : > { %v5868_v15 = vadd.f32 %v9429_v12, %v9385_v53  ;;  %v5389_v53 = vadd.f32 %v12938_v46, %v12915_v37 }
 0x5f9   : > { %v5656_v59 = vpop.f32.mrf.mxu0 }
 0x5fa   : > { %v5862_v63 = vadd.f32 %v5861_v3, %v5656_v59 }
 0x5fc   : > { %v9388_v8 = vpop.f32.mrf.mxu0 }
 0x5fe   : > { %v12946_v20 = vpop.f32.mrf.mxu0 }
 0x609   : > { %v9511_v62 = vpop.f32.mrf.mxu1 }
 0x60b   : > { %v6121_v45 = vpop.f32.mrf.mxu1 }
 0x60e   : > { %v9514_v2 = vpop.f32.mrf.mxu1 }
 0x610   : > { %v6137_v27 = vpop.f32.mrf.mxu1 }
 0x613   : > { %v9467_v54 = vpop.f32.mrf.mxu0  ;;  %v12948_v31 = vpop.f32.mrf.mxu1 }
 0x614   : > { %13713 = vst [vmem:[#allocation29_spill] sm:$0xff] %v12948_v31  ;;  %v5991_v6 = vadd.f32 %v9467_v54, %v5844_v42 }
 0x615   : > { %v5983_v19 = vpop.f32.mrf.mxu0  ;;  %v12950_v16 = vpop.f32.mrf.mxu1 }
 0x616   : > { %13714 = vst [vmem:[#allocation30_spill] sm:$0xff] %v12950_v16  ;;  %v5347_v16 = vadd.f32 %v5346_v13, %v5172_v11  ;;  %v5984_v56 = vadd.f32 %v5983_v19, %v5838_v52  ;;  %v12972_v11 = vadd.f32 %v12922_v44, %v5365_v41 }
 0x618   : > { %v12969_v49 = vadd.f32 %v5475_v0, %v5347_v16  ;;  %v6122_v60 = vadd.f32 %v6121_v45, %v5984_v56  ;;  %v5880_v45 = vadd.f32 %v12942_v9, %v9388_v8 }
 0x619   : > { %v9470_v7 = vpop.f32.mrf.mxu0  ;;  %v12956_v51 = vpop.f32.mrf.mxu1 }
 0x61a   : > { %13715 = vst [vmem:[#allocation33_spill] sm:$0xff] %v12956_v51  ;;  %v5359_v51 = vadd.f32 %v5358_v29, %v5188_v21  ;;  %v6005_v28 = vadd.f32 %v9470_v7, %v5856_v61  ;;  %v6130_v29 = vadd.f32 %v9511_v62, %v5991_v6  ;;  %v6471_v58 = vmul.f32 %v12969_v49, %v12969_v49 }
 0x61b   : > { %v5997_v35 = vpop.f32.mrf.mxu0  ;;  %v12962_v32 = vpop.f32.mrf.mxu1  ;;  %v5371_v6 = vadd.f32 %v12934_v22, %v12913_v14  ;;  %v12990_v62 = vadd.f32 %v12926_v5, %v5377_v4  ;;  %v5874_v5 = vadd.f32 %v12944_v26, %v12946_v20  ;;  %v13722_v4 = vld [vmem:[#allocation27_spill] sm:$0xff] }
 0x61c   : > { %v12975_v13 = vadd.f32 %v12924_v30, %v5359_v51  ;;  %v5998_v44 = vadd.f32 %v5997_v35, %v5850_v17  ;;  %v6474_v30 = vmul.f32 %v12972_v11, %v12972_v11  ;;  %v6146_v25 = vadd.f32 %v9514_v2, %v6005_v28  ;;  %v13717_v51 = vld [vmem:[#allocation28_spill] sm:$0xff] }
 0x61d   : > { %v12994_v3 = vadd.f32 %v12928_v18, %v5371_v6  ;;  %v5383_v40 = vadd.f32 %v13717_v51, %v13716_v1  ;;  %v13719_v42 = vld [vmem:[#allocation30_spill] sm:$0xff]  ;;  %v6476_v20 = vmul.f32 %v12990_v62, %v12990_v62 }
 0x61e   : > { %v6473_v55 = vmul.f32 %v12975_v13, %v12975_v13  ;;  %v6138_v12 = vadd.f32 %v6137_v27, %v5998_v44 }
 0x61f   : > { %v9473_v43 = vpop.f32.mrf.mxu0 }
 0x620   : > { %v6019_v54 = vadd.f32 %v9473_v43, %v5868_v15 }
 0x621   : > { %v6011_v47 = vpop.f32.mrf.mxu0 }
 0x622   : > { %v6012_v19 = vadd.f32 %v6011_v47, %v5862_v63  ;;  %v13718_v47 = vld [vmem:[#allocation29_spill] sm:$0xff] }
 0x623   : > { %v6162_v18 = vadd.f32 %v13718_v47, %v6019_v54 }
 0x624   : > { %v9476_v38 = vpop.f32.mrf.mxu0  ;;  %v6154_v41 = vadd.f32 %v13719_v42, %v6012_v19 }
 0x625   : > { %v6033_v59 = vadd.f32 %v9476_v38, %v5880_v45  ;;  %v13720_v38 = vld [vmem:[#allocation26_spill] sm:$0xff] }
 0x626   : > { %v6025_v10 = vpop.f32.mrf.mxu0 }
 0x627   : > { %v6026_v57 = vadd.f32 %v6025_v10, %v5874_v5  ;;  %v7235_v5 = vld [vmem:[%s13181_s4] ss:$0 sm:$0xff] }
 0x631   : > { %v9599_v31 = vpop.f32.mrf.mxu1 }
 0x633   : > { %v6425_v50 = vpop.f32.mrf.mxu1 }
 0x635   : > { %v9602_v36 = vpop.f32.mrf.mxu1 }
 0x637   : > { %v6437_v0 = vpop.f32.mrf.mxu1 }
 0x639   : > { %v9555_v48 = vpop.f32.mrf.mxu0  ;;  %v9605_v7 = vpop.f32.mrf.mxu1 }
 0x63a   : > { %v6303_v52 = vadd.f32 %v9555_v48, %v6130_v29  ;;  %v13013_v48 = vadd.f32 %v13722_v4, %v5383_v40 }
 0x63b   : > { %v6296_v24 = vpop.f32.mrf.mxu0  ;;  %v6449_v27 = vpop.f32.mrf.mxu1 }
 0x63c   : > { %v6432_v23 = vadd.f32 %v9599_v31, %v6303_v52  ;;  %v6297_v33 = vadd.f32 %v6296_v24, %v6122_v60  ;;  %v6170_v52 = vadd.f32 %v12962_v32, %v6026_v57  ;;  %v6477_v54 = vmul.f32 %v13013_v48, %v13013_v48  ;;  %v13726_v57 = vld [vmem:[#allocation91_spill] sm:$0xff] }
 0x63d   : > { %v9558_v35 = vpop.f32.mrf.mxu0 }
 0x63e   : > { %v6480_v16 = vsub.f32 %v6432_v23, %v6472_v34  ;;  %v6426_v14 = vadd.f32 %v6425_v50, %v6297_v33  ;;  %v6315_v22 = vadd.f32 %v9558_v35, %v6146_v25  ;;  %v13007_v50 = vadd.f32 %v13720_v38, %v5389_v53 }
 0x63f   : > { %v6308_v2 = vpop.f32.mrf.mxu0  ;;  %v6475_v34 = vmul.f32 %v12994_v3, %v12994_v3 }
 0x640   : > { %v6496_v9 = vadd.f32 1e-05, %v6480_v16  ;;  %v6479_v8 = vsub.f32 %v6426_v14, %v6471_v58  ;;  %v6444_v31 = vadd.f32 %v9602_v36, %v6315_v22  ;;  %v6309_v43 = vadd.f32 %v6308_v2, %v6138_v12  ;;  %v13721_v36 = vld [vmem:[#allocation33_spill] sm:$0xff] }
 0x641   : > { %v9561_v21 = vpop.f32.mrf.mxu0  ;;  %v6178_v10 = vadd.f32 %v13721_v36, %v6033_v59  ;;  %v6478_v15 = vmul.f32 %v13007_v50, %v13007_v50  ;;  %v13723_v14 = vld [vmem:[#allocation65_spill] sm:$0xff]  ;;  %v13724_v59 = vld [vmem:[#allocation98_spill] sm:$0xff] }
 0x642   : > { %9772 = vrsqrt.f32 %v6496_v9  ;;  %v6495_v37 = vadd.f32 1e-05, %v6479_v8  ;;  %v6482_v46 = vsub.f32 %v6444_v31, %v6474_v30  ;;  %v6438_v26 = vadd.f32 %v6437_v0, %v6309_v43  ;;  %v9608_v0 = vpop.f32.mrf.mxu1  ;;  %v13725_v31 = vld [vmem:[#allocation89_spill] sm:$0xff] }
 0x643   : > { %v6327_v61 = vadd.f32 %v9561_v21, %v6162_v18  ;;  %v6320_v56 = vpop.f32.mrf.mxu0  ;;  %v6488_v22 = vsub.f32 %v13723_v14, %v12967_v39  ;;  %v6487_v2 = vsub.f32 %v13724_v59, %v12969_v49  ;;  %v6490_v43 = vsub.f32 %v13725_v31, %v12972_v11  ;;  %v7236_v39 = vld [vmem:[%s13182_s5] ss:$0 sm:$0xff]  ;;  %v9748_v14 = vld [vmem:[#allocation11 + $0x58] sm:$0xff]   ;;  %v9753_v59 = vld [vmem:[#allocation11 + $0x8] sm:$0xff]  }
 0x644   : > { %9774 = vrsqrt.f32 %v6495_v37  ;;  %v6498_v17 = vadd.f32 1e-05, %v6482_v46  ;;  %v6481_v28 = vsub.f32 %v6438_v26, %v6473_v55  ;;  %v6321_v29 = vadd.f32 %v6320_v56, %v6154_v41  ;;  %v6461_v25 = vpop.f32.mrf.mxu1  ;;  %v13727_v46 = vld [vmem:[#allocation56_spill] sm:$0xff] }
 0x645   : > { %v6456_v58 = vadd.f32 %v9605_v7, %v6327_v61  ;;  %v9564_v44 = vpop.f32.mrf.mxu0  ;;  %v6492_v11 = vsub.f32 %v13727_v46, %v12990_v62  ;;  %v13731_v62 = vld [vmem:[#allocation99_spill] sm:$0xff] }
 0x646   : > { %9776 = vrsqrt.f32 %v6498_v17  ;;  %v6497_v60 = vadd.f32 1e-05, %v6481_v28  ;;  %v6450_v30 = vadd.f32 %v6449_v27, %v6321_v29  ;;  %v6339_v6 = vadd.f32 %v9564_v44, %v6178_v10 }
 0x647   : > { %v6484_v63 = vsub.f32 %v6456_v58, %v6476_v20  ;;  %v6332_v24 = vpop.f32.mrf.mxu0  ;;  %v6489_v27 = vsub.f32 %v13726_v57, %v12975_v13  ;;  %v13728_v20 = vld [vmem:[#allocation51_spill] sm:$0xff]  ;;  %v13729_v13 = vld [vmem:[#allocation97_spill] sm:$0xff]  ;;  %v6493_v44 = vsub.f32 %v13731_v62, %v13013_v48  ;;  %v9740_v48 = vld [vmem:[#allocation11 + $0x78] sm:$0xff]  }
 0x648   : > { %9778 = vrsqrt.f32 %v6497_v60  ;;  %v6483_v55 = vsub.f32 %v6450_v30, %v6475_v34  ;;  %v6468_v23 = vadd.f32 %v9608_v0, %v6339_v6  ;;  %v6333_v33 = vadd.f32 %v6332_v24, %v6170_v52  ;;  %8093 = vmatprep.subr.bf16.mxu1 %v9740_v48 }
 0x649   : > { %v6500_v45 = vadd.f32 1e-05, %v6484_v63  ;;  %v6491_v38 = vsub.f32 %v13728_v20, %v12994_v3  ;;  %v6494_v17 = vsub.f32 %v13729_v13, %v13007_v50  ;;  %v13730_v0 = vmov 0  }
 0x64a   : > { %v6499_v19 = vadd.f32 1e-05, %v6483_v55  ;;  %v6486_v32 = vsub.f32 %v6468_v23, %v6478_v15  ;;  %v6462_v7 = vadd.f32 %v6461_v25, %v6333_v33 }
 0x64b   : > { %9780 = vrsqrt.f32 %v6500_v45  ;;  %v9741_v45 = vld [vmem:[#allocation11 + $0x38] sm:$0xff]  }
 0x64c   : > { %9782 = vrsqrt.f32 %v6499_v19  ;;  %v6502_v35 = vadd.f32 1e-05, %v6486_v32  ;;  %v6485_v16 = vsub.f32 %v6462_v7, %v6477_v54  ;;  %8094 = vmatpush3.bf16.msra.mxu1 %v9741_v45  ;;  %v9742_v54 = vld [vmem:[#allocation11 + $0x70] sm:$0xff]   ;;  %v9744_v32 = vld [vmem:[#allocation11 + $0x68] sm:$0xff]  }
 0x64d   : > { %v9743_v19 = vld [vmem:[#allocation11 + $0x30] sm:$0xff]   ;;  %8095 = vmatprep.subr.bf16.mxu1 %v9742_v54  ;;  %v9745_v7 = vld [vmem:[#allocation11 + $0x28] sm:$0xff]  }
 0x64e   : > { %9784 = vrsqrt.f32 %v6502_v35  ;;  %v6501_v12 = vadd.f32 1e-05, %v6485_v16  ;;  %v9746_v35 = vld [vmem:[#allocation11 + $0x60] sm:$0xff]  }
 0x64f   : > { %v9773_v53 = vpop.eup %9772  ;;  %v9747_v16 = vld [vmem:[#allocation11 + $0x20] sm:$0xff]  }
 0x650   : > { %v6512_v9 = vmul.f32 %v9773_v53, %v6488_v22  ;;  %9786 = vrsqrt.f32 %v6501_v12  ;;  %8096 = vmatpush3.bf16.msra.mxu1 %v9743_v19  ;;  %v9749_v22 = vld [vmem:[#allocation11 + $0x18] sm:$0xff]   ;;  %v9750_v12 = vld [vmem:[#allocation11 + $0x50] sm:$0xff]  }
 0x651   : > { %v9775_v8 = vpop.eup %9774  ;;  %8097 = vmatprep.subr.bf16.mxu1 %v9744_v32  ;;  %v9751_v53 = vld [vmem:[#allocation11 + $0x10] sm:$0xff]  }
 0x652   : > { %v6511_v1 = vmul.f32 %v9775_v8, %v6487_v2  ;;  %v6527_v51 = vmul.f32 %v7235_v5, %v6512_v9  ;;  %v9754_v2 = vld [vmem:[#allocation11 + $0x40] sm:$0xff]   ;;  %v6571_v8 = vlaneseq }
 0x653   : > { %v9777_v40 = vpop.eup %9776  ;;  %v9755_v9 = vld [vmem:[#allocation11] sm:$0xff]  }
 0x654   : > { %v6526_v47 = vmul.f32 %v7235_v5, %v6511_v1  ;;  %v6514_v18 = vmul.f32 %v9777_v40, %v6490_v43  ;;  %v6542_v42 = vadd.f32 %v7236_v39, %v6527_v51  ;;  %8098 = vmatpush3.bf16.msra.mxu1 %v9745_v7  ;;  %v6572_v31 = vshrl.u32 %v6571_v8, 7  ;;  %v6569_v1 = vld [vmem:[%s13188_s11] sm:$0x3] }
 0x655   : > { %v9779_v21 = vpop.eup %9778  ;;  %8099 = vmatprep.subr.bf16.mxu1 %v9746_v35 }
 0x656   : > { %v6541_v49 = vadd.f32 %v7236_v39, %v6526_v47  ;;  %v6513_v41 = vmul.f32 %v9779_v21, %v6489_v27  ;;  %v6529_v37 = vmul.f32 %v7235_v5, %v6514_v18  ;;  %v6573_v43 = vsub.s32 0, %v6572_v31 }
 0x657   : > { %v6577_v51 = vsub.s32 1, %v6572_v31 }
 0x658   : > { %v9781_v26 = vpop.eup %9780  ;;  %v6549_v61 = vpack.c.bf16 %v6542_v42, %v6541_v49  ;;  %v6528_v56 = vmul.f32 %v7235_v5, %v6513_v41  ;;  %v6544_v29 = vadd.f32 %v7236_v39, %v6529_v37  ;;  %8100 = vmatpush3.bf16.msra.mxu1 %v9747_v16  ;;  %v13048_v40 = vrot.slane %v6569_v1, %v6573_v43 }
 0x659   : > { %v9783_v36 = vpop.eup %9782  ;;  %v6516_v10 = vmul.f32 %v9781_v26, %v6492_v11  ;;  %8101 = vmatprep.subr.bf16.mxu1 %v9748_v14 }
 0x65a   : > { %6694 = vmatmul.mubr.bf16.vlgmr.msra.gmra.mxu0 %v6549_v61  ;;  %v6543_v28 = vadd.f32 %v7236_v39, %v6528_v56  ;;  %v6515_v34 = vmul.f32 %v9783_v36, %v6491_v38 }
 0x65b   : > { %v9785_v4 = vpop.eup %9784  ;;  %6703 = vmatprep.mubr.bf16.mxu0 %v13730_v0  ;;  %v6531_v58 = vmul.f32 %v7235_v5, %v6516_v10 }
 0x65c   : > { %v6550_v52 = vpack.c.bf16 %v6544_v29, %v6543_v28  ;;  %v6530_v3 = vmul.f32 %v7235_v5, %v6515_v34  ;;  %v6518_v60 = vmul.f32 %v9785_v4, %v6494_v17  ;;  %8102 = vmatpush3.bf16.msra.mxu1 %v9749_v22 }
 0x65d   : > { %v9787_v30 = vpop.eup %9786  ;;  %v6546_v15 = vadd.f32 %v7236_v39, %v6531_v58  ;;  %8103 = vmatprep.subr.bf16.mxu1 %v9750_v12 }
 0x65e   : > { %v6545_v6 = vadd.f32 %v7236_v39, %v6530_v3  ;;  %v6517_v63 = vmul.f32 %v9787_v30, %v6493_v44  ;;  %v6533_v24 = vmul.f32 %v7235_v5, %v6518_v60 }
 0x660   : > { %v6551_v50 = vpack.c.bf16 %v6546_v15, %v6545_v6  ;;  %v6532_v55 = vmul.f32 %v7235_v5, %v6517_v63  ;;  %v6548_v33 = vadd.f32 %v7236_v39, %v6533_v24  ;;  %8104 = vmatpush3.bf16.msra.mxu1 %v9751_v53  ;;  %v9752_v5 = vld [vmem:[#allocation11 + $0x48] sm:$0xff]  }
 0x661   : > { %8105 = vmatprep.subr.bf16.mxu1 %v9752_v5 }
 0x662   : > { %6704 = vmatmul.mubr.bf16.gmra.mxu0 %v6550_v52  ;;  %v6547_v23 = vadd.f32 %v7236_v39, %v6532_v55  ;;  %v13050_v39 = vrot.slane %v6569_v1, %v6577_v51 }
 0x663   : > { %6713 = vmatprep.mubr.bf16.mxu0 %v13730_v0 }
 0x664   : > { %v6552_v25 = vpack.c.bf16 %v6548_v33, %v6547_v23  ;;  %8106 = vmatpush3.bf16.msra.mxu1 %v9753_v59 }
 0x665   : > { %8107 = vmatprep.subr.bf16.mxu1 %v9754_v2 }
 0x668   : > { %8108 = vmatpush3.bf16.msra.mxu1 %v9755_v9 }
 0x66a   : > { %6714 = vmatmul.mubr.bf16.gmra.mxu0 %v6551_v50 }
 0x66b   : > { %6723 = vmatprep.mubr.bf16.mxu0 %v13730_v0 }
 0x672   : > { %6724 = vmatmul.mubr.bf16.gmra.mxu0 %v6552_v25 }
 0x71a   : > { %v6695_v57 = vpop.f32.mrf.mxu0 }
 0x71b   : > { %v6696_v27 = vadd.f32 %v6695_v57, %v13048_v40 }
 0x71c   : > { %v6697_v47 = vpop.f32.mrf.mxu0 }
 0x71d   : > { %v6698_v18 = vadd.f32 %v6697_v47, %v13050_v39  ;;  %v6750_v21 = vmul.f32 0.70710677, %v6696_v27  ;;  %v6734_v16 = vmul.f32 0.5, %v6696_v27 }
 0x71e   : > { %v6699_v49 = vpop.f32.mrf.mxu0 }
 0x71f   : > { %v6751_v42 = vmul.f32 0.70710677, %v6698_v18  ;;  %v6700_v41 = vadd.f32 %v6699_v49, %v13048_v40  ;;  %v6735_v63 = vmul.f32 0.5, %v6698_v18 }
 0x720   : > { %v6701_v37 = vpop.f32.mrf.mxu0 }
 0x721   : > { %9788 = verf.f32 %v6751_v42  ;;  %v6752_v46 = vmul.f32 0.70710677, %v6700_v41  ;;  %v6702_v11 = vadd.f32 %v6701_v37, %v13050_v39  ;;  %v6736_v45 = vmul.f32 0.5, %v6700_v41 }
 0x722   : > { %9790 = verf.f32 %v6750_v21  ;;  %v6705_v26 = vpop.f32.mrf.mxu0 }
 0x723   : > { %9792 = verf.f32 %v6752_v46  ;;  %v6753_v20 = vmul.f32 0.70710677, %v6702_v11  ;;  %v13057_v38 = vadd.f32 %v6705_v26, %v13048_v40  ;;  %v6737_v32 = vmul.f32 0.5, %v6702_v11 }
 0x724   : > { %v6707_v61 = vpop.f32.mrf.mxu0 }
 0x725   : > { %9794 = verf.f32 %v6753_v20  ;;  %v13060_v56 = vadd.f32 %v6707_v61, %v13050_v39  ;;  %v6754_v36 = vmul.f32 0.70710677, %v13057_v38  ;;  %v6738_v61 = vmul.f32 0.5, %v13057_v38 }
 0x726   : > { %v6709_v10 = vpop.f32.mrf.mxu0 }
 0x727   : > { %v6755_v13 = vmul.f32 0.70710677, %v13060_v56  ;;  %v6710_v17 = vadd.f32 %v6709_v10, %v13048_v40  ;;  %v6739_v26 = vmul.f32 0.5, %v13060_v56 }
 0x728   : > { %v6711_v28 = vpop.f32.mrf.mxu0 }
 0x729   : > { %9796 = verf.f32 %v6755_v13  ;;  %v6756_v29 = vmul.f32 0.70710677, %v6710_v17  ;;  %v6712_v34 = vadd.f32 %v6711_v28, %v13050_v39  ;;  %v6740_v46 = vmul.f32 0.5, %v6710_v17 }
 0x72a   : > { %9798 = verf.f32 %v6754_v36  ;;  %v6715_v4 = vpop.f32.mrf.mxu0 }
 0x72b   : > { %9800 = verf.f32 %v6756_v29  ;;  %v6757_v0 = vmul.f32 0.70710677, %v6712_v34  ;;  %v13067_v58 = vadd.f32 %v6715_v4, %v13048_v40 }
 0x72c   : > { %v6717_v62 = vpop.f32.mrf.mxu0 }
 0x72d   : > { %9802 = verf.f32 %v6757_v0  ;;  %v6758_v44 = vmul.f32 0.70710677, %v13067_v58  ;;  %v13071_v3 = vadd.f32 %v6717_v62, %v13050_v39 }
 0x72e   : > { %v9789_v52 = vpop.eup %9788  ;;  %v6719_v60 = vpop.f32.mrf.mxu0 }
 0x72f   : > { %v9791_v30 = vpop.eup %9790  ;;  %v13074_v6 = vadd.f32 %v6719_v60, %v13048_v40  ;;  %v6759_v24 = vmul.f32 0.70710677, %v13071_v3  ;;  %v6783_v55 = vadd.f32 1.0, %v9789_v52  ;;  %9804 = verf.f32 %v6758_v44 }
 0x730   : > { %v9793_v15 = vpop.eup %9792  ;;  %v6721_v50 = vpop.f32.mrf.mxu0  ;;  %v6782_v48 = vadd.f32 1.0, %v9791_v30  ;;  %v6743_v38 = vmul.f32 0.5, %v13071_v3 }
 0x731   : > { %v6784_v23 = vadd.f32 1.0, %v9793_v15  ;;  %v6760_v33 = vmul.f32 0.70710677, %v13074_v6  ;;  %9806 = verf.f32 %v6759_v24  ;;  %v6722_v54 = vadd.f32 %v6721_v50, %v13050_v39 }
 0x732   : > { %v9795_v25 = vpop.eup %9794  ;;  %v6725_v19 = vpop.f32.mrf.mxu0  ;;  %v6799_v53 = vmul.f32 %v6783_v55, %v6735_v63  ;;  %v6798_v2 = vmul.f32 %v6782_v48, %v6734_v16  ;;  %v6744_v60 = vmul.f32 0.5, %v13074_v6  ;;  %v6742_v63 = vmul.f32 0.5, %v13067_v58 }
 0x733   : > { %v6785_v7 = vadd.f32 1.0, %v9795_v25  ;;  %9808 = verf.f32 %v6760_v33  ;;  %v13080_v35 = vadd.f32 %v6725_v19, %v13048_v40  ;;  %v6800_v14 = vmul.f32 %v6784_v23, %v6736_v45 }
 0x734   : > { %v6761_v22 = vmul.f32 0.70710677, %v6722_v54  ;;  %v6727_v12 = vpop.f32.mrf.mxu0  ;;  %v6745_v30 = vmul.f32 0.5, %v6722_v54 }
 0x735   : > { %v6801_v5 = vmul.f32 %v6785_v7, %v6737_v32  ;;  %v6762_v9 = vmul.f32 0.70710677, %v13080_v35  ;;  %v6728_v8 = vadd.f32 %v6727_v12, %v13050_v39  ;;  %v6814_v47 = vpack.c.bf16 %v6800_v14, %v6798_v2 }
 0x736   : > { %v9797_v59 = vpop.eup %9796  ;;  %9810 = verf.f32 %v6761_v22  ;;  %v6729_v31 = vpop.f32.mrf.mxu0  ;;  %v6746_v58 = vmul.f32 0.5, %v13080_v35 }
 0x737   : > { %v9799_v43 = vpop.eup %9798  ;;  %v6730_v1 = vadd.f32 %v6729_v31, %v13048_v40  ;;  %v6815_v51 = vpack.c.bf16 %v6801_v5, %v6799_v53  ;;  %v6763_v27 = vmul.f32 0.70710677, %v6728_v8  ;;  %v6787_v21 = vadd.f32 1.0, %v9797_v59 }
 0x738   : > { %v9801_v57 = vpop.eup %9800  ;;  %v6731_v18 = vpop.f32.mrf.mxu0  ;;  %9812 = verf.f32 %v6762_v9  ;;  %v6786_v37 = vadd.f32 1.0, %v9799_v43  ;;  %v6741_v40 = vmul.f32 0.5, %v6712_v34  ;;  %v6747_v3 = vmul.f32 0.5, %v6728_v8  ;;  %v13095_v43 = vld [vmem:[%s13190_s13] ss:$0 sm:$0xff] }
 0x739   : > { %v6788_v49 = vadd.f32 1.0, %v9801_v57  ;;  %v6764_v42 = vmul.f32 0.70710677, %v6730_v1  ;;  %6989 = vmatprep.mubr.bf16.mxu1 %v6815_v51  ;;  %9814 = verf.f32 %v6763_v27  ;;  %v6732_v11 = vadd.f32 %v6731_v18, %v13050_v39 }
 0x73a   : > { %v9803_v41 = vpop.eup %9802  ;;  %6990 = vmatmul.mubr.bf16.vlgmr.msra.gmra.mxu1 %v6814_v47  ;;  %v6803_v13 = vmul.f32 %v6787_v21, %v6739_v26  ;;  %v6802_v4 = vmul.f32 %v6786_v37, %v6738_v61  ;;  %v6748_v14 = vmul.f32 0.5, %v6730_v1 }
 0x73b   : > { %v6789_v20 = vadd.f32 1.0, %v9803_v41  ;;  %9816 = verf.f32 %v6764_v42  ;;  %v6804_v36 = vmul.f32 %v6788_v49, %v6740_v46  ;;  %v6765_v10 = vmul.f32 0.70710677, %v6732_v11 }
 0x73c   : > { %v9805_v29 = vpop.eup %9804  ;;  %v6749_v54 = vmul.f32 0.5, %v6732_v11 }
 0x73d   : > { %v6805_v28 = vmul.f32 %v6789_v20, %v6741_v40  ;;  %9818 = verf.f32 %v6765_v10  ;;  %v6816_v44 = vpack.c.bf16 %v6804_v36, %v6802_v4  ;;  %v6790_v34 = vadd.f32 1.0, %v9805_v29 }
 0x73e   : > { %v9807_v0 = vpop.eup %9806 }
 0x73f   : > { %v6817_v17 = vpack.c.bf16 %v6805_v28, %v6803_v13  ;;  %v6791_v52 = vadd.f32 1.0, %v9807_v0  ;;  %v6806_v25 = vmul.f32 %v6790_v34, %v6742_v63 }
 0x740   : > { %v9809_v62 = vpop.eup %9808 }
 0x741   : > { %v6792_v39 = vadd.f32 1.0, %v9809_v62  ;;  %6997 = vmatprep.mubr.bf16.mxu1 %v6817_v17  ;;  %v6807_v55 = vmul.f32 %v6791_v52, %v6743_v38  ;;  %v9844_v38 = vld [vmem:[%s10390_s18] sm:$0xff] }
 0x742   : > { %6998 = vmatmul.mubr.bf16.gmra.mxu1 %v6816_v44 }
 0x743   : > { %v9811_v56 = vpop.eup %9810  ;;  %v6808_v24 = vmul.f32 %v6792_v39, %v6744_v60 }
 0x744   : > { %v6793_v15 = vadd.f32 1.0, %v9811_v56 }
 0x745   : > { %v9813_v50 = vpop.eup %9812  ;;  %v6818_v19 = vpack.c.bf16 %v6808_v24, %v6806_v25 }
 0x746   : > { %v6809_v23 = vmul.f32 %v6793_v15, %v6745_v30  ;;  %v9815_v33 = vpop.eup %9814  ;;  %v6794_v6 = vadd.f32 1.0, %v9813_v50 }
 0x747   : > { %v6795_v7 = vadd.f32 1.0, %v9815_v33 }
 0x748   : > { %v9817_v48 = vpop.eup %9816  ;;  %v6819_v45 = vpack.c.bf16 %v6809_v23, %v6807_v55  ;;  %v6810_v59 = vmul.f32 %v6794_v6, %v6746_v58  ;;  %v9846_v58 = vld [vmem:[%s10390_s18 + $0x10] sm:$0xff] }
 0x749   : > { %v6796_v32 = vadd.f32 1.0, %v9817_v48  ;;  %v6811_v53 = vmul.f32 %v6795_v7, %v6747_v3 }
 0x74a   : > { %7005 = vmatprep.mubr.bf16.mxu1 %v6819_v45  ;;  %v9819_v16 = vpop.eup %9818  ;;  %v9845_v45 = vld [vmem:[%s10390_s18 + $0x8] sm:$0xff] }
 0x74b   : > { %7006 = vmatmul.mubr.bf16.gmra.mxu1 %v6818_v19  ;;  %v6797_v22 = vadd.f32 1.0, %v9819_v16  ;;  %v6812_v12 = vmul.f32 %v6796_v32, %v6748_v14 }
 0x74d   : > { %v6813_v5 = vmul.f32 %v6797_v22, %v6749_v54  ;;  %v6820_v9 = vpack.c.bf16 %v6812_v12, %v6810_v59 }
 0x74f   : > { %v6821_v2 = vpack.c.bf16 %v6813_v5, %v6811_v53 }
 0x751   : > { %7013 = vmatprep.mubr.bf16.mxu1 %v6821_v2 }
 0x753   : > { %7014 = vmatmul.mubr.bf16.gmra.mxu1 %v6820_v9 }
 0x7fa   : > { %v8109_v31 = vpop.f32.mrf.mxu1 }
 0x7fc   : > { %v8110_v1 = vpop.f32.mrf.mxu1 }
 0x7fd   : > { %v8111_v8 = vadd.f32 %v8110_v1, %v8109_v31  ;;  %v9847_v31 = vld [vmem:[%s10390_s18 + $0x18] sm:$0xff] }
 0x7fe   : > { %v8112_v51 = vpop.f32.mrf.mxu1 }
 0x7ff   : > { %v6992_v57 = vadd.f32 %v8111_v8, %v13095_v43 }
 0x800   : > { %v8113_v35 = vpop.f32.mrf.mxu1 }
 0x801   : > { %v7030_v47 = vmul.f32 0.70710677, %v6992_v57  ;;  %v8114_v27 = vadd.f32 %v8113_v35, %v8112_v51  ;;  %v7022_v0 = vmul.f32 0.5, %v6992_v57  ;;  %v9848_v35 = vld [vmem:[%s10390_s18 + $0x20] sm:$0xff] }
 0x802   : > { %v8115_v18 = vpop.f32.mrf.mxu1 }
 0x803   : > { %9820 = verf.f32 %v7030_v47  ;;  %v6995_v21 = vadd.f32 %v8114_v27, %v13095_v43 }
 0x804   : > { %v8116_v49 = vpop.f32.mrf.mxu1 }
 0x805   : > { %v7031_v42 = vmul.f32 0.70710677, %v6995_v21  ;;  %v8117_v41 = vadd.f32 %v8116_v49, %v8115_v18  ;;  %v7023_v15 = vmul.f32 0.5, %v6995_v21 }
 0x806   : > { %v8118_v37 = vpop.f32.mrf.mxu1 }
 0x807   : > { %9822 = verf.f32 %v7031_v42  ;;  %v7000_v46 = vadd.f32 %v8117_v41, %v13095_v43  ;;  %v9849_v42 = vld [vmem:[%s10390_s18 + $0x28] sm:$0xff] }
 0x808   : > { %v8119_v11 = vpop.f32.mrf.mxu1 }
 0x809   : > { %v7032_v26 = vmul.f32 0.70710677, %v7000_v46  ;;  %v8120_v40 = vadd.f32 %v8119_v11, %v8118_v37  ;;  %v7024_v32 = vmul.f32 0.5, %v7000_v46 }
 0x80b   : > { %9824 = verf.f32 %v7032_v26  ;;  %v7003_v20 = vadd.f32 %v8120_v40, %v13095_v43  ;;  %v8121_v61 = vpop.f32.mrf.mxu1  ;;  %v9850_v40 = vld [vmem:[%s10390_s18 + $0x30] sm:$0xff] }
 0x80d   : > { %v7033_v36 = vmul.f32 0.70710677, %v7003_v20  ;;  %v8122_v10 = vpop.f32.mrf.mxu1  ;;  %v7025_v53 = vmul.f32 0.5, %v7003_v20 }
 0x80e   : > { %v8123_v13 = vadd.f32 %v8122_v10, %v8121_v61 }
 0x80f   : > { %9826 = verf.f32 %v7033_v36  ;;  %v8124_v28 = vpop.f32.mrf.mxu1 }
 0x810   : > { %v9821_v29 = vpop.eup %9820  ;;  %v7008_v4 = vadd.f32 %v8123_v13, %v13095_v43  ;;  %v9851_v13 = vld [vmem:[%s10390_s18 + $0x38] sm:$0xff] }
 0x811   : > { %v7046_v17 = vadd.f32 1.0, %v9821_v29  ;;  %v8125_v62 = vpop.f32.mrf.mxu1 }
 0x812   : > { %v7034_v44 = vmul.f32 0.70710677, %v7008_v4  ;;  %v8126_v39 = vadd.f32 %v8125_v62, %v8124_v28  ;;  %v7026_v8 = vmul.f32 0.5, %v7008_v4 }
 0x813   : > { %v7054_v52 = vmul.f32 %v7046_v17, %v7022_v0  ;;  %v8127_v56 = vpop.f32.mrf.mxu1 }
 0x814   : > { %v9823_v34 = vpop.eup %9822  ;;  %9828 = verf.f32 %v7034_v44  ;;  %v7011_v60 = vadd.f32 %v8126_v39, %v13095_v43 }
 0x815   : > { %v7062_v30 = vadd.f32 %v9844_v38, %v7054_v52  ;;  %v7047_v63 = vadd.f32 1.0, %v9823_v34  ;;  %v8128_v24 = vpop.f32.mrf.mxu1 }
 0x816   : > { %v7035_v50 = vmul.f32 0.70710677, %v7011_v60  ;;  %v8129_v55 = vadd.f32 %v8128_v24, %v8127_v56  ;;  %v7027_v27 = vmul.f32 0.5, %v7011_v60 }
 0x817   : > { %7070 = vst [vmem:[%s13107_s26] sm:$0xff] %v7062_v30  ;;  %v7055_v23 = vmul.f32 %v7047_v63, %v7023_v15  ;;  %v8130_v33 = vpop.f32.mrf.mxu1 }
 0x818   : > { %v9825_v25 = vpop.eup %9824  ;;  %9830 = verf.f32 %v7035_v50  ;;  %v7016_v48 = vadd.f32 %v8129_v55, %v13095_v43 }
 0x819   : > { %v7063_v19 = vadd.f32 %v9845_v45, %v7055_v23  ;;  %v7048_v7 = vadd.f32 1.0, %v9825_v25  ;;  %v8131_v16 = vpop.f32.mrf.mxu1 }
 0x81a   : > { %v7036_v6 = vmul.f32 0.70710677, %v7016_v48  ;;  %v8132_v14 = vadd.f32 %v8131_v16, %v8130_v33  ;;  %v7028_v37 = vmul.f32 0.5, %v7016_v48 }
 0x81b   : > { %7071 = vst [vmem:[%s13107_s26 + $0x8] sm:$0xff] %v7063_v19  ;;  %v7056_v3 = vmul.f32 %v7048_v7, %v7024_v32 }
 0x81c   : > { %v9827_v54 = vpop.eup %9826  ;;  %9832 = verf.f32 %v7036_v6  ;;  %v7019_v22 = vadd.f32 %v8132_v14, %v13095_v43 }
 0x81d   : > { %v7064_v12 = vadd.f32 %v9846_v58, %v7056_v3  ;;  %v7049_v5 = vadd.f32 1.0, %v9827_v54 }
 0x81e   : > { %v7037_v59 = vmul.f32 0.70710677, %v7019_v22  ;;  %v7029_v61 = vmul.f32 0.5, %v7019_v22 }
 0x81f   : > { %7072 = vst [vmem:[%s13107_s26 + $0x10] sm:$0xff] %v7064_v12  ;;  %v7057_v2 = vmul.f32 %v7049_v5, %v7025_v53 }
 0x820   : > { %9834 = verf.f32 %v7037_v59 }
 0x821   : > { %v9829_v9 = vpop.eup %9828  ;;  %v7065_v1 = vadd.f32 %v9847_v31, %v7057_v2 }
 0x822   : > { %v7050_v51 = vadd.f32 1.0, %v9829_v9 }
 0x823   : > { %7073 = vst [vmem:[%s13107_s26 + $0x18] sm:$0xff] %v7065_v1 }
 0x824   : > { %v7058_v57 = vmul.f32 %v7050_v51, %v7026_v8 }
 0x825   : > { %v9831_v43 = vpop.eup %9830 }
 0x826   : > { %v7066_v47 = vadd.f32 %v9848_v35, %v7058_v57  ;;  %v7051_v18 = vadd.f32 1.0, %v9831_v43 }
 0x828   : > { %7074 = vst [vmem:[%s13107_s26 + $0x20] sm:$0xff] %v7066_v47  ;;  %v7059_v21 = vmul.f32 %v7051_v18, %v7027_v27 }
 0x829   : > { %v9833_v49 = vpop.eup %9832 }
 0x82a   : > { %v7067_v41 = vadd.f32 %v9849_v42, %v7059_v21  ;;  %v7052_v46 = vadd.f32 1.0, %v9833_v49 }
 0x82c   : > { %7075 = vst [vmem:[%s13107_s26 + $0x28] sm:$0xff] %v7067_v41  ;;  %v7060_v11 = vmul.f32 %v7052_v46, %v7028_v37 }
 0x82d   : > { %v9835_v26 = vpop.eup %9834 }
 0x82e   : > { %v7068_v20 = vadd.f32 %v9850_v40, %v7060_v11  ;;  %v7053_v36 = vadd.f32 1.0, %v9835_v26 }
 0x830   : > { %7076 = vst [vmem:[%s13107_s26 + $0x30] sm:$0xff] %v7068_v20  ;;  %v7061_v10 = vmul.f32 %v7053_v36, %v7029_v61 }
 0x832   : > { %v7069_v28 = vadd.f32 %v9851_v13, %v7061_v10 }
 0x834   : > { %7077 = vst [vmem:[%s13107_s26 + $0x38] sm:$0xff] %v7069_v28 }
 0x835   : > { %10021 = shalt.err (!%p10018_p0)
}
 0x836   : > { %s10022_s18 = scalar_lea.hbm %s13129_s21, 1024  ;;  %s10026_s28 = scalar_lea.hbm %s13191_s14, 2048 }
 0x837   : > { %p10023_p3 = scmp.ne.s32.totalorder %s13129_s21, %s10022_s18  ;;  %p10027_p1 = scmp.lt.s32.totalorder %s13129_s21, %s13191_s14 }
 0x838   : > { %p10028_p2 = scmp.lt.s32.totalorder %s10026_s28, %s10022_s18 }
 0x839   : > { %p10024_p12 = pnand %p10023_p3, %p10213_p5 }
 0x83a   : > { %p10029_p4 = por %p10028_p2, %p10027_p1 }
 0x83b   : > { %p10025_p10 = pneg %p10024_p12 }
 0x83d   : > { %p10030_p9 = pnand %p10029_p4, %p10025_p10 }
 0x83f   : > { %10033 = shalt.err (!%p10030_p9)
}
 0x840   : > { %s10098_s27 = smov 128   ;;  %s10099_s20 = smov 8  }
 0x841   : > { %9633 = dma.vmem_to_hbm [thread:$0]  (%p10213_p5), %s13131_s16, 1024, %s13129_s21, %s13137_s22, %s10098_s27, %s10098_s27, %s10099_s20  }
 0x842 PF: > { %s13732_s17 = sld [smem:[#allocation21_spill]] }
 0x843   : > { %s13733_s24 = sld [smem:[#allocation19_spill]] }
 0x848   : > { %p9670_p8 = scmp.ge.s32.totalorder %s13732_s17, 2 }
 0x849   : > { %s7107_s7 = sand.u32 1, %s13733_s24  }
 0x84a   : > { %p9655_p7 = pnand %p9670_p8, %p10217_p6  ;;  %s7108_s18 = scalar_lea.sflag [#allocation4], %s7107_s7 }
 0x84c   : > { %p9656_p13 = pneg %p9655_p7 }
 0x84e   : > { %10067 = dma.done.wait (%p9656_p13), %s7108_s18, 1024  }
 0x84f   : > { %10069 = vsyncadd (%p9656_p13), %s7108_s18, 4294966272  ;;  %s13735_s16 = sld [smem:[#allocation22_spill]]  ;;  %s13738_s29 = smov %s10076_s30 }
 0x850   : > { %s13736_s15 = sld [smem:[#allocation20_spill]] }
 0x851   : > { %s13737_s25 = sld [smem:[#allocation23_spill]] }
 0x855   : > { %p28_p11 = scmp.ge.s32.totalorder %s13735_s16, 4  }
 0x856   : > { %s13739_s30 = smov %s13736_s15 }
 0x857   : > { %s13740_s15 = smov %s13737_s25  ;;  %30 = sbr.rel (!%p28_p11) target bundleno = 9 (0x9), region = 136 }
 0x85c   :  { %7113 = vsyncpa [#allocation3], 1 }
 0x85d   :  { %7115 = vsyncpa [#allocation3 + $0x1], 1 }
 0x85e   :  { %7116 = vsyncpa [#allocation6], 1 }
 0x85f   :  { %7117 = vsyncpa [#allocation9], 1 }
 0x860   :  { %7118 = vsyncpa [#allocation12], 1 }
 0x861   :  { %7119 = vsyncpa [#allocation4], 1 }
 0x862   :  { %7121 = vsyncpa [#allocation4 + $0x1], 1 }

</bundles_post_ra>
